<compile_context>
chip_gen: v5e
topology: v5e:2x2
jax: 0.10.0
libtpu: 0.0.40
codegen_flags: <defaults>
</compile_context>

<pallas_src>
import functools

import jax
import jax.numpy as jnp
from jax.experimental import pallas as pl
from jax.experimental.pallas import tpu as pltpu


# -----------------------------------------------------------------------------
# Pallas kernel: multi-head self-attention on a tile of WT strip windows.
# Refs:
#   x_ref     : (WT, L, C)  window tokens, bf16
#   wq_ref    : (C, C)      q projection weight (1/sqrt(hd) scale pre-folded), bf16
#   wk_ref    : (C, C)      k projection weight, bf16
#   wv_ref    : (C, C)      v projection weight, bf16
#   wproj_ref : (C, C)      output projection weight, bf16
#   bproj_ref : (1, C)      output projection bias, f32
#   o_ref     : (WT, L, C)  output window tokens (caller dtype)
# -----------------------------------------------------------------------------
def _strip_attn_kernel(x_ref, wq_ref, wk_ref, wv_ref, wproj_ref, bproj_ref,
                       o_ref, *, nhead):
    wt, L, C = x_ref.shape
    hd = C // nhead
    M = wt * L

    x2 = x_ref[...].reshape(M, C)                                # (M, C) bf16

    # Full-width projections: one (M,C)x(C,C) MXU pass each, f32 accumulation.
    q = jnp.dot(x2, wq_ref[...], preferred_element_type=jnp.float32)
    k = jnp.dot(x2, wk_ref[...], preferred_element_type=jnp.float32)
    v = jnp.dot(x2, wv_ref[...], preferred_element_type=jnp.float32)
    q = q.astype(jnp.bfloat16).reshape(wt, L, C)
    k = k.astype(jnp.bfloat16).reshape(wt, L, C)
    v = v.astype(jnp.bfloat16).reshape(wt, L, C)

    # Per-head scores / softmax / PV.  Only single-batch-dim einsums are used
    # (the supported batched-matmul pattern); softmax math stays in f32.
    # TODO(synk): switch to a flash-style online-softmax loop over KV tiles
    # when 2*L*L*4 bytes per window exceeds the VMEM budget (long vertical
    # strips, L in the thousands).
    head_out = []
    for h in range(nhead):
        sl = slice(h * hd, (h + 1) * hd)
        qh, kh, vh = q[..., sl], k[..., sl], v[..., sl]          # (wt, L, hd) bf16

        s = jnp.einsum('wld,wmd->wlm', qh, kh,
                       preferred_element_type=jnp.float32)       # (wt, L, L) f32
        s = s - jnp.max(s, axis=-1, keepdims=True)
        p = jnp.exp(s)                                           # unnormalized
        denom = jnp.sum(p, axis=-1, keepdims=True)               # (wt, L, 1)

        pv = jnp.einsum('wlm,wmd->wld', p.astype(jnp.bfloat16), vh,
                        preferred_element_type=jnp.float32)      # (wt, L, hd) f32
        # Normalize after PV: reciprocal on the (wt,L,1) row-sum only, exact
        # (cheap at this size, avoids approx-recip error on long strips).
        pv = pv * pl.reciprocal(denom, approx=False)
        head_out.append(pv.astype(jnp.bfloat16))

    # (M, C) bf16 slab for the single output projection (trailing-dim concat).
    o = jnp.concatenate(head_out, axis=-1).reshape(M, C)

    # Single (M,C)x(C,C) output projection; bias folded into the epilogue.
    out = jnp.dot(o, wproj_ref[...], preferred_element_type=jnp.float32)
    out = out + bproj_ref[...]                                   # (M,C)+(1,C)
    o_ref[...] = out.reshape(wt, L, C).astype(o_ref.dtype)


def _vmem_budget_bytes():
    """Generation-aware VMEM limit (v7x: 64 MiB/TC, v5e/v6e: 128 MiB)."""
    try:
        info = pltpu.get_tpu_info()
        cap = int(getattr(info, "vmem_capacity_bytes", 64 * 1024 * 1024))
    except Exception:
        cap = 64 * 1024 * 1024
    return min((cap * 3) // 4, 100 * 1024 * 1024)


def _pick_window_tile(nw, l, c, vmem_limit, weight_bytes):
    """Windows per grid step, sized against VMEM and keeping >= 4 grid steps."""
    # Per-window footprint (bytes): bf16 in block (x2 double-buffered) + f32
    # out block (x2) + f32 q/k/v + bf16 q/k/v + ~2 heads of live f32 score/prob
    # temporaries + bf16 concat slab + f32 projection result.
    per_win = 36 * l * c + 16 * l * l
    budget = vmem_limit // 2 - weight_bytes          # headroom for estimate error
    cap = max(1, min(32, budget // max(per_win, 1)))
    cap = min(cap, nw)
    wt = 1
    for cand in range(cap, 0, -1):                   # largest divisor of nw <= cap
        if nw % cand == 0:
            wt = cand
            break
    # Keep the grid a multiple of 2 and >= 4 steps when NW allows, so both
    # TensorCores on 2-TC chips (v7x) get >= 2 steps each (DMA/compute overlap).
    min_steps = 4 if nw >= 4 else (2 if nw >= 2 else 1)
    while wt > 1 and nw // wt < min_steps:
        nxt = wt - 1
        while nxt > 1 and nw % nxt != 0:
            nxt -= 1
        wt = nxt
    return wt


def _window_attention(x_win, wq, wk, wv, wproj, bproj, *, nhead, out_dtype):
    """x_win: (num_windows, L, C) bf16 -> (num_windows, L, C) out_dtype."""
    NW, L, C = x_win.shape
    vmem_limit = _vmem_budget_bytes()
    # Weights have a constant index_map but are still double-buffered by default.
    # TODO(synk): at production C, single-buffer them (pipeline_mode=pl.Buffered(1))
    # or stage once into scratch to halve weight VMEM.
    weight_bytes = 2 * (4 * C * C * 2 + C * 4)
    WT = _pick_window_tile(NW, L, C, vmem_limit, weight_bytes)

    kernel = functools.partial(_strip_attn_kernel, nhead=nhead)
    # TODO(synk): if production C < 128, pad C to 128 at the wrapper so the x/o
    # blocks and the output stores are lane-dense (avoids masked vst).
    return pl.pallas_call(
        kernel,
        out_shape=jax.ShapeDtypeStruct((NW, L, C), out_dtype),
        grid_spec=pltpu.PrefetchScalarGridSpec(
            num_scalar_prefetch=0,
            grid=(NW // WT,),
            in_specs=[
                pl.BlockSpec((WT, L, C), lambda w: (w, 0, 0)),   # window tokens (bf16)
                pl.BlockSpec((C, C), lambda w: (0, 0)),          # wq (scaled, bf16)
                pl.BlockSpec((C, C), lambda w: (0, 0)),          # wk (bf16)
                pl.BlockSpec((C, C), lambda w: (0, 0)),          # wv (bf16)
                pl.BlockSpec((C, C), lambda w: (0, 0)),          # wproj (bf16)
                pl.BlockSpec((1, C), lambda w: (0, 0)),          # bproj (f32)
            ],
            out_specs=pl.BlockSpec((WT, L, C), lambda w: (w, 0, 0)),
        ),
        compiler_params=pltpu.CompilerParams(
            dimension_semantics=("parallel",),
            vmem_limit_bytes=vmem_limit),
    )(x_win, wq, wk, wv, wproj, bproj)


# -----------------------------------------------------------------------------
# StripAttention forward (window partition/reverse are JAX glue)
# -----------------------------------------------------------------------------
def strip_attention_forward(x, shape, params, *, nhead, strip_width,
                            is_vertical=False):
    """x: (B, N, C), shape=(H, W). Returns (B, N, C)."""
    H, W = shape
    B, N, C = x.shape
    assert N == H * W, "Inputs with wrong size."
    hd = C // nhead
    scale = hd ** -0.5
    out_dtype = x.dtype

    # Constant parameter transforms (outside the kernel): split qkv, fold the
    # 1/sqrt(hd) scale into the Q columns, cast MXU operands to bf16.
    wqkv = params["wqkv"]
    wq = (wqkv[:, 0 * C:1 * C] * jnp.asarray(scale, wqkv.dtype)).astype(jnp.bfloat16)
    wk = wqkv[:, 1 * C:2 * C].astype(jnp.bfloat16)
    wv = wqkv[:, 2 * C:3 * C].astype(jnp.bfloat16)
    wproj = params["wproj"].astype(jnp.bfloat16)
    bproj = params["bproj"].reshape(1, C).astype(jnp.float32)

    # bf16 activations at the call boundary (halves HBM DMA for x).
    # TODO(synk): emit bf16 output too if the surrounding model tolerates it.
    x4 = x.astype(jnp.bfloat16).reshape(B, H, W, C)
    sw = strip_width
    if is_vertical:
        # window = (H, sw): vertical strips of width sw spanning full height
        assert W % sw == 0
        nW = W // sw
        # TODO(synk): gather vertical strips with a strided BlockSpec on the
        # (B,H,W,C) layout instead of this host-side transpose.
        xw = x4.reshape(B, H, nW, sw, C).transpose(0, 2, 1, 3, 4)   # (B,nW,H,sw,C)
        xw = xw.reshape(B * nW, H * sw, C)
        wins = _window_attention(xw, wq, wk, wv, wproj, bproj,
                                 nhead=nhead, out_dtype=out_dtype)
        wins = wins.reshape(B, nW, H, sw, C).transpose(0, 2, 1, 3, 4)
        out = wins.reshape(B, H, W, C)
    else:
        # window = (sw, W): horizontal strips of height sw spanning full width
        assert H % sw == 0
        nH = H // sw
        xw = x4.reshape(B * nH, sw * W, C)     # free reshape: windows contiguous
        wins = _window_attention(xw, wq, wk, wv, wproj, bproj,
                                 nhead=nhead, out_dtype=out_dtype)
        out = wins.reshape(B, H, W, C)

    return out.reshape(B, N, C)


# -----------------------------------------------------------------------------
# Pure-JAX f32 reference (mirrors the PyTorch Attention inside the strip)
# -----------------------------------------------------------------------------
def _reference(x, shape, params, *, nhead, strip_width, is_vertical=False):
    H, W = shape
    B, N, C = x.shape
    hd = C // nhead
    scale = hd ** -0.5
    x4 = x.reshape(B, H, W, C)
    sw = strip_width
    if is_vertical:
        nW = W // sw
        xw = x4.reshape(B, H, nW, sw, C).transpose(0, 2, 1, 3, 4).reshape(
            B * nW, H * sw, C)
    else:
        nH = H // sw
        xw = x4.reshape(B * nH, sw * W, C)

    qkv = xw @ params["wqkv"]                                  # (NW, L, 3C)
    q, k, v = jnp.split(qkv, 3, axis=-1)
    NW, L, _ = q.shape
    q = q.reshape(NW, L, nhead, hd).transpose(0, 2, 1, 3) * scale
    k = k.reshape(NW, L, nhead, hd).transpose(0, 2, 1, 3)
    v = v.reshape(NW, L, nhead, hd).transpose(0, 2, 1, 3)
    attn = jax.nn.softmax(q @ jnp.swapaxes(k, -1, -2), axis=-1)
    o = (attn @ v).transpose(0, 2, 1, 3).reshape(NW, L, C)
    o = o @ params["wproj"] + params["bproj"].reshape(1, C)

    if is_vertical:
        nW = W // sw
        o = o.reshape(B, nW, H, sw, C).transpose(0, 2, 1, 3, 4).reshape(
            B, H, W, C)
    else:
        o = o.reshape(B, H, W, C)
    return o.reshape(B, N, C)


if __name__ == "__main__":
    # Small config consistent with the module: d_model=C, nhead heads,
    # strip_width divides H and W.
    B, H, W, C = 2, 16, 16, 32
    nhead, strip_width = 4, 4
    N = H * W

    key = jax.random.PRNGKey(0)
    kx, kq, kp, kb = jax.random.split(key, 4)
    x = jax.random.normal(kx, (B, N, C), dtype=jnp.float32)

    # Deterministic synthetic parameters (qkv_bias=False per module default;
    # proj keeps its bias as in nn.Linear).
    params = {
        "wqkv": jax.random.normal(kq, (C, 3 * C), dtype=jnp.float32) * 0.05,
        "wproj": jax.random.normal(kp, (C, C), dtype=jnp.float32) * 0.05,
        "bproj": jax.random.normal(kb, (1, C), dtype=jnp.float32) * 0.01,
    }

    for is_vertical in (False, True):
        out = strip_attention_forward(x, (H, W), params, nhead=nhead,
                                      strip_width=strip_width,
                                      is_vertical=is_vertical)
        out = jax.block_until_ready(out)
        ref = _reference(x, (H, W), params, nhead=nhead,
                         strip_width=strip_width, is_vertical=is_vertical)
        assert out.shape == (B, N, C)
        # bf16 MXU operands / bf16 activations at the boundary => bf16-level
        # tolerance against the f32 reference.
        assert jnp.allclose(out, ref, atol=2e-2, rtol=2e-2), (
            f"mismatch vs reference (is_vertical={is_vertical})")

    # TODO(synk): attn_drop / proj_drop are 0.0 by default and omitted (inference).
    print("KERNEL_OK")
</pallas_src>

<mosaic_0001>
module attributes {stable_mosaic.version = 11 : i64} {
  func.func @_strip_attn_kernel(%arg0: i32, %arg1: memref<2x64x32xbf16, #tpu.memory_space<vmem>>, %arg2: memref<32x32xbf16, #tpu.memory_space<vmem>>, %arg3: memref<32x32xbf16, #tpu.memory_space<vmem>>, %arg4: memref<32x32xbf16, #tpu.memory_space<vmem>>, %arg5: memref<32x32xbf16, #tpu.memory_space<vmem>>, %arg6: memref<1x32xf32, #tpu.memory_space<vmem>>, %arg7: memref<2x64x32xf32, #tpu.memory_space<vmem>>) attributes {dimension_semantics = [#tpu.dimension_semantics<parallel>], iteration_bounds = array<i64: 4>, scalar_prefetch = 0 : i64, scratch_operands = 0 : i64, tpu.core_type = #tpu.core_type<tc>, window_params = [{transform_indices = @transform_0, window_bounds = array<i64: 2, 64, 32>}, {pipeline_mode = #tpu.pipeline_mode<synchronous>, transform_indices = @transform_1, window_bounds = array<i64: 32, 32>}, {pipeline_mode = #tpu.pipeline_mode<synchronous>, transform_indices = @transform_2, window_bounds = array<i64: 32, 32>}, {pipeline_mode = #tpu.pipeline_mode<synchronous>, transform_indices = @transform_3, window_bounds = array<i64: 32, 32>}, {pipeline_mode = #tpu.pipeline_mode<synchronous>, transform_indices = @transform_4, window_bounds = array<i64: 32, 32>}, {pipeline_mode = #tpu.pipeline_mode<synchronous>, transform_indices = @transform_5, window_bounds = array<i64: 1, 32>}, {transform_indices = @transform_6, window_bounds = array<i64: 2, 64, 32>}]} {
    %c0 = arith.constant 0 : index
    %c0_0 = arith.constant 0 : index
    %c0_1 = arith.constant 0 : index
    %0 = vector.load %arg1[%c0, %c0_0, %c0_1] : memref<2x64x32xbf16, #tpu.memory_space<vmem>>, vector<2x64x32xbf16>
    %1 = vector.shape_cast %0 : vector<2x64x32xbf16> to vector<128x32xbf16>
    %c0_2 = arith.constant 0 : index
    %c0_3 = arith.constant 0 : index
    %2 = vector.load %arg2[%c0_2, %c0_3] : memref<32x32xbf16, #tpu.memory_space<vmem>>, vector<32x32xbf16>
    %cst = arith.constant dense<0.000000e+00> : vector<128x32xf32>
    %3 = tpu.matmul %1, %2, %cst {dimension_numbers = #tpu.dot_dimension_numbers<[1], [0], [0], [1], [0, 0, 1, 1], [], []>} : vector<128x32xbf16>, vector<32x32xbf16>, vector<128x32xf32> -> vector<128x32xf32>
    %c0_4 = arith.constant 0 : index
    %c0_5 = arith.constant 0 : index
    %4 = vector.load %arg3[%c0_4, %c0_5] : memref<32x32xbf16, #tpu.memory_space<vmem>>, vector<32x32xbf16>
    %cst_6 = arith.constant dense<0.000000e+00> : vector<128x32xf32>
    %5 = tpu.matmul %1, %4, %cst_6 {dimension_numbers = #tpu.dot_dimension_numbers<[1], [0], [0], [1], [0, 0, 1, 1], [], []>} : vector<128x32xbf16>, vector<32x32xbf16>, vector<128x32xf32> -> vector<128x32xf32>
    %c0_7 = arith.constant 0 : index
    %c0_8 = arith.constant 0 : index
    %6 = vector.load %arg4[%c0_7, %c0_8] : memref<32x32xbf16, #tpu.memory_space<vmem>>, vector<32x32xbf16>
    %cst_9 = arith.constant dense<0.000000e+00> : vector<128x32xf32>
    %7 = tpu.matmul %1, %6, %cst_9 {dimension_numbers = #tpu.dot_dimension_numbers<[1], [0], [0], [1], [0, 0, 1, 1], [], []>} : vector<128x32xbf16>, vector<32x32xbf16>, vector<128x32xf32> -> vector<128x32xf32>
    %8 = arith.truncf %3 : vector<128x32xf32> to vector<128x32xbf16>
    %9 = vector.shape_cast %8 : vector<128x32xbf16> to vector<2x64x32xbf16>
    %10 = arith.truncf %5 : vector<128x32xf32> to vector<128x32xbf16>
    %11 = vector.shape_cast %10 : vector<128x32xbf16> to vector<2x64x32xbf16>
    %12 = arith.truncf %7 : vector<128x32xf32> to vector<128x32xbf16>
    %13 = vector.shape_cast %12 : vector<128x32xbf16> to vector<2x64x32xbf16>
    %14 = vector.extract_strided_slice %9 {offsets = [0, 0, 0], sizes = [2, 64, 8], strides = [1, 1, 1]} : vector<2x64x32xbf16> to vector<2x64x8xbf16>
    %15 = vector.extract_strided_slice %11 {offsets = [0, 0, 0], sizes = [2, 64, 8], strides = [1, 1, 1]} : vector<2x64x32xbf16> to vector<2x64x8xbf16>
    %16 = vector.extract_strided_slice %13 {offsets = [0, 0, 0], sizes = [2, 64, 8], strides = [1, 1, 1]} : vector<2x64x32xbf16> to vector<2x64x8xbf16>
    "tpu.trace_start"() <{level = 10 : i32, message = "wld,wmd->wlm"}> : () -> ()
    %cst_10 = arith.constant dense<0.000000e+00> : vector<2x64x64xf32>
    %17 = tpu.matmul %14, %15, %cst_10 {dimension_numbers = #tpu.dot_dimension_numbers<[2], [2], [1], [1], [0, 0, 0, 1, 1, 1], [0], [0]>} : vector<2x64x8xbf16>, vector<2x64x8xbf16>, vector<2x64x64xf32> -> vector<2x64x64xf32>
    "tpu.trace_stop"() : () -> ()
    %cst_11 = arith.constant dense<0xFF800000> : vector<2x64xf32>
    %18 = vector.multi_reduction <maximumf>, %17, %cst_11 [2] : vector<2x64x64xf32> to vector<2x64xf32>
    %19 = vector.shape_cast %18 : vector<2x64xf32> to vector<2x64x1xf32>
    %20 = vector.broadcast %19 : vector<2x64x1xf32> to vector<2x64x64xf32>
    %21 = arith.subf %17, %20 : vector<2x64x64xf32>
    %22 = math.exp %21 : vector<2x64x64xf32>
    %cst_12 = arith.constant dense<0.000000e+00> : vector<2x64xf32>
    %23 = vector.multi_reduction <add>, %22, %cst_12 [2] : vector<2x64x64xf32> to vector<2x64xf32>
    %24 = vector.shape_cast %23 : vector<2x64xf32> to vector<2x64x1xf32>
    %25 = arith.truncf %22 : vector<2x64x64xf32> to vector<2x64x64xbf16>
    "tpu.trace_start"() <{level = 10 : i32, message = "wlm,wmd->wld"}> : () -> ()
    %cst_13 = arith.constant dense<0.000000e+00> : vector<2x64x8xf32>
    %26 = tpu.matmul %25, %16, %cst_13 {dimension_numbers = #tpu.dot_dimension_numbers<[2], [1], [1], [2], [0, 0, 0, 1, 1, 2], [0], [0]>} : vector<2x64x64xbf16>, vector<2x64x8xbf16>, vector<2x64x8xf32> -> vector<2x64x8xf32>
    "tpu.trace_stop"() : () -> ()
    %27 = tpu.reciprocal %24 : vector<2x64x1xf32> -> vector<2x64x1xf32>
    %28 = vector.broadcast %27 : vector<2x64x1xf32> to vector<2x64x8xf32>
    %29 = arith.mulf %26, %28 : vector<2x64x8xf32>
    %30 = arith.truncf %29 : vector<2x64x8xf32> to vector<2x64x8xbf16>
    %31 = vector.extract_strided_slice %9 {offsets = [0, 0, 8], sizes = [2, 64, 8], strides = [1, 1, 1]} : vector<2x64x32xbf16> to vector<2x64x8xbf16>
    %32 = vector.extract_strided_slice %11 {offsets = [0, 0, 8], sizes = [2, 64, 8], strides = [1, 1, 1]} : vector<2x64x32xbf16> to vector<2x64x8xbf16>
    %33 = vector.extract_strided_slice %13 {offsets = [0, 0, 8], sizes = [2, 64, 8], strides = [1, 1, 1]} : vector<2x64x32xbf16> to vector<2x64x8xbf16>
    "tpu.trace_start"() <{level = 10 : i32, message = "wld,wmd->wlm"}> : () -> ()
    %cst_14 = arith.constant dense<0.000000e+00> : vector<2x64x64xf32>
    %34 = tpu.matmul %31, %32, %cst_14 {dimension_numbers = #tpu.dot_dimension_numbers<[2], [2], [1], [1], [0, 0, 0, 1, 1, 1], [0], [0]>} : vector<2x64x8xbf16>, vector<2x64x8xbf16>, vector<2x64x64xf32> -> vector<2x64x64xf32>
    "tpu.trace_stop"() : () -> ()
    %cst_15 = arith.constant dense<0xFF800000> : vector<2x64xf32>
    %35 = vector.multi_reduction <maximumf>, %34, %cst_15 [2] : vector<2x64x64xf32> to vector<2x64xf32>
    %36 = vector.shape_cast %35 : vector<2x64xf32> to vector<2x64x1xf32>
    %37 = vector.broadcast %36 : vector<2x64x1xf32> to vector<2x64x64xf32>
    %38 = arith.subf %34, %37 : vector<2x64x64xf32>
    %39 = math.exp %38 : vector<2x64x64xf32>
    %cst_16 = arith.constant dense<0.000000e+00> : vector<2x64xf32>
    %40 = vector.multi_reduction <add>, %39, %cst_16 [2] : vector<2x64x64xf32> to vector<2x64xf32>
    %41 = vector.shape_cast %40 : vector<2x64xf32> to vector<2x64x1xf32>
    %42 = arith.truncf %39 : vector<2x64x64xf32> to vector<2x64x64xbf16>
    "tpu.trace_start"() <{level = 10 : i32, message = "wlm,wmd->wld"}> : () -> ()
    %cst_17 = arith.constant dense<0.000000e+00> : vector<2x64x8xf32>
    %43 = tpu.matmul %42, %33, %cst_17 {dimension_numbers = #tpu.dot_dimension_numbers<[2], [1], [1], [2], [0, 0, 0, 1, 1, 2], [0], [0]>} : vector<2x64x64xbf16>, vector<2x64x8xbf16>, vector<2x64x8xf32> -> vector<2x64x8xf32>
    "tpu.trace_stop"() : () -> ()
    %44 = tpu.reciprocal %41 : vector<2x64x1xf32> -> vector<2x64x1xf32>
    %45 = vector.broadcast %44 : vector<2x64x1xf32> to vector<2x64x8xf32>
    %46 = arith.mulf %43, %45 : vector<2x64x8xf32>
    %47 = arith.truncf %46 : vector<2x64x8xf32> to vector<2x64x8xbf16>
    %48 = vector.extract_strided_slice %9 {offsets = [0, 0, 16], sizes = [2, 64, 8], strides = [1, 1, 1]} : vector<2x64x32xbf16> to vector<2x64x8xbf16>
    %49 = vector.extract_strided_slice %11 {offsets = [0, 0, 16], sizes = [2, 64, 8], strides = [1, 1, 1]} : vector<2x64x32xbf16> to vector<2x64x8xbf16>
    %50 = vector.extract_strided_slice %13 {offsets = [0, 0, 16], sizes = [2, 64, 8], strides = [1, 1, 1]} : vector<2x64x32xbf16> to vector<2x64x8xbf16>
    "tpu.trace_start"() <{level = 10 : i32, message = "wld,wmd->wlm"}> : () -> ()
    %cst_18 = arith.constant dense<0.000000e+00> : vector<2x64x64xf32>
    %51 = tpu.matmul %48, %49, %cst_18 {dimension_numbers = #tpu.dot_dimension_numbers<[2], [2], [1], [1], [0, 0, 0, 1, 1, 1], [0], [0]>} : vector<2x64x8xbf16>, vector<2x64x8xbf16>, vector<2x64x64xf32> -> vector<2x64x64xf32>
    "tpu.trace_stop"() : () -> ()
    %cst_19 = arith.constant dense<0xFF800000> : vector<2x64xf32>
    %52 = vector.multi_reduction <maximumf>, %51, %cst_19 [2] : vector<2x64x64xf32> to vector<2x64xf32>
    %53 = vector.shape_cast %52 : vector<2x64xf32> to vector<2x64x1xf32>
    %54 = vector.broadcast %53 : vector<2x64x1xf32> to vector<2x64x64xf32>
    %55 = arith.subf %51, %54 : vector<2x64x64xf32>
    %56 = math.exp %55 : vector<2x64x64xf32>
    %cst_20 = arith.constant dense<0.000000e+00> : vector<2x64xf32>
    %57 = vector.multi_reduction <add>, %56, %cst_20 [2] : vector<2x64x64xf32> to vector<2x64xf32>
    %58 = vector.shape_cast %57 : vector<2x64xf32> to vector<2x64x1xf32>
    %59 = arith.truncf %56 : vector<2x64x64xf32> to vector<2x64x64xbf16>
    "tpu.trace_start"() <{level = 10 : i32, message = "wlm,wmd->wld"}> : () -> ()
    %cst_21 = arith.constant dense<0.000000e+00> : vector<2x64x8xf32>
    %60 = tpu.matmul %59, %50, %cst_21 {dimension_numbers = #tpu.dot_dimension_numbers<[2], [1], [1], [2], [0, 0, 0, 1, 1, 2], [0], [0]>} : vector<2x64x64xbf16>, vector<2x64x8xbf16>, vector<2x64x8xf32> -> vector<2x64x8xf32>
    "tpu.trace_stop"() : () -> ()
    %61 = tpu.reciprocal %58 : vector<2x64x1xf32> -> vector<2x64x1xf32>
    %62 = vector.broadcast %61 : vector<2x64x1xf32> to vector<2x64x8xf32>
    %63 = arith.mulf %60, %62 : vector<2x64x8xf32>
    %64 = arith.truncf %63 : vector<2x64x8xf32> to vector<2x64x8xbf16>
    %65 = vector.extract_strided_slice %9 {offsets = [0, 0, 24], sizes = [2, 64, 8], strides = [1, 1, 1]} : vector<2x64x32xbf16> to vector<2x64x8xbf16>
    %66 = vector.extract_strided_slice %11 {offsets = [0, 0, 24], sizes = [2, 64, 8], strides = [1, 1, 1]} : vector<2x64x32xbf16> to vector<2x64x8xbf16>
    %67 = vector.extract_strided_slice %13 {offsets = [0, 0, 24], sizes = [2, 64, 8], strides = [1, 1, 1]} : vector<2x64x32xbf16> to vector<2x64x8xbf16>
    "tpu.trace_start"() <{level = 10 : i32, message = "wld,wmd->wlm"}> : () -> ()
    %cst_22 = arith.constant dense<0.000000e+00> : vector<2x64x64xf32>
    %68 = tpu.matmul %65, %66, %cst_22 {dimension_numbers = #tpu.dot_dimension_numbers<[2], [2], [1], [1], [0, 0, 0, 1, 1, 1], [0], [0]>} : vector<2x64x8xbf16>, vector<2x64x8xbf16>, vector<2x64x64xf32> -> vector<2x64x64xf32>
    "tpu.trace_stop"() : () -> ()
    %cst_23 = arith.constant dense<0xFF800000> : vector<2x64xf32>
    %69 = vector.multi_reduction <maximumf>, %68, %cst_23 [2] : vector<2x64x64xf32> to vector<2x64xf32>
    %70 = vector.shape_cast %69 : vector<2x64xf32> to vector<2x64x1xf32>
    %71 = vector.broadcast %70 : vector<2x64x1xf32> to vector<2x64x64xf32>
    %72 = arith.subf %68, %71 : vector<2x64x64xf32>
    %73 = math.exp %72 : vector<2x64x64xf32>
    %cst_24 = arith.constant dense<0.000000e+00> : vector<2x64xf32>
    %74 = vector.multi_reduction <add>, %73, %cst_24 [2] : vector<2x64x64xf32> to vector<2x64xf32>
    %75 = vector.shape_cast %74 : vector<2x64xf32> to vector<2x64x1xf32>
    %76 = arith.truncf %73 : vector<2x64x64xf32> to vector<2x64x64xbf16>
    "tpu.trace_start"() <{level = 10 : i32, message = "wlm,wmd->wld"}> : () -> ()
    %cst_25 = arith.constant dense<0.000000e+00> : vector<2x64x8xf32>
    %77 = tpu.matmul %76, %67, %cst_25 {dimension_numbers = #tpu.dot_dimension_numbers<[2], [1], [1], [2], [0, 0, 0, 1, 1, 2], [0], [0]>} : vector<2x64x64xbf16>, vector<2x64x8xbf16>, vector<2x64x8xf32> -> vector<2x64x8xf32>
    "tpu.trace_stop"() : () -> ()
    %78 = tpu.reciprocal %75 : vector<2x64x1xf32> -> vector<2x64x1xf32>
    %79 = vector.broadcast %78 : vector<2x64x1xf32> to vector<2x64x8xf32>
    %80 = arith.mulf %77, %79 : vector<2x64x8xf32>
    %81 = arith.truncf %80 : vector<2x64x8xf32> to vector<2x64x8xbf16>
    %82 = tpu.concatenate %30, %47, %64, %81 in 2 : vector<2x64x8xbf16>, vector<2x64x8xbf16>, vector<2x64x8xbf16>, vector<2x64x8xbf16> -> vector<2x64x32xbf16>
    %83 = vector.shape_cast %82 : vector<2x64x32xbf16> to vector<128x32xbf16>
    %c0_26 = arith.constant 0 : index
    %c0_27 = arith.constant 0 : index
    %84 = vector.load %arg5[%c0_26, %c0_27] : memref<32x32xbf16, #tpu.memory_space<vmem>>, vector<32x32xbf16>
    %cst_28 = arith.constant dense<0.000000e+00> : vector<128x32xf32>
    %85 = tpu.matmul %83, %84, %cst_28 {dimension_numbers = #tpu.dot_dimension_numbers<[1], [0], [0], [1], [0, 0, 1, 1], [], []>} : vector<128x32xbf16>, vector<32x32xbf16>, vector<128x32xf32> -> vector<128x32xf32>
    %c0_29 = arith.constant 0 : index
    %c0_30 = arith.constant 0 : index
    %86 = vector.load %arg6[%c0_29, %c0_30] : memref<1x32xf32, #tpu.memory_space<vmem>>, vector<1x32xf32>
    %87 = vector.broadcast %86 : vector<1x32xf32> to vector<128x32xf32>
    %88 = arith.addf %85, %87 : vector<128x32xf32>
    %89 = vector.shape_cast %88 : vector<128x32xf32> to vector<2x64x32xf32>
    %c0_31 = arith.constant 0 : index
    %c0_32 = arith.constant 0 : index
    %c0_33 = arith.constant 0 : index
    %90 = vector.load %arg7[%c0_31, %c0_32, %c0_33] : memref<2x64x32xf32, #tpu.memory_space<vmem>>, vector<2x64x32xf32>
    tpu.vector_store %arg7[%c0_31, %c0_32, %c0_33], %89 {strides = array<i32>} : memref<2x64x32xf32, #tpu.memory_space<vmem>>, vector<2x64x32xf32>,
    return
  }
  func.func @transform_0(%arg0: i32) -> (i32, i32, i32) {
    %c0_i32 = arith.constant 0 : i32
    %c0_i32_0 = arith.constant 0 : i32
    %c0_i32_1 = arith.constant 0 : i32
    return %arg0, %c0_i32, %c0_i32_0 : i32, i32, i32
  }
  func.func @transform_1(%arg0: i32) -> (i32, i32) {
    %c0_i32 = arith.constant 0 : i32
    %c0_i32_0 = arith.constant 0 : i32
    %c0_i32_1 = arith.constant 0 : i32
    return %c0_i32, %c0_i32_0 : i32, i32
  }
  func.func @transform_2(%arg0: i32) -> (i32, i32) {
    %c0_i32 = arith.constant 0 : i32
    %c0_i32_0 = arith.constant 0 : i32
    %c0_i32_1 = arith.constant 0 : i32
    return %c0_i32, %c0_i32_0 : i32, i32
  }
  func.func @transform_3(%arg0: i32) -> (i32, i32) {
    %c0_i32 = arith.constant 0 : i32
    %c0_i32_0 = arith.constant 0 : i32
    %c0_i32_1 = arith.constant 0 : i32
    return %c0_i32, %c0_i32_0 : i32, i32
  }
  func.func @transform_4(%arg0: i32) -> (i32, i32) {
    %c0_i32 = arith.constant 0 : i32
    %c0_i32_0 = arith.constant 0 : i32
    %c0_i32_1 = arith.constant 0 : i32
    return %c0_i32, %c0_i32_0 : i32, i32
  }
  func.func @transform_5(%arg0: i32) -> (i32, i32) {
    %c0_i32 = arith.constant 0 : i32
    %c0_i32_0 = arith.constant 0 : i32
    %c0_i32_1 = arith.constant 0 : i32
    return %c0_i32, %c0_i32_0 : i32, i32
  }
  func.func @transform_6(%arg0: i32) -> (i32, i32, i32) {
    %c0_i32 = arith.constant 0 : i32
    %c0_i32_0 = arith.constant 0 : i32
    %c0_i32_1 = arith.constant 0 : i32
    return %arg0, %c0_i32, %c0_i32_0 : i32, i32, i32
  }
}

</mosaic_0001>

<bundles_post_ra>
// kernel: tpu_custom_call.1
= control target key start
LH: loop header
LB: loop body
LE: loop exit
PB: predicated region body
PF: predicated region fallthrough
CT: control target
= control target key end

     0   :  { %s4398_s21 = smov 0   ;;  %s6942_s0 = inlined_call_operand.vmem [shape: bf16[8,64,32], index: 0, kind: input, shape index: {}]   ;;  %s6943_s1 = inlined_call_operand.vmem [shape: bf16[32,32], index: 1, kind: input, shape index: {}]   ;;  %s6944_s2 = inlined_call_operand.vmem [shape: bf16[32,32], index: 2, kind: input, shape index: {}]   ;;  %s6945_s3 = inlined_call_operand.vmem [shape: bf16[32,32], index: 3, kind: input, shape index: {}]   ;;  %s6946_s4 = inlined_call_operand.vmem [shape: bf16[32,32], index: 4, kind: input, shape index: {}]   ;;  %s6947_s5 = inlined_call_operand.vmem [shape: f32[1,32], index: 5, kind: input, shape index: {}]   ;;  %s6948_s6 = inlined_call_operand.vmem [shape: f32[8,64,32], index: 6, kind: output, shape index: {}]  }
   0x1 LB: > { %s3884_s22 = sadd.s32 4294967295, %s4355_s21   ;;  %p3888_p0 = scmp.ge.s32.totalorder %s4355_s21, 1  ;;  %s4355_s21 = sphi %s4398_s21, %s16_s21  }
   0x2   : > { %p214_p1 = scmp.lt.s32.totalorder %s4355_s21, 5 }
   0x4   : > { %p215_p2 = pnand %p3888_p0, %p214_p1 }
   0x6   : > { %218 = sbr.rel (%p215_p2) target bundleno = 1515 (0x5eb), region = 44 }
   0xb   : > { %v4068_v0 = vld [vmem:[%s6943_s1 + $0x8] sm:$0xff]  ;;  %s3889_s29 = sshll.u32 %s3884_s22, 1  ;;  %v4067_v3 = vld [vmem:[%s6943_s1] sm:$0xff]  ;;  %vm6968_vm0 = vcmask 261120   ;;  %s4357_s16 = smov 112   ;;  %vm6969_vm1 = vcmask 64512  }
   0xc   : > { %v4070_v1 = vld [vmem:[%s6944_s2 + $0x8] sm:$0xff]  ;;  %p247_p3 = scmp.lt.s32.totalorder %s3889_s29, 7  ;;  %364 = vmatpush.bf16.msra.mxu0 %v4068_v0  ;;  %v4069_v4 = vld [vmem:[%s6944_s2] sm:$0xff]  ;;  %s4358_s17 = smov 120   ;;  %vm772_vm2 = vcmask 523264  }
   0xd   : > { %v4072_v2 = vld [vmem:[%s6945_s3 + $0x8] sm:$0xff]  ;;  %429 = vmatpush.bf16.msra.mxu1 %v4070_v1  ;;  %v4071_v5 = vld [vmem:[%s6945_s3] sm:$0xff]  ;;  %s4359_s18 = smov 104   ;;  %s4360_s19 = smov 16  }
   0xe   : > { %494 = vmatpush.bf16.msra.mxu2 %v4072_v2  ;;  %4075 = vmatpush.bf16.msra.mxu3 %v4072_v2  ;;  %s7187_s29 = smov (!%p247_p3, %s3889_s29), 7  ;;  %s4361_s20 = smov 8  }
   0xf   : > { %s4057_s12 = sshll.u32 %s7187_s29, 5  ;;  %s4362_s22 = smov 24  }
  0x10   : > { %365 = vmatpush.bf16.msra.mxu0 %v4067_v3  ;;  %s251_s15 = scalar_lea.vmem %s6942_s0, %s4057_s12  ;;  %s4058_s27 = sshll.u32 %s7187_s29, 6 }
  0x11   : > { %430 = vmatpush.bf16.msra.mxu1 %v4069_v4  ;;  %v4059_v6 = vld [vmem:[%s251_s15] sm:$0xff]  ;;  %v4060_v8 = vld [vmem:[%s251_s15 + $0x8] sm:$0xff]  ;;  %v4061_v10 = vld [vmem:[%s251_s15 + $0x10] sm:$0xff]  ;;  %s6462_s8 = scalar_lea.vmem %s6948_s6, %s4058_s27 }
  0x12   : > { %495 = vmatpush.bf16.msra.mxu2 %v4071_v5  ;;  %4076 = vmatpush.bf16.msra.mxu3 %v4071_v5  ;;  %v4063_v7 = vld [vmem:[%s251_s15 + $0x20] sm:$0xff]  ;;  %v4064_v9 = vld [vmem:[%s251_s15 + $0x28] sm:$0xff]  ;;  %v4065_v11 = vld [vmem:[%s251_s15 + $0x30] sm:$0xff] }
  0x13   : > { %3935 = vmatmul.msk.bf16.vlgmr.msra.gmra.mxu0 %vm6968_vm0, %v4059_v6  ;;  %v4062_v12 = vld [vmem:[%s251_s15 + $0x18] sm:$0xff] }
  0x14   : > { %3951 = vmatmul.msk.bf16.vlgmr.msra.gmra.mxu1 %vm6968_vm0, %v4059_v6  ;;  %v4066_v13 = vld [vmem:[%s251_s15 + $0x38] sm:$0xff] }
  0x15   : > { %3967 = vmatmul.msk.bf16.vlgmr.msra.gmra.mxu2 %vm6968_vm0, %v4059_v6  ;;  %3971 = vmatmul.msk.bf16.vlgmr.msra.gmra.mxu3 %vm6968_vm0, %v4063_v7 }
  0x23   : > { %3936 = vmatmul.msk.bf16.gmra.mxu0 %vm6968_vm0, %v4060_v8 }
  0x24   : > { %3952 = vmatmul.msk.bf16.gmra.mxu1 %vm6968_vm0, %v4060_v8 }
  0x25   : > { %3968 = vmatmul.msk.bf16.gmra.mxu2 %vm6968_vm0, %v4060_v8  ;;  %3972 = vmatmul.msk.bf16.gmra.mxu3 %vm6968_vm0, %v4064_v9 }
  0x33   : > { %3937 = vmatmul.msk.bf16.gmra.mxu0 %vm6968_vm0, %v4061_v10 }
  0x34   : > { %3953 = vmatmul.msk.bf16.gmra.mxu1 %vm6968_vm0, %v4061_v10 }
  0x35   : > { %3969 = vmatmul.msk.bf16.gmra.mxu2 %vm6968_vm0, %v4061_v10  ;;  %3973 = vmatmul.msk.bf16.gmra.mxu3 %vm6968_vm0, %v4065_v11 }
  0x43   : > { %3938 = vmatmul.msk.bf16.gmra.mxu0 %vm6968_vm0, %v4062_v12 }
  0x44   : > { %3954 = vmatmul.msk.bf16.gmra.mxu1 %vm6968_vm0, %v4062_v12 }
  0x45   : > { %3970 = vmatmul.msk.bf16.gmra.mxu2 %vm6968_vm0, %v4062_v12  ;;  %3974 = vmatmul.msk.bf16.gmra.mxu3 %vm6968_vm0, %v4066_v13 }
  0x53   : > { %3939 = vmatmul.msk.bf16.gmra.mxu0 %vm6968_vm0, %v4063_v7 }
  0x54   : > { %3955 = vmatmul.msk.bf16.gmra.mxu1 %vm6968_vm0, %v4063_v7 }
  0x63   : > { %3940 = vmatmul.msk.bf16.gmra.mxu0 %vm6968_vm0, %v4064_v9 }
  0x64   : > { %3956 = vmatmul.msk.bf16.gmra.mxu1 %vm6968_vm0, %v4064_v9 }
  0x73   : > { %3941 = vmatmul.msk.bf16.gmra.mxu0 %vm6968_vm0, %v4065_v11 }
  0x74   : > { %3957 = vmatmul.msk.bf16.gmra.mxu1 %vm6968_vm0, %v4065_v11 }
  0x83   : > { %3942 = vmatmul.msk.bf16.gmra.mxu0 %vm6968_vm0, %v4066_v13 }
  0x84   : > { %3958 = vmatmul.msk.bf16.gmra.mxu1 %vm6968_vm0, %v4066_v13 }
  0x90   : > { %v367_v14 = vpop.f32.mrf.mxu0 }
  0x91   : > { %v432_v15 = vpop.f32.mrf.mxu1  ;;  %v537_v16 = vpack.c.bf16 %v367_v14, %v367_v14 }
  0x92   : > { %v553_v17 = vpack.c.bf16 %v432_v15, %v432_v15 }
  0x93   : > { %v593_v24 = vunpack.c.l.b16 %v537_v16 }
  0x94   : > { %v613_v25 = vunpack.c.l.b16 %v553_v17 }
  0x98   : > { %v497_v18 = vpop.f32.mrf.mxu2  ;;  %v517_v19 = vpop.f32.mrf.mxu3 }
  0x99   : > { %v369_v20 = vpop.f32.mrf.mxu0  ;;  %v434_v21 = vpop.f32.mrf.mxu1  ;;  %v569_v30 = vpack.c.bf16 %v497_v18, %v497_v18  ;;  %v577_v31 = vpack.c.bf16 %v517_v19, %v517_v19 }
  0x9a   : > { %v538_v22 = vpack.c.bf16 %v369_v20, %v369_v20  ;;  %v554_v23 = vpack.c.bf16 %v434_v21, %v434_v21 }
  0x9b   : > { %v961_v40 = vunpack.c.l.b16 %v569_v30  ;;  %v1046_v41 = vunpack.c.l.b16 %v577_v31 }
  0x9c   : > { %v594_v26 = vunpack.c.l.b16 %v538_v22  ;;  %v614_v27 = vunpack.c.l.b16 %v554_v23 }
  0x9e   : > { %v4454_v28 = vpack.c.b16 %v594_v26, %v593_v24  ;;  %v4456_v29 = vpack.c.b16 %v614_v27, %v613_v25 }
  0xa0   : > { %v499_v32 = vpop.f32.mrf.mxu2  ;;  %v519_v33 = vpop.f32.mrf.mxu3  ;;  %2067 = vrot.lane.b32.xlu0 %v4456_v29, %s4357_s16  ;;  %1367 = vrot.lane.b32.xlu1 %v4456_v29, %s4358_s17 }
  0xa1   : > { %v570_v34 = vpack.c.bf16 %v499_v32, %v499_v32  ;;  %v578_v35 = vpack.c.bf16 %v519_v33, %v519_v33  ;;  %1359 = vrot.lane.b32.xlu2 %v4454_v28, %s4358_s17  ;;  %v372_v36 = vpop.f32.mrf.mxu0  ;;  %v437_v37 = vpop.f32.mrf.mxu1 }
  0xa2   : > { %v539_v44 = vpack.c.bf16 %v372_v36, %v372_v36  ;;  %v555_v54 = vpack.c.bf16 %v437_v37, %v437_v37 }
  0xa3   : > { %v962_v38 = vunpack.c.l.b16 %v570_v34  ;;  %v1047_v39 = vunpack.c.l.b16 %v578_v35 }
  0xa4   : > { %v595_v50 = vunpack.c.l.b16 %v539_v44  ;;  %v615_v63 = vunpack.c.l.b16 %v555_v54 }
  0xa5   : > { %v4464_v42 = vpack.c.b16 %v962_v38, %v961_v40  ;;  %v4466_v43 = vpack.c.b16 %v1047_v39, %v1046_v41 }
  0xa8   : > { %v502_v45 = vpop.f32.mrf.mxu2  ;;  %v522_v46 = vpop.f32.mrf.mxu3  ;;  %1750 = vrot.lane.b32.xlu0 %v4466_v43, %s4358_s17  ;;  %1677 = vrot.lane.b32.xlu1 %v4464_v42, %s4358_s17 }
  0xa9   : > { %2059 = vrot.lane.b32.xlu2 %v4454_v28, %s4357_s16  ;;  %v374_v47 = vpop.f32.mrf.mxu0  ;;  %v439_v48 = vpop.f32.mrf.mxu1  ;;  %v571_v55 = vpack.c.bf16 %v502_v45, %v502_v45  ;;  %v579_v19 = vpack.c.bf16 %v522_v46, %v522_v46 }
  0xaa   : > { %v540_v49 = vpack.c.bf16 %v374_v47, %v374_v47  ;;  %v556_v53 = vpack.c.bf16 %v439_v48, %v439_v48 }
  0xab   : > { %v963_v0 = vunpack.c.l.b16 %v571_v55  ;;  %v1048_v27 = vunpack.c.l.b16 %v579_v19 }
  0xac   : > { %v596_v51 = vunpack.c.l.b16 %v540_v49  ;;  %v616_v61 = vunpack.c.l.b16 %v556_v53 }
  0xae   : > { %v4474_v52 = vpack.c.b16 %v596_v51, %v595_v50  ;;  %v4482_v1 = vpack.c.b16 %v616_v61, %v615_v63 }
  0xb0   : > { %v504_v56 = vpop.f32.mrf.mxu2  ;;  %v524_v57 = vpop.f32.mrf.mxu3  ;;  %2377 = vrot.lane.b32.xlu1 %v4464_v42, %s4357_s16  ;;  %2761 = vrot.lane.b32.xlu0 %v4474_v52, %s4359_s18 }
  0xb1   : > { %v572_v58 = vpack.c.bf16 %v504_v56, %v504_v56  ;;  %2767 = vrot.lane.b32.xlu2 %v4456_v29, %s4359_s18  ;;  %v442_v59 = vpop.f32.mrf.mxu1  ;;  %v377_v60 = vpop.f32.mrf.mxu0  ;;  %v580_v20 = vpack.c.bf16 %v524_v57, %v524_v57 }
  0xb2   : > { %v557_v3 = vpack.c.bf16 %v442_v59, %v442_v59  ;;  %v541_v11 = vpack.c.bf16 %v377_v60, %v377_v60 }
  0xb3   : > { %v964_v62 = vunpack.c.l.b16 %v572_v58  ;;  %v1049_v30 = vunpack.c.l.b16 %v580_v20 }
  0xb4   : > { %v617_v9 = vunpack.c.l.b16 %v557_v3  ;;  %v597_v17 = vunpack.c.l.b16 %v541_v11 }
  0xb5   : > { %v4484_v2 = vpack.c.b16 %v964_v62, %v963_v0  ;;  %v4508_v36 = vpack.c.b16 %v1049_v30, %v1048_v27 }
  0xb8   : > { %v507_v4 = vpop.f32.mrf.mxu2  ;;  %v527_v5 = vpop.f32.mrf.mxu3  ;;  %1369 = vrot.lane.b32.xlu1 %v4482_v1, %s4358_s17  ;;  %1679 = vrot.lane.b32.xlu0 %v4484_v2, %s4358_s17 }
  0xb9   : > { %2759 = vrot.lane.b32.xlu2 %v4454_v28, %s4359_s18  ;;  %v444_v6 = vpop.f32.mrf.mxu1  ;;  %v379_v8 = vpop.f32.mrf.mxu0  ;;  %v573_v37 = vpack.c.bf16 %v507_v4, %v507_v4  ;;  %v581_v40 = vpack.c.bf16 %v527_v5, %v527_v5 }
  0xba   : > { %v558_v7 = vpack.c.bf16 %v444_v6, %v444_v6  ;;  %v542_v13 = vpack.c.bf16 %v379_v8, %v379_v8 }
  0xbb   : > { %v965_v53 = vunpack.c.l.b16 %v573_v37  ;;  %v1050_v55 = vunpack.c.l.b16 %v581_v40 }
  0xbc   : > { %v618_v10 = vunpack.c.l.b16 %v558_v7  ;;  %v598_v18 = vunpack.c.l.b16 %v542_v13  ;;  %v642_v7 = vsel %vm6969_vm1, %v4482_v1, 0 }
  0xbe   : > { %v4492_v12 = vpack.c.b16 %v618_v10, %v617_v9  ;;  %v4500_v21 = vpack.c.b16 %v598_v18, %v597_v17 }
  0xc0   : > { %v509_v14 = vpop.f32.mrf.mxu2  ;;  %v529_v15 = vpop.f32.mrf.mxu3  ;;  %2069 = vrot.lane.b32.xlu1 %v4482_v1, %s4357_s16  ;;  %1371 = vrot.lane.b32.xlu0 %v4492_v12, %s4358_s17  ;;  %v645_v0 = vsel %vm6969_vm1, %v4492_v12, 0 }
  0xc1   : > { %1361 = vrot.lane.b32.xlu2 %v4474_v52, %s4358_s17  ;;  %v447_v16 = vpop.f32.mrf.mxu1  ;;  %v382_v26 = vpop.f32.mrf.mxu0  ;;  %v574_v38 = vpack.c.bf16 %v509_v14, %v509_v14  ;;  %v582_v41 = vpack.c.bf16 %v529_v15, %v529_v15 }
  0xc2   : > { %v559_v22 = vpack.c.bf16 %v447_v16, %v447_v16  ;;  %v543_v5 = vpack.c.bf16 %v382_v26, %v382_v26 }
  0xc3   : > { %v966_v54 = vunpack.c.l.b16 %v574_v38  ;;  %v1051_v56 = vunpack.c.l.b16 %v582_v41 }
  0xc4   : > { %v619_v31 = vunpack.c.l.b16 %v559_v22  ;;  %v599_v9 = vunpack.c.l.b16 %v543_v5 }
  0xc5   : > { %v4522_v62 = vpack.c.b16 %v966_v54, %v965_v53  ;;  %v4524_v63 = vpack.c.b16 %v1051_v56, %v1050_v55 }
  0xc8   : > { %v512_v23 = vpop.f32.mrf.mxu2  ;;  %v532_v24 = vpop.f32.mrf.mxu3  ;;  %2061 = vrot.lane.b32.xlu1 %v4474_v52, %s4357_s16  ;;  %1363 = vrot.lane.b32.xlu0 %v4500_v21, %s4358_s17 }
  0xc9   : > { %2769 = vrot.lane.b32.xlu2 %v4482_v1, %s4359_s18  ;;  %v449_v25 = vpop.f32.mrf.mxu1  ;;  %v575_v34 = vpack.c.bf16 %v512_v23, %v512_v23  ;;  %v583_v35 = vpack.c.bf16 %v532_v24, %v532_v24  ;;  %v384_v59 = vpop.f32.mrf.mxu0  ;;  %v639_v1 = vsel %vm6969_vm1, %v4456_v29, 0 }
  0xca   : > { %v560_v32 = vpack.c.bf16 %v449_v25, %v449_v25  ;;  %v544_v6 = vpack.c.bf16 %v384_v59, %v384_v59 }
  0xcb   : > { %v967_v47 = vunpack.c.l.b16 %v575_v34  ;;  %v1052_v48 = vunpack.c.l.b16 %v583_v35 }
  0xcc   : > { %v620_v33 = vunpack.c.l.b16 %v560_v32  ;;  %v600_v10 = vunpack.c.l.b16 %v544_v6 }
  0xce   : > { %v4510_v39 = vpack.c.b16 %v620_v33, %v619_v31  ;;  %v4549_v13 = vpack.c.b16 %v600_v10, %v599_v9 }
  0xd0   : > { %v514_v44 = vpop.f32.mrf.mxu2  ;;  %v534_v45 = vpop.f32.mrf.mxu3  ;;  %1752 = vrot.lane.b32.xlu1 %v4508_v36, %s4358_s17  ;;  %2063 = vrot.lane.b32.xlu0 %v4500_v21, %s4357_s16  ;;  %v648_v46 = vsel %vm6969_vm1, %v4510_v39, 0 }
  0xd1   : > { %v576_v49 = vpack.c.bf16 %v514_v44, %v514_v44  ;;  %v584_v50 = vpack.c.bf16 %v534_v45, %v534_v45  ;;  %2379 = vrot.lane.b32.xlu2 %v4484_v2, %s4357_s16  ;;  %v452_v51 = vpop.f32.mrf.mxu1  ;;  %654 = vmatpush.bf16.xpose.msrb.mxu3 %v648_v46  ;;  %v387_v4 = vpop.f32.mrf.mxu0 }
  0xd2   : > { %v561_v29 = vpack.c.bf16 %v452_v51, %v452_v51  ;;  %v545_v22 = vpack.c.bf16 %v387_v4, %v387_v4 }
  0xd3   : > { %v968_v57 = vunpack.c.l.b16 %v576_v49  ;;  %v1053_v58 = vunpack.c.l.b16 %v584_v50 }
  0xd4   : > { %v707_v18 = vunpack.c.l.b16 %v561_v29  ;;  %v687_v26 = vunpack.c.l.b16 %v545_v22 }
  0xd5   : > { %v972_v60 = vpack.c.b16 %v968_v57, %v967_v47  ;;  %v4520_v61 = vpack.c.b16 %v1053_v58, %v1052_v48 }
  0xd7   : > { %993 = vmatpush.bf16.msrb.mxu0 %v972_v60  ;;  %1078 = vmatpush.bf16.msrb.mxu1 %v4520_v61 }
  0xd8   : > { %2071 = vrot.lane.b32.xlu1 %v4492_v12, %s4357_s16  ;;  %2381 = vrot.lane.b32.xlu0 %v4522_v62, %s4357_s16 }
  0xd9   : > { %2763 = vrot.lane.b32.xlu2 %v4500_v21, %s4359_s18  ;;  %v454_v3 = vpop.f32.mrf.mxu1  ;;  %655 = vmatpush.bf16.xpose.msrb.mxu3 %v645_v0  ;;  %v389_v11 = vpop.f32.mrf.mxu0 }
  0xda   : > { %v562_v16 = vpack.c.bf16 %v454_v3, %v454_v3  ;;  %v546_v23 = vpack.c.bf16 %v389_v11, %v389_v11 }
  0xdb   : > { %994 = vmatpush.bf16.msrb.mxu0 %v4522_v62  ;;  %1079 = vmatpush.bf16.msrb.mxu1 %v4524_v63 }
  0xdc   : > { %v708_v19 = vunpack.c.l.b16 %v562_v16  ;;  %v688_v27 = vunpack.c.l.b16 %v546_v23 }
  0xde   : > { %v4573_v24 = vpack.c.b16 %v708_v19, %v707_v18  ;;  %v4584_v34 = vpack.c.b16 %v688_v27, %v687_v26 }
  0xdf   : > { %995 = vmatpush.bf16.msrb.mxu0 %v4484_v2  ;;  %1080 = vmatpush.bf16.msrb.mxu1 %v4508_v36 }
  0xe0   : > { %2771 = vrot.lane.b32.xlu1 %v4492_v12, %s4359_s18  ;;  %1373 = vrot.lane.b32.xlu0 %v4510_v39, %s4358_s17  ;;  %v732_v19 = vsel %vm6969_vm1, %v4573_v24, 0 }
  0xe1   : > { %2073 = vrot.lane.b32.xlu2 %v4510_v39, %s4357_s16  ;;  %v457_v8 = vpop.f32.mrf.mxu1  ;;  %656 = vmatpush.bf16.xpose.msrb.mxu3 %v642_v7  ;;  %v392_v14 = vpop.f32.mrf.mxu0 }
  0xe2   : > { %v563_v32 = vpack.c.bf16 %v457_v8, %v457_v8  ;;  %v547_v49 = vpack.c.bf16 %v392_v14, %v392_v14 }
  0xe3   : > { %996 = vmatpush.bf16.msrb.mxu0 %v4464_v42  ;;  %1081 = vmatpush.bf16.msrb.mxu1 %v4466_v43 }
  0xe4   : > { %v709_v37 = vunpack.c.l.b16 %v563_v32  ;;  %v689_v56 = vunpack.c.l.b16 %v547_v49 }
  0xe8   : > { %1681 = vrot.lane.b32.xlu1 %v4522_v62, %s4358_s17  ;;  %2065 = vrot.lane.b32.xlu0 %v4549_v13, %s4357_s16 }
  0xe9   : > { %1365 = vrot.lane.b32.xlu2 %v4549_v13, %s4358_s17  ;;  %v459_v12 = vpop.f32.mrf.mxu1  ;;  %657 = vmatpush.bf16.xpose.msrb.mxu3 %v639_v1  ;;  %v394_v17 = vpop.f32.mrf.mxu0 }
  0xea   : > { %v564_v33 = vpack.c.bf16 %v459_v12, %v459_v12  ;;  %v548_v50 = vpack.c.bf16 %v394_v17, %v394_v17 }
  0xec   : > { %v710_v38 = vunpack.c.l.b16 %v564_v33  ;;  %v690_v57 = vunpack.c.l.b16 %v548_v50 }
  0xee   : > { %v716_v48 = vpack.c.b16 %v710_v38, %v709_v37  ;;  %v696_v0 = vpack.c.b16 %v690_v57, %v689_v56 }
  0xf0   : > { %3975 = vmatmul.msk.bf16.vlgmr.msrb.gmra.mxu3 %vm6969_vm1, %v4454_v28  ;;  %1754 = vrot.lane.b32.xlu1 %v4524_v63, %s4358_s17  ;;  %v735_v1 = vsel %vm6969_vm1, %v716_v48, 0 }
  0xf1   : > { %2765 = vrot.lane.b32.xlu0 %v4549_v13, %s4359_s18  ;;  %2773 = vrot.lane.b32.xlu2 %v4510_v39, %s4359_s18  ;;  %v462_v15 = vpop.f32.mrf.mxu1  ;;  %v397_v31 = vpop.f32.mrf.mxu0 }
  0xf2   : > { %v565_v45 = vpack.c.bf16 %v462_v15, %v462_v15  ;;  %v549_v8 = vpack.c.bf16 %v397_v31, %v397_v31 }
  0xf4   : > { %v711_v54 = vunpack.c.l.b16 %v565_v45  ;;  %v691_v10 = vunpack.c.l.b16 %v549_v8 }
  0xf8   : > { %1756 = vrot.lane.b32.xlu1 %v4520_v61, %s4358_s17 }
  0xf9   : > { %2383 = vrot.lane.b32.xlu0 %v972_v60, %s4357_s16  ;;  %1683 = vrot.lane.b32.xlu2 %v972_v60, %s4358_s17  ;;  %v464_v28 = vpop.f32.mrf.mxu1  ;;  %v399_v47 = vpop.f32.mrf.mxu0 }
  0xfa   : > { %v566_v46 = vpack.c.bf16 %v464_v28, %v464_v28  ;;  %v550_v9 = vpack.c.bf16 %v399_v47, %v399_v47 }
  0xfb   : > { %v4571_v20 = vpop.permute.xlu2 %1359 }
  0xfc   : > { %v712_v55 = vunpack.c.l.b16 %v566_v46  ;;  %v692_v11 = vunpack.c.l.b16 %v550_v9 }
  0xfe   : > { %v697_v28 = vpack.c.b16 %v692_v11, %v691_v10 }
 0x100   : > { %2456 = vrot.lane.b32.xlu1 %v4520_v61, %s4357_s16  ;;  %3976 = vmatmul.msk.bf16.gmra.mxu3 %vm6969_vm1, %v4474_v52 }
 0x101   : > { %3083 = vrot.lane.b32.xlu0 %v972_v60, %s4359_s18  ;;  %1436 = vrot.lane.b32.xlu2 %v4573_v24, %s4358_s17  ;;  %v467_v25 = vpop.f32.mrf.mxu1  ;;  %v717_v60 = vpack.c.b16 %v712_v55, %v711_v54  ;;  %v402_v3 = vpop.f32.mrf.mxu0 }
 0x102   : > { %v567_v35 = vpack.c.bf16 %v467_v25, %v467_v25 }
 0x103   : > { %v4582_v30 = vpop.permute.xlu2 %2059  ;;  %v738_v4 = vsel %vm6969_vm1, %v717_v60, 0 }
 0x104   : > { %v713_v39 = vunpack.c.l.b16 %v567_v35 }
 0x108   : > { %1428 = vrot.lane.b32.xlu1 %v4584_v34, %s4358_s17 }
 0x109   : > { %2836 = vrot.lane.b32.xlu0 %v4573_v24, %s4359_s18  ;;  %2136 = vrot.lane.b32.xlu2 %v4573_v24, %s4357_s16  ;;  %v469_v52 = vpop.f32.mrf.mxu1  ;;  %v404_v12 = vpop.f32.mrf.mxu0 }
 0x10a   : > { %v568_v40 = vpack.c.bf16 %v469_v52, %v469_v52  ;;  %v552_v16 = vpack.c.bf16 %v404_v12, %v404_v12 }
 0x10b   : > { %v4592_v41 = vpop.permute.xlu2 %2767 }
 0x10c   : > { %v714_v44 = vunpack.c.l.b16 %v568_v40  ;;  %v694_v18 = vunpack.c.l.b16 %v552_v16 }
 0x10e   : > { %v4594_v51 = vpack.c.b16 %v714_v44, %v713_v39 }
 0x110   : > { %3977 = vmatmul.msk.bf16.gmra.mxu3 %vm6969_vm1, %v4500_v21  ;;  %2138 = vrot.lane.b32.xlu1 %v716_v48, %s4357_s16  ;;  %v741_v53 = vsel %vm6969_vm1, %v4594_v51, 0 }
 0x111   : > { %1438 = vrot.lane.b32.xlu0 %v716_v48, %s4358_s17  ;;  %2128 = vrot.lane.b32.xlu2 %v4584_v34, %s4357_s16 }
 0x112   : > { %747 = vmatpush.bf16.xpose.msra.mxu3 %v741_v53  ;;  %v4604_v58 = vpop.permute.xlu0 %2067  ;;  %v4606_v59 = vpop.permute.xlu1 %1367 }
 0x113   : > { %v4608_v21 = vpop.permute.xlu2 %2759  ;;  %v1388_v54 = vsel %vm6969_vm1, %v4606_v59, 0  ;;  %v2088_v12 = vsel %vm6969_vm1, %v4604_v58, 0 }
 0x118   : > { %2130 = vrot.lane.b32.xlu1 %v696_v0, %s4357_s16 }
 0x119   : > { %2828 = vrot.lane.b32.xlu2 %v4584_v34, %s4359_s18  ;;  %1430 = vrot.lane.b32.xlu0 %v696_v0, %s4358_s17 }
 0x11a   : > { %748 = vmatpush.bf16.xpose.msra.mxu3 %v738_v4  ;;  %v4615_v5 = vpop.permute.xlu0 %1750  ;;  %v4617_v6 = vpop.permute.xlu1 %1677 }
 0x11b   : > { %v4619_v7 = vpop.permute.xlu2 %1361 }
 0x120   : > { %3978 = vmatmul.msk.bf16.gmra.mxu3 %vm6969_vm1, %v4549_v13  ;;  %1442 = vrot.lane.b32.xlu1 %v4594_v51, %s4358_s17  ;;  %v551_v13 = vpack.c.bf16 %v402_v3, %v402_v3 }
 0x121   : > { %2838 = vrot.lane.b32.xlu2 %v716_v48, %s4359_s18  ;;  %2830 = vrot.lane.b32.xlu0 %v696_v0, %s4359_s18 }
 0x122   : > { %749 = vmatpush.bf16.xpose.msra.mxu3 %v735_v1  ;;  %v4628_v14 = vpop.permute.xlu1 %2377  ;;  %v4630_v15 = vpop.permute.xlu0 %2761  ;;  %v693_v17 = vunpack.c.l.b16 %v551_v13 }
 0x123   : > { %v4632_v29 = vpop.permute.xlu2 %2769 }
 0x124   : > { %v698_v26 = vpack.c.b16 %v694_v18, %v693_v17 }
 0x128   : > { %2142 = vrot.lane.b32.xlu1 %v4594_v51, %s4357_s16 }
 0x129   : > { %1440 = vrot.lane.b32.xlu0 %v717_v60, %s4358_s17  ;;  %1432 = vrot.lane.b32.xlu2 %v697_v28, %s4358_s17 }
 0x12a   : > { %750 = vmatpush.bf16.xpose.msra.mxu3 %v732_v19  ;;  %v1370_v22 = vpop.permute.xlu1 %1369  ;;  %v1680_v23 = vpop.permute.xlu0 %1679 }
 0x12b   : > { %v4640_v25 = vpop.permute.xlu2 %2379  ;;  %v1391_v49 = vsel %vm6969_vm1, %v1370_v22, 0 }
 0x130   : > { %2134 = vrot.lane.b32.xlu1 %v698_v26, %s4357_s16 }
 0x131   : > { %3979 = vmatmul.msk.bf16.vlgmr.msra.gmra.mxu3 %vm6969_vm1, %v4584_v34  ;;  %2140 = vrot.lane.b32.xlu0 %v717_v60, %s4357_s16 }
 0x132   : > { %2132 = vrot.lane.b32.xlu2 %v697_v28, %s4357_s16  ;;  %v4647_v27 = vpop.permute.xlu1 %2069  ;;  %v1372_v31 = vpop.permute.xlu0 %1371 }
 0x133   : > { %v4649_v32 = vpop.permute.xlu2 %2763  ;;  %v1394_v46 = vsel %vm6969_vm1, %v1372_v31, 0 }
 0x138   : > { %2452 = vrot.lane.b32.xlu1 %v4508_v36, %s4357_s16 }
 0x139   : > { %2832 = vrot.lane.b32.xlu0 %v697_v28, %s4359_s18 }
 0x13a   : > { %2840 = vrot.lane.b32.xlu2 %v717_v60, %s4359_s18  ;;  %v4655_v24 = vpop.permute.xlu1 %2061  ;;  %v4657_v33 = vpop.permute.xlu0 %1363 }
 0x13b   : > { %v2074_v34 = vpop.permute.xlu2 %2073 }
 0x13c   : > { %v2097_v55 = vsel %vm6969_vm1, %v2074_v34, 0 }
 0x140   : > { %3077 = vrot.lane.b32.xlu1 %v4464_v42, %s4359_s18 }
 0x141   : > { %3980 = vmatmul.msk.bf16.gmra.mxu3 %vm6969_vm1, %v696_v0  ;;  %3081 = vrot.lane.b32.xlu0 %v4522_v62, %s4359_s18 }
 0x142   : > { %1434 = vrot.lane.b32.xlu2 %v698_v26, %s4358_s17  ;;  %v1753_v35 = vpop.permute.xlu1 %1752  ;;  %v4665_v52 = vpop.permute.xlu0 %2063 }
 0x143   : > { %v4667_v37 = vpop.permute.xlu2 %1365 }
 0x148   : > { %3156 = vrot.lane.b32.xlu1 %v4520_v61, %s4359_s18 }
 0x149   : > { %3079 = vrot.lane.b32.xlu0 %v4484_v2, %s4359_s18 }
 0x14a   : > { %2842 = vrot.lane.b32.xlu2 %v4594_v51, %s4359_s18  ;;  %v2072_v42 = vpop.permute.xlu1 %2071  ;;  %v4675_v38 = vpop.permute.xlu0 %2381 }
 0x14b   : > { %v2774_v62 = vpop.permute.xlu2 %2773  ;;  %v2094_v59 = vsel %vm6969_vm1, %v2072_v42, 0 }
 0x14c   : > { %v2797_v13 = vsel %vm6969_vm1, %v2774_v62, 0 }
 0x151   : > { %3981 = vmatmul.msk.bf16.gmra.mxu3 %vm6969_vm1, %v697_v28 }
 0x152   : > { %2834 = vrot.lane.b32.xlu2 %v698_v26, %s4359_s18  ;;  %v4679_v39 = vpop.permute.xlu1 %2771  ;;  %v1374_v40 = vpop.permute.xlu0 %1373 }
 0x153   : > { %v1684_v44 = vpop.permute.xlu2 %1683  ;;  %v1397_v61 = vsel %vm6969_vm1, %v1374_v40, 0  ;;  %v2794_v58 = vsel %vm6969_vm1, %v4679_v39, 0 }
 0x154   : > { %1705 = vmatpush.bf16.msra.mxu0 %v1684_v44  ;;  %1403 = vmatpush.bf16.xpose.msrb.mxu2 %v1397_v61  ;;  %v2788_v44 = vsel %vm6969_vm1, %v4592_v41, 0 }
 0x15a   : > { %2454 = vrot.lane.b32.xlu2 %v4524_v63, %s4357_s16  ;;  %v1682_v2 = vpop.permute.xlu1 %1681  ;;  %v4684_v45 = vpop.permute.xlu0 %2065 }
 0x15b   : > { %1706 = vmatpush.bf16.msra.mxu0 %v1682_v2  ;;  %v4694_v50 = vpop.permute.xlu2 %1436 }
 0x15c   : > { %1404 = vmatpush.bf16.xpose.msrb.mxu2 %v1394_v46  ;;  %v1457_v41 = vsel %vm6969_vm1, %v4694_v50, 0 }
 0x15f   : > { %1707 = vmatpush.bf16.msra.mxu0 %v1680_v23 }
 0x161   : > { %3982 = vmatmul.msk.bf16.gmra.mxu3 %vm6969_vm1, %v698_v26 }
 0x162   : > { %2450 = vrot.lane.b32.xlu2 %v4466_v43, %s4357_s16  ;;  %v1755_v47 = vpop.permute.xlu1 %1754 }
 0x163   : > { %v4690_v48 = vpop.permute.xlu0 %2765  ;;  %1708 = vmatpush.bf16.msra.mxu0 %v4617_v6  ;;  %v4703_v57 = vpop.permute.xlu2 %2136 }
 0x164   : > { %1405 = vmatpush.bf16.xpose.msrb.mxu2 %v1391_v49 }
 0x16a   : > { %v1757_v51 = vpop.permute.xlu1 %1756 }
 0x16b   : > { %v4696_v53 = vpop.permute.xlu0 %2383  ;;  %1778 = vmatpush.bf16.msra.mxu1 %v1757_v51  ;;  %v4723_v9 = vpop.permute.xlu2 %2128 }
 0x16c   : > { %1406 = vmatpush.bf16.xpose.msrb.mxu2 %v1388_v54 }
 0x16f   : > { %1779 = vmatpush.bf16.msra.mxu1 %v1755_v47 }
 0x172   : > { %v4701_v56 = vpop.permute.xlu1 %2456 }
 0x173   : > { %v4705_v60 = vpop.permute.xlu0 %3083  ;;  %3991 = vmatmul.msk.bf16.vlgmr.msrb.gmra.mxu2 %vm6969_vm1, %v4571_v20  ;;  %1780 = vmatpush.bf16.msra.mxu1 %v1753_v35  ;;  %v4709_v0 = vpop.f32.mrf.mxu3  ;;  %v2091_v20 = vsel %vm6969_vm1, %v4647_v27, 0  ;;  %v2791_v35 = vsel %vm6969_vm1, %v4632_v29, 0 }
 0x174   : > { %2103 = vmatpush.bf16.xpose.msra.mxu2 %v2097_v55  ;;  %v773_v3 = vsel %vm772_vm2, %v4709_v0, -inf  ;;  %v4736_v16 = vpop.permute.xlu2 %2828 }
 0x175   : > { %774 = vmax.xlane.f32.xlu0 %v773_v3 }
 0x177   : > { %1781 = vmatpush.bf16.msra.mxu1 %v4615_v5 }
 0x17a   : > { %v4715_v4 = vpop.permute.xlu1 %1428 }
 0x17b   : > { %v4717_v6 = vpop.permute.xlu0 %2836  ;;  %v4719_v8 = vpop.f32.mrf.mxu3 }
 0x17c   : > { %2104 = vmatpush.bf16.xpose.msra.mxu2 %v2094_v59  ;;  %v776_v10 = vsel %vm772_vm2, %v4719_v8, -inf  ;;  %v4748_v22 = vpop.permute.xlu2 %2838 }
 0x17d   : > { %777 = vmax.xlane.f32.xlu1 %v776_v10 }
 0x182   : > { %v4727_v11 = vpop.permute.xlu1 %2138 }
 0x183   : > { %v1439_v1 = vpop.permute.xlu0 %1438  ;;  %3992 = vmatmul.msk.bf16.gmra.mxu2 %vm6969_vm1, %v4619_v7  ;;  %v4731_v5 = vpop.f32.mrf.mxu3 }
 0x184   : > { %2105 = vmatpush.bf16.xpose.msra.mxu2 %v2091_v20  ;;  %v779_v28 = vsel %vm772_vm2, %v4731_v5, -inf  ;;  %v1433_v42 = vpop.permute.xlu2 %1432  ;;  %v1460_v61 = vsel %vm6969_vm1, %v1439_v1, 0  ;;  %v2160_v1 = vsel %vm6969_vm1, %v4727_v11, 0 }
 0x18a   : > { %v4740_v17 = vpop.permute.xlu1 %2130 }
 0x18b   : > { %780 = vmax.xlane.f32.xlu2 %v779_v28  ;;  %v1431_v18 = vpop.permute.xlu0 %1430  ;;  %v4742_v19 = vpop.f32.mrf.mxu3 }
 0x18c   : > { %2106 = vmatpush.bf16.xpose.msra.mxu2 %v2088_v12  ;;  %v782_v7 = vsel %vm772_vm2, %v4742_v19, -inf  ;;  %v4773_v2 = vpop.permute.xlu2 %2132 }
 0x18d   : > { %783 = vmax.xlane.f32.xlu0 %v782_v7 }
 0x192   : > { %v1443_v23 = vpop.permute.xlu1 %1442 }
 0x193   : > { %v1466_v26 = vsel %vm6969_vm1, %v1443_v23, 0  ;;  %v4751_v27 = vpop.permute.xlu0 %2830  ;;  %3993 = vmatmul.msk.bf16.gmra.mxu2 %vm6969_vm1, %v4657_v33  ;;  %v4755_v31 = vpop.f32.mrf.mxu3 }
 0x194   : > { %2803 = vmatpush.bf16.xpose.msrb.mxu2 %v2797_v13  ;;  %1472 = vmatpush.bf16.xpose.msrb.mxu3 %v1466_v26  ;;  %v785_v34 = vsel %vm772_vm2, %v4755_v31, -inf  ;;  %v2841_v54 = vpop.permute.xlu2 %2840  ;;  %v2157_v13 = vsel %vm6969_vm1, %v4703_v57, 0 }
 0x195   : > { %786 = vmax.xlane.f32.xlu1 %v785_v34  ;;  %v2860_v34 = vsel %vm6969_vm1, %v4748_v22, 0 }
 0x19a   : > { %v2143_v47 = vpop.permute.xlu1 %2142 }
 0x19b   : > { %v1441_v62 = vpop.permute.xlu0 %1440  ;;  %v4761_v39 = vpop.f32.mrf.mxu3  ;;  %v2166_v51 = vsel %vm6969_vm1, %v2143_v47, 0 }
 0x19c   : > { %2804 = vmatpush.bf16.xpose.msrb.mxu2 %v2794_v58  ;;  %v1463_v40 = vsel %vm6969_vm1, %v1441_v62, 0  ;;  %v788_v33 = vsel %vm772_vm2, %v4761_v39, -inf  ;;  %v1435_v20 = vpop.permute.xlu2 %1434 }
 0x19d   : > { %1473 = vmatpush.bf16.xpose.msrb.mxu3 %v1463_v40  ;;  %789 = vmax.xlane.f32.xlu0 %v788_v33 }
 0x1a2   : > { %v4809_v7 = vpop.permute.xlu1 %2134 }
 0x1a3   : > { %3994 = vmatmul.msk.bf16.gmra.mxu2 %vm6969_vm1, %v4667_v37  ;;  %v4770_v29 = vpop.f32.mrf.mxu3  ;;  %v2141_v55 = vpop.permute.xlu0 %2140 }
 0x1a4   : > { %2805 = vmatpush.bf16.xpose.msrb.mxu2 %v2791_v35  ;;  %v791_v46 = vsel %vm772_vm2, %v4770_v29, -inf  ;;  %v2163_v50 = vsel %vm6969_vm1, %v2141_v55, 0  ;;  %v2843_v12 = vpop.permute.xlu2 %2842  ;;  %v2857_v35 = vsel %vm6969_vm1, %v4717_v6, 0 }
 0x1a5   : > { %1474 = vmatpush.bf16.xpose.msrb.mxu3 %v1460_v61  ;;  %792 = vmax.xlane.f32.xlu1 %v791_v46  ;;  %v2866_v11 = vsel %vm6969_vm1, %v2843_v12, 0 }
 0x1aa   : > { %v4823_v23 = vpop.permute.xlu1 %2452 }
 0x1ab   : > { %v4777_v49 = vpop.f32.mrf.mxu3 }
 0x1ac   : > { %2806 = vmatpush.bf16.xpose.msrb.mxu2 %v2788_v44  ;;  %v794_v37 = vsel %vm772_vm2, %v4777_v49, -inf  ;;  %v4841_v40 = vpop.permute.xlu2 %2834 }
 0x1ad   : > { %1475 = vmatpush.bf16.xpose.msrb.mxu3 %v1457_v41  ;;  %795 = vmax.xlane.f32.xlu0 %v794_v37 }
 0x1b3   : > { %4007 = vmatmul.msk.bf16.vlgmr.msra.gmra.mxu2 %vm6969_vm1, %v4582_v30 }
 0x1b4   : > { %v4786_v59 = vpop.f32.mrf.mxu3  ;;  %3995 = vmatmul.msk.bf16.vlgmr.msrb.gmra.mxu3 %vm6969_vm1, %v4715_v4  ;;  %v4855_v61 = vpop.permute.xlu2 %2454 }
 0x1b5   : > { %2172 = vmatpush.bf16.xpose.msra.mxu3 %v2166_v51  ;;  %v797_v3 = vsel %vm772_vm2, %v4786_v59, -inf }
 0x1b6   : > { %798 = vmax.xlane.f32.xlu2 %v797_v3 }
 0x1bc   : > { %v4793_v10 = vpop.f32.mrf.mxu3  ;;  %v4862_v41 = vpop.permute.xlu2 %2450 }
 0x1bd   : > { %2173 = vmatpush.bf16.xpose.msra.mxu3 %v2163_v50  ;;  %v800_v30 = vsel %vm772_vm2, %v4793_v10, -inf }
 0x1be   : > { %801 = vmax.xlane.f32.xlu0 %v800_v30 }
 0x1c3   : > { %4008 = vmatmul.msk.bf16.gmra.mxu2 %vm6969_vm1, %v4655_v24  ;;  %v4813_v24 = vpop.permute.xlu0 %2832 }
 0x1c4   : > { %v4801_v4 = vpop.f32.mrf.mxu3  ;;  %3996 = vmatmul.msk.bf16.gmra.mxu3 %vm6969_vm1, %v1431_v18  ;;  %v2863_v18 = vsel %vm6969_vm1, %v2841_v54, 0 }
 0x1c5   : > { %2174 = vmatpush.bf16.xpose.msra.mxu3 %v2160_v1  ;;  %v803_v28 = vsel %vm772_vm2, %v4801_v4, -inf }
 0x1c6   : > { %804 = vmax.xlane.f32.xlu0 %v803_v28 }
 0x1cc   : > { %v4811_v58 = vpop.f32.mrf.mxu3 }
 0x1cd   : > { %2175 = vmatpush.bf16.xpose.msra.mxu3 %v2157_v13 }
 0x1ce   : > { %3152 = vrot.lane.b32.xlu2 %v4508_v36, %s4359_s18  ;;  %v4829_v36 = vpop.permute.xlu0 %3081 }
 0x1d3   : > { %4009 = vmatmul.msk.bf16.gmra.mxu2 %vm6969_vm1, %v4665_v52 }
 0x1d4   : > { %v4820_v57 = vpop.f32.mrf.mxu3  ;;  %3997 = vmatmul.msk.bf16.gmra.mxu3 %vm6969_vm1, %v1433_v42  ;;  %v4837_v42 = vpop.permute.xlu1 %3077 }
 0x1d5   : > { %2872 = vmatpush.bf16.xpose.msrb.mxu3 %v2866_v11  ;;  %v809_v26 = vsel %vm772_vm2, %v4820_v57, -inf }
 0x1d6   : > { %810 = vmax.xlane.f32.xlu1 %v809_v26  ;;  %v4839_v62 = vpop.permute.xlu0 %3079 }
 0x1da   : > { %3154 = vrot.lane.b32.xlu0 %v4524_v63, %s4359_s18 }
 0x1dc   : > { %v4833_v52 = vpop.f32.mrf.mxu3  ;;  %v4852_v6 = vpop.permute.xlu1 %3156 }
 0x1dd   : > { %2873 = vmatpush.bf16.xpose.msrb.mxu3 %v2863_v18  ;;  %v812_v3 = vsel %vm772_vm2, %v4833_v52, -inf }
 0x1e2   : > { %3150 = vrot.lane.b32.xlu0 %v4466_v43, %s4359_s18 }
 0x1e3   : > { %4010 = vmatmul.msk.bf16.gmra.mxu2 %vm6969_vm1, %v4684_v45 }
 0x1e4   : > { %v4847_v22 = vpop.f32.mrf.mxu3  ;;  %3998 = vmatmul.msk.bf16.gmra.mxu3 %vm6969_vm1, %v1435_v20 }
 0x1e5   : > { %2874 = vmatpush.bf16.xpose.msrb.mxu3 %v2860_v34  ;;  %v815_v63 = vsel %vm772_vm2, %v4847_v22, -inf }
 0x1e6   : > { %816 = vmax.xlane.f32.xlu1 %v815_v63 }
 0x1e8   : > { %v775_v33 = vpop.xlane.xlu0 %774 }
 0x1e9   : > { %v821_v44 = vsub.f32 %v4709_v0, %v775_v33  ;;  %v806_v0 = vsel %vm772_vm2, %v4811_v58, -inf }
 0x1eb   : > { %v837_v46 = vmul.f32 1.442695, %v821_v44 }
 0x1ec   : > { %v4887_v18 = vpop.f32.mrf.mxu3 }
 0x1ed   : > { %2875 = vmatpush.bf16.xpose.msrb.mxu3 %v2857_v35  ;;  %4092 = vpow2.f32 %v837_v46 }
 0x1f0   : > { %v778_v43 = vpop.xlane.xlu1 %777 }
 0x1f1   : > { %v822_v45 = vsub.f32 %v4719_v8, %v778_v43 }
 0x1f3   : > { %4023 = vmatmul.msk.bf16.vlgmr.msrb.gmra.mxu2 %vm6969_vm1, %v4608_v21  ;;  %v839_v47 = vmul.f32 1.442695, %v822_v45  ;;  %v4870_v8 = vpop.eup %4092 }
 0x1f4   : > { %4011 = vmatmul.msk.bf16.vlgmr.msra.gmra.mxu3 %vm6969_vm1, %v4723_v9  ;;  %v917_v21 = vpack.c.bf16 %v4870_v8, %v4870_v8 }
 0x1f5   : > { %4094 = vpow2.f32 %v839_v47 }
 0x1f6   : > { %v4864_v51 = vpop.f32.mrf.mxu2  ;;  %v941_v1 = vunpack.c.l.b16 %v917_v21 }
 0x1f7   : > { %807 = vmax.xlane.f32.xlu2 %v806_v0  ;;  %v1497_v37 = vsel %vm772_vm2, %v4864_v51, -inf }
 0x1f8   : > { %1498 = vmax.xlane.f32.xlu1 %v1497_v37 }
 0x1fb   : > { %v4874_v54 = vpop.eup %4094 }
 0x1fc   : > { %v918_v9 = vpack.c.bf16 %v4874_v54, %v4874_v54 }
 0x1fe   : > { %v781_v55 = vpop.xlane.xlu2 %780  ;;  %v4878_v50 = vpop.f32.mrf.mxu2  ;;  %v942_v30 = vunpack.c.l.b16 %v918_v9 }
 0x1ff   : > { %v823_v20 = vsub.f32 %v4731_v5, %v781_v55  ;;  %813 = vmax.xlane.f32.xlu2 %v812_v3 }
 0x200   : > { %v784_v13 = vpop.xlane.xlu0 %783  ;;  %v949_v28 = vpack.c.b16 %v942_v30, %v941_v1 }
 0x201   : > { %v841_v12 = vmul.f32 1.442695, %v823_v20  ;;  %v824_v11 = vsub.f32 %v4742_v19, %v784_v13  ;;  %v818_v19 = vsel %vm772_vm2, %v4887_v18, -inf }
 0x202   : > { %3983 = vmatmul.msk.bf16.vlgmr.msrb.gmra.mxu0 %vm772_vm2, %v949_v28 }
 0x203   : > { %4096 = vpow2.f32 %v841_v12  ;;  %4024 = vmatmul.msk.bf16.gmra.mxu2 %vm6969_vm1, %v4630_v15  ;;  %v843_v26 = vmul.f32 1.442695, %v824_v11  ;;  %2405 = vmatpush.bf16.msrb.mxu0 %v4696_v53 }
 0x204   : > { %4012 = vmatmul.msk.bf16.gmra.mxu3 %vm6969_vm1, %v4740_v17 }
 0x205   : > { %4098 = vpow2.f32 %v843_v26 }
 0x206   : > { %v4892_v5 = vpop.f32.mrf.mxu2 }
 0x207   : > { %819 = vmax.xlane.f32.xlu2 %v818_v19  ;;  %v1503_v34 = vsel %vm772_vm2, %v4892_v5, -inf  ;;  %2406 = vmatpush.bf16.msrb.mxu0 %v4675_v38  ;;  %v1500_v38 = vsel %vm772_vm2, %v4878_v50, -inf }
 0x208   : > { %1504 = vmax.xlane.f32.xlu1 %v1503_v34  ;;  %v787_v35 = vpop.xlane.xlu1 %786 }
 0x209   : > { %v4899_v15 = vpop.eup %4096  ;;  %v825_v53 = vsub.f32 %v4755_v31, %v787_v35 }
 0x20a   : > { %v919_v17 = vpack.c.bf16 %v4899_v15, %v4899_v15 }
 0x20b   : > { %v4904_v63 = vpop.eup %4098  ;;  %2407 = vmatpush.bf16.msrb.mxu0 %v4640_v25  ;;  %v845_v44 = vmul.f32 1.442695, %v825_v53 }
 0x20c   : > { %v920_v33 = vpack.c.bf16 %v4904_v63, %v4904_v63  ;;  %v943_v43 = vunpack.c.l.b16 %v919_v17 }
 0x20d   : > { %4100 = vpow2.f32 %v845_v44 }
 0x20e   : > { %v4909_v46 = vpop.f32.mrf.mxu2  ;;  %v944_v45 = vunpack.c.l.b16 %v920_v33 }
 0x20f   : > { %1501 = vmax.xlane.f32.xlu2 %v1500_v38  ;;  %2408 = vmatpush.bf16.msrb.mxu0 %v4628_v14  ;;  %v1506_v14 = vsel %vm772_vm2, %v4909_v46, -inf }
 0x210   : > { %v790_v31 = vpop.xlane.xlu0 %789  ;;  %v950_v47 = vpack.c.b16 %v944_v45, %v943_v43 }
 0x211   : > { %v826_v0 = vsub.f32 %v4761_v39, %v790_v31 }
 0x212   : > { %3984 = vmatmul.msk.bf16.gmra.mxu0 %vm772_vm2, %v950_v47 }
 0x213   : > { %4025 = vmatmul.msk.bf16.gmra.mxu2 %vm6969_vm1, %v4649_v32  ;;  %v847_v25 = vmul.f32 1.442695, %v826_v0  ;;  %v4926_v39 = vpop.eup %4100 }
 0x214   : > { %4013 = vmatmul.msk.bf16.gmra.mxu3 %vm6969_vm1, %v4773_v2  ;;  %6970 = vst [vmem:[#allocation2_spill] sm:$0xff] %v4926_v39  ;;  %v921_v55 = vpack.c.bf16 %v4926_v39, %v4926_v39 }
 0x215   : > { %4102 = vpow2.f32 %v847_v25 }
 0x216   : > { %v4920_v37 = vpop.f32.mrf.mxu2  ;;  %v945_v12 = vunpack.c.l.b16 %v921_v55 }
 0x217   : > { %1507 = vmax.xlane.f32.xlu2 %v1506_v14  ;;  %v1509_v21 = vsel %vm772_vm2, %v4920_v37, -inf }
 0x218   : > { %1510 = vmax.xlane.f32.xlu1 %v1509_v21  ;;  %v793_v9 = vpop.xlane.xlu1 %792 }
 0x219   : > { %v827_v32 = vsub.f32 %v4770_v29, %v793_v9 }
 0x21b   : > { %v4931_v2 = vpop.eup %4102  ;;  %v849_v20 = vmul.f32 1.442695, %v827_v32 }
 0x21c   : > { %6971 = vst [vmem:[#allocation3_spill] sm:$0xff] %v4931_v2  ;;  %v922_v3 = vpack.c.bf16 %v4931_v2, %v4931_v2 }
 0x21d   : > { %4104 = vpow2.f32 %v849_v20 }
 0x21e   : > { %v4935_v1 = vpop.f32.mrf.mxu2  ;;  %v946_v13 = vunpack.c.l.b16 %v922_v3 }
 0x21f   : > { %v1512_v30 = vsel %vm772_vm2, %v4935_v1, -inf }
 0x220   : > { %1513 = vmax.xlane.f32.xlu2 %v1512_v30  ;;  %v796_v28 = vpop.xlane.xlu0 %795  ;;  %v951_v11 = vpack.c.b16 %v946_v13, %v945_v12 }
 0x221   : > { %v828_v29 = vsub.f32 %v4777_v49, %v796_v28 }
 0x222   : > { %3985 = vmatmul.msk.bf16.gmra.mxu0 %vm772_vm2, %v951_v11 }
 0x223   : > { %4026 = vmatmul.msk.bf16.gmra.mxu2 %vm6969_vm1, %v4690_v48  ;;  %v851_v26 = vmul.f32 1.442695, %v828_v29  ;;  %v4949_v35 = vpop.eup %4104 }
 0x224   : > { %4014 = vmatmul.msk.bf16.gmra.mxu3 %vm6969_vm1, %v4809_v7  ;;  %6972 = vst [vmem:[#allocation4_spill] sm:$0xff] %v4949_v35  ;;  %v923_v17 = vpack.c.bf16 %v4949_v35, %v4949_v35 }
 0x225   : > { %4106 = vpow2.f32 %v851_v26 }
 0x226   : > { %v4945_v19 = vpop.f32.mrf.mxu2  ;;  %v947_v43 = vunpack.c.l.b16 %v923_v17 }
 0x227   : > { %v1515_v34 = vsel %vm772_vm2, %v4945_v19, -inf }
 0x228   : > { %1516 = vmax.xlane.f32.xlu0 %v1515_v34 }
 0x229   : > { %v799_v53 = vpop.xlane.xlu2 %798 }
 0x22a   : > { %v829_v49 = vsub.f32 %v4786_v59, %v799_v53 }
 0x22b   : > { %v4954_v48 = vpop.eup %4106 }
 0x22c   : > { %6973 = vst [vmem:[#allocation5_spill] sm:$0xff] %v4954_v48  ;;  %v924_v7 = vpack.c.bf16 %v4954_v48, %v4954_v48  ;;  %v853_v33 = vmul.f32 1.442695, %v829_v49 }
 0x22e   : > { %v4958_v44 = vpop.f32.mrf.mxu2  ;;  %v948_v45 = vunpack.c.l.b16 %v924_v7  ;;  %4108 = vpow2.f32 %v853_v33 }
 0x22f   : > { %v1518_v38 = vsel %vm772_vm2, %v4958_v44, -inf }
 0x230   : > { %1519 = vmax.xlane.f32.xlu1 %v1518_v38  ;;  %v952_v47 = vpack.c.b16 %v948_v45, %v947_v43 }
 0x231   : > { %v802_v31 = vpop.xlane.xlu0 %801 }
 0x232   : > { %v830_v59 = vsub.f32 %v4793_v10, %v802_v31  ;;  %3986 = vmatmul.msk.bf16.gmra.mxu0 %vm772_vm2, %v952_v47  ;;  %v5031_v31 = vpop.permute.xlu2 %3152 }
 0x234   : > { %v855_v0 = vmul.f32 1.442695, %v830_v59  ;;  %4027 = vmatmul.msk.bf16.vlgmr.msrb.gmra.mxu3 %vm6969_vm1, %v4736_v16  ;;  %v4970_v21 = vpop.eup %4108 }
 0x235   : > { %6974 = vst [vmem:[#allocation6_spill] sm:$0xff] %v4970_v21  ;;  %v925_v10 = vpack.c.bf16 %v4970_v21, %v4970_v21 }
 0x236   : > { %4110 = vpow2.f32 %v855_v0  ;;  %v4966_v25 = vpop.f32.mrf.mxu2 }
 0x237   : > { %v4968_v14 = vpop.f32.mrf.mxu3  ;;  %v1026_v12 = vunpack.c.l.b16 %v925_v10  ;;  %v2197_v13 = vsel %vm772_vm2, %v4966_v25, -inf }
 0x238   : > { %v1521_v9 = vsel %vm772_vm2, %v4968_v14, -inf }
 0x239   : > { %1522 = vmax.xlane.f32.xlu1 %v1521_v9 }
 0x23c   : > { %v4976_v32 = vpop.eup %4110 }
 0x23d   : > { %6975 = vst [vmem:[#allocation7_spill] sm:$0xff] %v4976_v32  ;;  %v926_v55 = vpack.c.bf16 %v4976_v32, %v4976_v32 }
 0x23e   : > { %v4980_v16 = vpop.f32.mrf.mxu2 }
 0x23f   : > { %v1027_v3 = vunpack.c.l.b16 %v926_v55  ;;  %v4982_v20 = vpop.f32.mrf.mxu3  ;;  %v2200_v30 = vsel %vm772_vm2, %v4980_v16, -inf }
 0x240   : > { %2201 = vmax.xlane.f32.xlu2 %v2200_v30  ;;  %v1524_v34 = vsel %vm772_vm2, %v4982_v20, -inf }
 0x241   : > { %2198 = vmax.xlane.f32.xlu1 %v2197_v13  ;;  %v1034_v28 = vpack.c.b16 %v1027_v3, %v1026_v12 }
 0x243   : > { %3987 = vmatmul.msk.bf16.vlgmr.msrb.gmra.mxu1 %vm772_vm2, %v1034_v28 }
 0x244   : > { %2478 = vmatpush.bf16.msrb.mxu1 %v4701_v56  ;;  %4028 = vmatmul.msk.bf16.gmra.mxu3 %vm6969_vm1, %v4751_v27 }
 0x246   : > { %v4992_v11 = vpop.f32.mrf.mxu2 }
 0x247   : > { %v4994_v29 = vpop.f32.mrf.mxu3  ;;  %v2203_v26 = vsel %vm772_vm2, %v4992_v11, -inf }
 0x248   : > { %2479 = vmatpush.bf16.msrb.mxu1 %v4855_v61  ;;  %v1527_v53 = vsel %vm772_vm2, %v4994_v29, -inf  ;;  %2204 = vmax.xlane.f32.xlu2 %v2203_v26 }
 0x249   : > { %1525 = vmax.xlane.f32.xlu1 %v1524_v34  ;;  %1528 = vmax.xlane.f32.xlu0 %v1527_v53  ;;  %v811_v55 = vpop.xlane.xlu1 %810 }
 0x24c   : > { %2480 = vmatpush.bf16.msrb.mxu1 %v4823_v23 }
 0x24e   : > { %v5004_v56 = vpop.f32.mrf.mxu2 }
 0x24f   : > { %v5006_v27 = vpop.f32.mrf.mxu3  ;;  %v2206_v49 = vsel %vm772_vm2, %v5004_v56, -inf }
 0x250   : > { %2481 = vmatpush.bf16.msrb.mxu1 %v4862_v41  ;;  %v1530_v61 = vsel %vm772_vm2, %v5006_v27, -inf }
 0x251   : > { %2207 = vmax.xlane.f32.xlu0 %v2206_v49  ;;  %1531 = vmax.xlane.f32.xlu1 %v1530_v61 }
 0x254   : > { %4029 = vmatmul.msk.bf16.gmra.mxu3 %vm6969_vm1, %v4813_v24  ;;  %v805_v24 = vpop.xlane.xlu0 %804 }
 0x255   : > { %v831_v47 = vsub.f32 %v4801_v4, %v805_v24 }
 0x256   : > { %v5015_v17 = vpop.f32.mrf.mxu2 }
 0x257   : > { %v5017_v23 = vpop.f32.mrf.mxu3  ;;  %v2209_v7 = vsel %vm772_vm2, %v5015_v17, -inf  ;;  %v857_v0 = vmul.f32 1.442695, %v831_v47 }
 0x258   : > { %v1533_v33 = vsel %vm772_vm2, %v5017_v23, -inf  ;;  %2210 = vmax.xlane.f32.xlu2 %v2209_v7 }
 0x259   : > { %1534 = vmax.xlane.f32.xlu1 %v1533_v33  ;;  %4112 = vpow2.f32 %v857_v0  ;;  %v817_v26 = vpop.xlane.xlu1 %816 }
 0x25e   : > { %v5023_v41 = vpop.f32.mrf.mxu2 }
 0x25f   : > { %v5025_v38 = vpop.f32.mrf.mxu3  ;;  %v2212_v43 = vsel %vm772_vm2, %v5023_v41, -inf  ;;  %v5053_v53 = vpop.eup %4112 }
 0x260   : > { %v1536_v45 = vsel %vm772_vm2, %v5025_v38, -inf  ;;  %6976 = vst [vmem:[#allocation8_spill] sm:$0xff] %v5053_v53  ;;  %v927_v7 = vpack.c.bf16 %v5053_v53, %v5053_v53 }
 0x261   : > { %2213 = vmax.xlane.f32.xlu1 %v2212_v43  ;;  %1537 = vmax.xlane.f32.xlu0 %v1536_v45 }
 0x264   : > { %4030 = vmatmul.msk.bf16.gmra.mxu3 %vm6969_vm1, %v4841_v40 }
 0x266   : > { %v5036_v59 = vpop.f32.mrf.mxu2 }
 0x267   : > { %v5038_v9 = vpop.f32.mrf.mxu3  ;;  %v2215_v10 = vsel %vm772_vm2, %v5036_v59, -inf }
 0x268   : > { %v1539_v3 = vsel %vm772_vm2, %v5038_v9, -inf }
 0x269   : > { %2216 = vmax.xlane.f32.xlu1 %v2215_v10  ;;  %1540 = vmax.xlane.f32.xlu0 %v1539_v3 }
 0x26a   : > { %v808_v30 = vpop.xlane.xlu2 %807 }
 0x26b   : > { %v832_v4 = vsub.f32 %v4811_v58, %v808_v30  ;;  %v833_v58 = vsub.f32 %v4820_v57, %v811_v55  ;;  %v1499_v57 = vpop.xlane.xlu1 %1498  ;;  %v1028_v55 = vunpack.c.l.b16 %v927_v7 }
 0x26d   : > { %v859_v12 = vmul.f32 1.442695, %v832_v4  ;;  %v861_v47 = vmul.f32 1.442695, %v833_v58 }
 0x26e   : > { %v5045_v40 = vpop.f32.mrf.mxu2 }
 0x26f   : > { %4114 = vpow2.f32 %v859_v12  ;;  %v5047_v13 = vpop.f32.mrf.mxu3  ;;  %v2218_v28 = vsel %vm772_vm2, %v5045_v40, -inf  ;;  %v1545_v12 = vsub.f32 %v4864_v51, %v1499_v57 }
 0x270   : > { %v1542_v34 = vsel %vm772_vm2, %v5047_v13, -inf }
 0x271   : > { %2219 = vmax.xlane.f32.xlu0 %v2218_v28  ;;  %1543 = vmax.xlane.f32.xlu2 %v1542_v34 }
 0x272   : > { %v814_v49 = vpop.xlane.xlu2 %813 }
 0x273   : > { %v834_v61 = vsub.f32 %v4833_v52, %v814_v49  ;;  %v1561_v49 = vmul.f32 1.442695, %v1545_v12 }
 0x275   : > { %v5059_v33 = vpop.eup %4114  ;;  %v863_v43 = vmul.f32 1.442695, %v834_v61 }
 0x276   : > { %6977 = vst [vmem:[#allocation9_spill] sm:$0xff] %v5059_v33  ;;  %v5061_v24 = vpop.f32.mrf.mxu2  ;;  %v928_v45 = vpack.c.bf16 %v5059_v33, %v5059_v33 }
 0x277   : > { %v5065_v0 = vpop.f32.mrf.mxu3  ;;  %v2897_v10 = vsel %vm772_vm2, %v5061_v24, -inf  ;;  %4116 = vpow2.f32 %v863_v43 }
 0x278   : > { %v2221_v52 = vsel %vm772_vm2, %v5065_v0, -inf  ;;  %v1029_v3 = vunpack.c.l.b16 %v928_v45  ;;  %4118 = vpow2.f32 %v861_v47 }
 0x279   : > { %2898 = vmax.xlane.f32.xlu0 %v2897_v10  ;;  %2222 = vmax.xlane.f32.xlu2 %v2221_v52  ;;  %v835_v10 = vsub.f32 %v4847_v22, %v817_v26  ;;  %4120 = vpow2.f32 %v1561_v49 }
 0x27a   : > { %v820_v30 = vpop.xlane.xlu2 %819  ;;  %v1035_v4 = vpack.c.b16 %v1029_v3, %v1028_v55 }
 0x27b   : > { %v836_v45 = vsub.f32 %v4887_v18, %v820_v30  ;;  %v865_v18 = vmul.f32 1.442695, %v835_v10 }
 0x27c   : > { %3988 = vmatmul.msk.bf16.gmra.mxu1 %vm772_vm2, %v1035_v4 }
 0x27d   : > { %v5075_v34 = vpop.eup %4116  ;;  %v867_v55 = vmul.f32 1.442695, %v836_v45 }
 0x27e   : > { %v5073_v28 = vpop.f32.mrf.mxu2  ;;  %6978 = vst [vmem:[#allocation10_spill] sm:$0xff] %v5075_v34  ;;  %v5083_v43 = vpop.eup %4118  ;;  %v930_v47 = vpack.c.bf16 %v5075_v34, %v5075_v34 }
 0x27f   : > { %v5077_v58 = vpop.f32.mrf.mxu3  ;;  %v2900_v61 = vsel %vm772_vm2, %v5073_v28, -inf  ;;  %6979 = vst [vmem:[#allocation11_spill] sm:$0xff] %v5083_v43  ;;  %v929_v52 = vpack.c.bf16 %v5083_v43, %v5083_v43  ;;  %v5100_v26 = vpop.eup %4120 }
 0x280   : > { %v2224_v7 = vsel %vm772_vm2, %v5077_v58, -inf  ;;  %v1031_v12 = vunpack.c.l.b16 %v930_v47  ;;  %v1641_v10 = vpack.c.bf16 %v5100_v26, %v5100_v26 }
 0x281   : > { %2225 = vmax.xlane.f32.xlu1 %v2224_v7  ;;  %2901 = vmax.xlane.f32.xlu2 %v2900_v61  ;;  %v1505_v7 = vpop.xlane.xlu1 %1504 }
 0x282   : > { %v1502_v51 = vpop.xlane.xlu2 %1501 }
 0x283   : > { %v1546_v57 = vsub.f32 %v4878_v50, %v1502_v51  ;;  %v1030_v50 = vunpack.c.l.b16 %v929_v52  ;;  %v1547_v51 = vsub.f32 %v4892_v5, %v1505_v7 }
 0x285   : > { %v1563_v3 = vmul.f32 1.442695, %v1546_v57  ;;  %v1036_v45 = vpack.c.b16 %v1031_v12, %v1030_v50  ;;  %v1565_v12 = vmul.f32 1.442695, %v1547_v51 }
 0x286   : > { %v5092_v4 = vpop.f32.mrf.mxu2 }
 0x287   : > { %4122 = vpow2.f32 %v1563_v3  ;;  %v5094_v30 = vpop.f32.mrf.mxu3  ;;  %v2903_v61 = vsel %vm772_vm2, %v5092_v4, -inf }
 0x288   : > { %v2227_v22 = vsel %vm772_vm2, %v5094_v30, -inf  ;;  %4124 = vpow2.f32 %v867_v55 }
 0x289   : > { %2904 = vmax.xlane.f32.xlu1 %v2903_v61  ;;  %2228 = vmax.xlane.f32.xlu0 %v2227_v22  ;;  %4126 = vpow2.f32 %v865_v18 }
 0x28a   : > { %v1508_v49 = vpop.xlane.xlu2 %1507 }
 0x28b   : > { %v1548_v47 = vsub.f32 %v4909_v46, %v1508_v49  ;;  %v1665_v46 = vunpack.c.l.b16 %v1641_v10 }
 0x28c   : > { %3989 = vmatmul.msk.bf16.gmra.mxu1 %vm772_vm2, %v1036_v45 }
 0x28d   : > { %v5107_v57 = vpop.eup %4122  ;;  %v1567_v52 = vmul.f32 1.442695, %v1548_v47  ;;  %v5128_v47 = vpop.permute.xlu0 %3154 }
 0x28e   : > { %v1642_v55 = vpack.c.bf16 %v5107_v57, %v5107_v57  ;;  %v5111_v3 = vpop.f32.mrf.mxu2  ;;  %v5113_v61 = vpop.eup %4124 }
 0x28f   : > { %6980 = vst [vmem:[#allocation12_spill] sm:$0xff] %v5113_v61  ;;  %v5115_v18 = vpop.f32.mrf.mxu3  ;;  %v2906_v5 = vsel %vm772_vm2, %v5111_v3, -inf  ;;  %v5121_v50 = vpop.eup %4126  ;;  %4128 = vpow2.f32 %v1567_v52  ;;  %v932_v45 = vpack.c.bf16 %v5113_v61, %v5113_v61 }
 0x290   : > { %v1666_v7 = vunpack.c.l.b16 %v1642_v55  ;;  %v2230_v22 = vsel %vm772_vm2, %v5115_v18, -inf  ;;  %6981 = vst [vmem:[#allocation13_spill] sm:$0xff] %v5121_v50  ;;  %4130 = vpow2.f32 %v1565_v12  ;;  %v931_v51 = vpack.c.bf16 %v5121_v50, %v5121_v50 }
 0x291   : > { %2907 = vmax.xlane.f32.xlu0 %v2906_v5  ;;  %2231 = vmax.xlane.f32.xlu2 %v2230_v22  ;;  %v1033_v52 = vunpack.c.l.b16 %v932_v45 }
 0x292   : > { %v1673_v49 = vpack.c.b16 %v1666_v7, %v1665_v46  ;;  %v1511_v7 = vpop.xlane.xlu1 %1510 }
 0x293   : > { %v1514_v10 = vpop.xlane.xlu2 %1513  ;;  %v1549_v43 = vsub.f32 %v4920_v37, %v1511_v7 }
 0x294   : > { %3999 = vmatmul.msk.bf16.vlgmr.msra.gmra.mxu0 %vm772_vm2, %v1673_v49  ;;  %v1032_v49 = vunpack.c.l.b16 %v931_v51 }
 0x295   : > { %3105 = vmatpush.bf16.msra.mxu0 %v4705_v60  ;;  %v5133_v5 = vpop.eup %4128  ;;  %v1550_v60 = vsub.f32 %v4935_v1, %v1514_v10 }
 0x296   : > { %v5131_v55 = vpop.f32.mrf.mxu2  ;;  %v5141_v61 = vpop.eup %4130  ;;  %v1644_v45 = vpack.c.bf16 %v5133_v5, %v5133_v5  ;;  %v1037_v50 = vpack.c.b16 %v1033_v52, %v1032_v49 }
 0x297   : > { %v5135_v46 = vpop.f32.mrf.mxu3  ;;  %v2909_v12 = vsel %vm772_vm2, %v5131_v55, -inf  ;;  %v1643_v33 = vpack.c.bf16 %v5141_v61, %v5141_v61  ;;  %v1571_v51 = vmul.f32 1.442695, %v1550_v60  ;;  %v5158_v52 = vpop.permute.xlu0 %3150 }
 0x298   : > { %v2233_v22 = vsel %vm772_vm2, %v5135_v46, -inf  ;;  %v1668_v34 = vunpack.c.l.b16 %v1644_v45 }
 0x299   : > { %3106 = vmatpush.bf16.msra.mxu0 %v4829_v36  ;;  %2910 = vmax.xlane.f32.xlu0 %v2909_v12  ;;  %v1569_v36 = vmul.f32 1.442695, %v1549_v43  ;;  %v1667_v37 = vunpack.c.l.b16 %v1643_v33  ;;  %4132 = vpow2.f32 %v1571_v51 }
 0x29a   : > { %2234 = vmax.xlane.f32.xlu2 %v2233_v22 }
 0x29b   : > { %4134 = vpow2.f32 %v1569_v36 }
 0x29c   : > { %3990 = vmatmul.msk.bf16.gmra.mxu1 %vm772_vm2, %v1037_v50 }
 0x29d   : > { %3107 = vmatpush.bf16.msra.mxu0 %v4839_v62  ;;  %v1674_v62 = vpack.c.b16 %v1668_v34, %v1667_v37 }
 0x29e   : > { %v5152_v1 = vpop.f32.mrf.mxu2 }
 0x29f   : > { %v5154_v10 = vpop.f32.mrf.mxu3  ;;  %v2912_v12 = vsel %vm772_vm2, %v5152_v1, -inf  ;;  %v5166_v22 = vpop.eup %4132 }
 0x2a0   : > { %v2236_v7 = vsel %vm772_vm2, %v5154_v10, -inf  ;;  %v1517_v60 = vpop.xlane.xlu0 %1516  ;;  %v1646_v51 = vpack.c.bf16 %v5166_v22, %v5166_v22 }
 0x2a1   : > { %3108 = vmatpush.bf16.msra.mxu0 %v4837_v42  ;;  %2237 = vmax.xlane.f32.xlu1 %v2236_v7  ;;  %v5174_v45 = vpop.eup %4134  ;;  %v1551_v36 = vsub.f32 %v4945_v19, %v1517_v60 }
 0x2a2   : > { %2913 = vmax.xlane.f32.xlu2 %v2912_v12  ;;  %v1645_v12 = vpack.c.bf16 %v5174_v45, %v5174_v45 }
 0x2a3   : > { %v1520_v50 = vpop.xlane.xlu1 %1519  ;;  %v1573_v21 = vmul.f32 1.442695, %v1551_v36 }
 0x2a4   : > { %4000 = vmatmul.msk.bf16.gmra.mxu0 %vm772_vm2, %v1674_v62  ;;  %v1552_v34 = vsub.f32 %v4958_v44, %v1520_v50  ;;  %v1670_v62 = vunpack.c.l.b16 %v1646_v51  ;;  %v1669_v50 = vunpack.c.l.b16 %v1645_v12 }
 0x2a6   : > { %v5164_v43 = vpop.f32.mrf.mxu2  ;;  %v1575_v7 = vmul.f32 1.442695, %v1552_v34  ;;  %v1675_v19 = vpack.c.b16 %v1670_v62, %v1669_v50 }
 0x2a7   : > { %v5168_v49 = vpop.f32.mrf.mxu3  ;;  %v2915_v33 = vsel %vm772_vm2, %v5164_v43, -inf }
 0x2a8   : > { %v2239_v42 = vsel %vm772_vm2, %v5168_v49, -inf  ;;  %4136 = vpow2.f32 %v1575_v7 }
 0x2a9   : > { %2240 = vmax.xlane.f32.xlu1 %v2239_v42  ;;  %4138 = vpow2.f32 %v1573_v21 }
 0x2aa   : > { %2916 = vmax.xlane.f32.xlu2 %v2915_v33 }
 0x2ac   : > { %v1523_v37 = vpop.xlane.xlu1 %1522 }
 0x2ad   : > { %v1553_v42 = vsub.f32 %v4968_v14, %v1523_v37 }
 0x2ae   : > { %v5182_v53 = vpop.f32.mrf.mxu2  ;;  %v5193_v36 = vpop.eup %4136 }
 0x2af   : > { %6982 = vst [vmem:[#allocation14_spill] sm:$0xff] %v5182_v53  ;;  %v5184_v32 = vpop.f32.mrf.mxu3  ;;  %v2918_v44 = vsel %vm772_vm2, %v5182_v53, -inf  ;;  %v5200_v62 = vpop.eup %4138  ;;  %v1577_v21 = vmul.f32 1.442695, %v1553_v42  ;;  %v1648_v14 = vpack.c.bf16 %v5193_v36, %v5193_v36 }
 0x2b0   : > { %6983 = vst [vmem:[#allocation15_spill] sm:$0xff] %v5184_v32  ;;  %v2242_v33 = vsel %vm772_vm2, %v5184_v32, -inf }
 0x2b1   : > { %2919 = vmax.xlane.f32.xlu1 %v2918_v44  ;;  %2243 = vmax.xlane.f32.xlu0 %v2242_v33  ;;  %v1672_v33 = vunpack.c.l.b16 %v1648_v14 }
 0x2b3   : > { %v2202_v51 = vpop.xlane.xlu2 %2201 }
 0x2b4   : > { %v2199_v60 = vpop.xlane.xlu1 %2198  ;;  %4001 = vmatmul.msk.bf16.gmra.mxu0 %vm772_vm2, %v1675_v19  ;;  %v2246_v35 = vsub.f32 %v4980_v16, %v2202_v51 }
 0x2b5   : > { %v2245_v34 = vsub.f32 %v4966_v25, %v2199_v60  ;;  %v1647_v25 = vpack.c.bf16 %v5200_v62, %v5200_v62 }
 0x2b6   : > { %v2263_v37 = vmul.f32 1.442695, %v2246_v35 }
 0x2b7   : > { %v2261_v48 = vmul.f32 1.442695, %v2245_v34  ;;  %v5195_v12 = vpop.f32.mrf.mxu3  ;;  %v1671_v42 = vunpack.c.l.b16 %v1647_v25 }
 0x2b8   : > { %6984 = vst [vmem:[#allocation16_spill] sm:$0xff] %v5195_v12  ;;  %v2921_v7 = vsel %vm772_vm2, %v5195_v12, -inf }
 0x2b9   : > { %4140 = vpow2.f32 %v2261_v48  ;;  %2922 = vmax.xlane.f32.xlu0 %v2921_v7  ;;  %v1676_v35 = vpack.c.b16 %v1672_v33, %v1671_v42 }
 0x2ba   : > { %4142 = vpow2.f32 %v1577_v21  ;;  %v5214_v21 = vpop.f32.mrf.mxu0 }
 0x2bb   : > { %4144 = vpow2.f32 %v2263_v37  ;;  %6986 = vst [vmem:[#allocation18_spill] sm:$0xff] %v5214_v21 }
 0x2bc   : > { %v1526_v44 = vpop.xlane.xlu1 %1525  ;;  %v1529_v50 = vpop.xlane.xlu0 %1528 }
 0x2bd   : > { %v1554_v16 = vsub.f32 %v4982_v20, %v1526_v44  ;;  %v1555_v14 = vsub.f32 %v4994_v29, %v1529_v50 }
 0x2bf   : > { %v4141_v19 = vpop.eup %4140  ;;  %v1579_v60 = vmul.f32 1.442695, %v1554_v16  ;;  %v5207_v34 = vpop.f32.mrf.mxu3  ;;  %v1581_v29 = vmul.f32 1.442695, %v1555_v14 }
 0x2c0   : > { %6985 = vst [vmem:[#allocation17_spill] sm:$0xff] %v5207_v34  ;;  %v2293_v48 = vsel %vm772_vm2, %v4141_v19, 0.0  ;;  %v2924_v51 = vsel %vm772_vm2, %v5207_v34, -inf  ;;  %v5212_v7 = vpop.eup %4142 }
 0x2c1   : > { %4146 = vpow2.f32 %v1579_v60  ;;  %2294 = vadd.xlane.f32.xlu0 %v2293_v48  ;;  %2925 = vmax.xlane.f32.xlu2 %v2924_v51  ;;  %v4145_v37 = vpop.eup %4144  ;;  %v1649_v44 = vpack.c.bf16 %v5212_v7, %v5212_v7  ;;  %v2205_v51 = vpop.xlane.xlu2 %2204 }
 0x2c2   : > { %v2342_v21 = vpack.c.bf16 %v4145_v37, %v4145_v37  ;;  %v2247_v2 = vsub.f32 %v4992_v11, %v2205_v51  ;;  %v5231_v12 = vpop.f32.mrf.mxu0 }
 0x2c3   : > { %v1738_v50 = vunpack.c.l.b16 %v1649_v44 }
 0x2c4   : > { %v1532_v20 = vpop.xlane.xlu1 %1531  ;;  %4002 = vmatmul.msk.bf16.gmra.mxu0 %vm772_vm2, %v1676_v35  ;;  %v2208_v16 = vpop.xlane.xlu0 %2207  ;;  %v2366_v53 = vunpack.c.l.b16 %v2342_v21  ;;  %v2265_v14 = vmul.f32 1.442695, %v2247_v2 }
 0x2c5   : > { %v1556_v25 = vsub.f32 %v5006_v27, %v1532_v20  ;;  %v2248_v27 = vsub.f32 %v5004_v56, %v2208_v16  ;;  %v2341_v20 = vpack.c.bf16 %v4141_v19, %v4141_v19  ;;  %v1593_v19 = vsel %vm772_vm2, %v5100_v26, 0.0 }
 0x2c7   : > { %v5221_v60 = vpop.eup %4146  ;;  %v1583_v48 = vmul.f32 1.442695, %v1556_v25  ;;  %v5223_v33 = vpop.f32.mrf.mxu3  ;;  %v2365_v32 = vunpack.c.l.b16 %v2341_v20 }
 0x2c8   : > { %6987 = vst [vmem:[#allocation19_spill] sm:$0xff] %v5221_v60  ;;  %v1650_v42 = vpack.c.bf16 %v5221_v60, %v5221_v60  ;;  %v2927_v35 = vsel %vm772_vm2, %v5223_v33, -inf  ;;  %v2267_v60 = vmul.f32 1.442695, %v2248_v27 }
 0x2c9   : > { %2928 = vmax.xlane.f32.xlu1 %v2927_v35  ;;  %4148 = vpow2.f32 %v1583_v48  ;;  %v2373_v44 = vpack.c.b16 %v2366_v53, %v2365_v32 }
 0x2ca   : > { %v1739_v39 = vunpack.c.l.b16 %v1650_v42  ;;  %4150 = vpow2.f32 %v1581_v29  ;;  %v5255_v42 = vpop.f32.mrf.mxu0 }
 0x2cb   : > { %4152 = vpow2.f32 %v2267_v60  ;;  %v2211_v2 = vpop.xlane.xlu2 %2210 }
 0x2cc   : > { %v1746_v25 = vpack.c.b16 %v1739_v39, %v1738_v50  ;;  %v1535_v34 = vpop.xlane.xlu1 %1534  ;;  %4154 = vpow2.f32 %v2265_v14 }
 0x2cd   : > { %v1557_v26 = vsub.f32 %v5017_v23, %v1535_v34 }
 0x2ce   : > { %4003 = vmatmul.msk.bf16.vlgmr.msra.gmra.mxu1 %vm772_vm2, %v1746_v25 }
 0x2cf   : > { %3178 = vmatpush.bf16.msra.mxu1 %v4852_v6  ;;  %v5235_v56 = vpop.f32.mrf.mxu3  ;;  %v5241_v11 = vpop.eup %4148  ;;  %v1585_v27 = vmul.f32 1.442695, %v1557_v26 }
 0x2d0   : > { %v2930_v39 = vsel %vm772_vm2, %v5235_v56, -inf  ;;  %v5243_v21 = vpop.eup %4150  ;;  %v1652_v6 = vpack.c.bf16 %v5241_v11, %v5241_v11 }
 0x2d1   : > { %1594 = vadd.xlane.f32.xlu1 %v1593_v19  ;;  %2931 = vmax.xlane.f32.xlu2 %v2930_v39  ;;  %v1651_v60 = vpack.c.bf16 %v5243_v21, %v5243_v21  ;;  %v5253_v53 = vpop.eup %4152 }
 0x2d2   : > { %v1741_v29 = vunpack.c.l.b16 %v1652_v6  ;;  %v4155_v34 = vpop.eup %4154  ;;  %v1602_v6 = vsel %vm772_vm2, %v5133_v5, 0.0  ;;  %v5280_v26 = vpop.f32.mrf.mxu0 }
 0x2d3   : > { %3179 = vmatpush.bf16.msra.mxu1 %v5128_v47  ;;  %v2249_v47 = vsub.f32 %v5015_v17, %v2211_v2  ;;  %v2296_v17 = vsel %vm772_vm2, %v4145_v37, 0.0  ;;  %v1740_v20 = vunpack.c.l.b16 %v1651_v60  ;;  %v2343_v14 = vpack.c.bf16 %v4155_v34, %v4155_v34 }
 0x2d4   : > { %v1538_v16 = vpop.xlane.xlu0 %1537  ;;  %4015 = vmatmul.msk.bf16.vlgmr.msrb.gmra.mxu0 %vm772_vm2, %v2373_v44  ;;  %v2214_v32 = vpop.xlane.xlu1 %2213 }
 0x2d5   : > { %v1558_v48 = vsub.f32 %v5025_v38, %v1538_v16  ;;  %v1596_v38 = vsel %vm772_vm2, %v5107_v57, 0.0  ;;  %v2250_v50 = vsub.f32 %v5023_v41, %v2214_v32  ;;  %v2269_v25 = vmul.f32 1.442695, %v2249_v47 }
 0x2d6   : > { %v1747_v57 = vpack.c.b16 %v1741_v29, %v1740_v20  ;;  %v2367_v37 = vunpack.c.l.b16 %v2343_v14 }
 0x2d7   : > { %v1587_v51 = vmul.f32 1.442695, %v1558_v48  ;;  %3180 = vmatpush.bf16.msra.mxu1 %v5031_v31  ;;  %v5259_v35 = vpop.f32.mrf.mxu3  ;;  %v2344_v31 = vpack.c.bf16 %v5253_v53, %v5253_v53  ;;  %v2271_v39 = vmul.f32 1.442695, %v2250_v50 }
 0x2d8   : > { %v2933_v23 = vsel %vm772_vm2, %v5259_v35, -inf }
 0x2d9   : > { %2934 = vmax.xlane.f32.xlu0 %v2933_v23  ;;  %1597 = vadd.xlane.f32.xlu2 %v1596_v38  ;;  %4156 = vpow2.f32 %v1587_v51  ;;  %v2368_v44 = vunpack.c.l.b16 %v2344_v31 }
 0x2da   : > { %2297 = vadd.xlane.f32.xlu1 %v2296_v17  ;;  %4158 = vpow2.f32 %v1585_v27 }
 0x2db   : > { %3181 = vmatpush.bf16.msra.mxu1 %v5158_v52  ;;  %4160 = vpow2.f32 %v2269_v25  ;;  %v2299_v52 = vsel %vm772_vm2, %v4155_v34, 0.0  ;;  %v2374_v48 = vpack.c.b16 %v2368_v44, %v2367_v37 }
 0x2dc   : > { %v1541_v19 = vpop.xlane.xlu0 %1540  ;;  %4162 = vpow2.f32 %v2271_v39  ;;  %v2217_v20 = vpop.xlane.xlu1 %2216 }
 0x2dd   : > { %v1559_v29 = vsub.f32 %v5038_v9, %v1541_v19  ;;  %v5303_v39 = vpop.f32.mrf.mxu0 }
 0x2de   : > { %4004 = vmatmul.msk.bf16.gmra.mxu1 %vm772_vm2, %v1747_v57  ;;  %6988 = vst [vmem:[#allocation20_spill] sm:$0xff] %v5303_v39 }
 0x2df   : > { %v5271_v41 = vpop.f32.mrf.mxu3  ;;  %v5278_v16 = vpop.eup %4156  ;;  %v1589_v9 = vmul.f32 1.442695, %v1559_v29 }
 0x2e0   : > { %v2936_v2 = vsel %vm772_vm2, %v5271_v41, -inf  ;;  %v5282_v60 = vpop.eup %4158  ;;  %v1654_v32 = vpack.c.bf16 %v5278_v16, %v5278_v16 }
 0x2e1   : > { %1603 = vadd.xlane.f32.xlu2 %v1602_v6  ;;  %2300 = vadd.xlane.f32.xlu0 %v2299_v52  ;;  %v4161_v51 = vpop.eup %4160  ;;  %v1653_v38 = vpack.c.bf16 %v5282_v60, %v5282_v60 }
 0x2e2   : > { %2937 = vmax.xlane.f32.xlu1 %v2936_v2  ;;  %v5291_v34 = vpop.eup %4162  ;;  %v1743_v17 = vunpack.c.l.b16 %v1654_v32  ;;  %v2305_v14 = vsel %vm772_vm2, %v4161_v51, 0.0  ;;  %v2345_v44 = vpack.c.bf16 %v4161_v51, %v4161_v51 }
 0x2e3   : > { %v1742_v19 = vunpack.c.l.b16 %v1653_v38  ;;  %v2346_v57 = vpack.c.bf16 %v5291_v34, %v5291_v34 }
 0x2e4   : > { %v2220_v5 = vpop.xlane.xlu0 %2219  ;;  %4016 = vmatmul.msk.bf16.gmra.mxu0 %vm772_vm2, %v2374_v48  ;;  %v1544_v47 = vpop.xlane.xlu2 %1543  ;;  %v2369_v29 = vunpack.c.l.b16 %v2345_v44 }
 0x2e5   : > { %v1560_v23 = vsub.f32 %v5047_v13, %v1544_v47  ;;  %v2252_v31 = vsub.f32 %v5045_v40, %v2220_v5  ;;  %v1599_v13 = vsel %vm772_vm2, %v5141_v61, 0.0  ;;  %v2251_v40 = vsub.f32 %v5036_v59, %v2217_v20 }
 0x2e6   : > { %v1748_v52 = vpack.c.b16 %v1743_v17, %v1742_v19  ;;  %v2370_v61 = vunpack.c.l.b16 %v2346_v57  ;;  %v1608_v59 = vsel %vm772_vm2, %v5166_v22, 0.0 }
 0x2e7   : > { %v1591_v27 = vmul.f32 1.442695, %v1560_v23  ;;  %v5293_v50 = vpop.f32.mrf.mxu3  ;;  %v2275_v37 = vmul.f32 1.442695, %v2252_v31  ;;  %v2273_v32 = vmul.f32 1.442695, %v2251_v40  ;;  %v5323_v31 = vpop.f32.mrf.mxu0 }
 0x2e8   : > { %v2939_v25 = vsel %vm772_vm2, %v5293_v50, -inf  ;;  %v2375_v38 = vpack.c.b16 %v2370_v61, %v2369_v29  ;;  %6989 = vst [vmem:[#allocation21_spill] sm:$0xff] %v5323_v31  ;;  %v7030_v31 = vld [vmem:[#allocation2_spill] sm:$0xff] }
 0x2e9   : > { %2940 = vmax.xlane.f32.xlu2 %v2939_v25  ;;  %2306 = vadd.xlane.f32.xlu0 %v2305_v14  ;;  %4164 = vpow2.f32 %v1591_v27  ;;  %v881_v39 = vsel %vm772_vm2, %v7030_v31, 0.0 }
 0x2ea   : > { %1600 = vadd.xlane.f32.xlu1 %v1599_v13  ;;  %4166 = vpow2.f32 %v1589_v9 }
 0x2eb   : > { %4168 = vpow2.f32 %v2275_v37 }
 0x2ec   : > { %v2899_v6 = vpop.xlane.xlu0 %2898  ;;  %v2223_v2 = vpop.xlane.xlu2 %2222 }
 0x2ed   : > { %v2945_v48 = vsub.f32 %v5061_v24, %v2899_v6  ;;  %v2302_v24 = vsel %vm772_vm2, %v5253_v53, 0.0  ;;  %v2253_v25 = vsub.f32 %v5065_v0, %v2223_v2  ;;  %v1611_v6 = vsel %vm772_vm2, %v5200_v62, 0.0 }
 0x2ee   : > { %4005 = vmatmul.msk.bf16.gmra.mxu1 %vm772_vm2, %v1748_v52 }
 0x2ef   : > { %v2961_v5 = vmul.f32 1.442695, %v2945_v48  ;;  %v5308_v47 = vpop.f32.mrf.mxu3  ;;  %v5314_v23 = vpop.eup %4164 }
 0x2f0   : > { %v2942_v51 = vsel %vm772_vm2, %v5308_v47, -inf  ;;  %v5318_v27 = vpop.eup %4166  ;;  %v1656_v17 = vpack.c.bf16 %v5314_v23, %v5314_v23 }
 0x2f1   : > { %4170 = vpow2.f32 %v2961_v5  ;;  %1609 = vadd.xlane.f32.xlu2 %v1608_v59  ;;  %2943 = vmax.xlane.f32.xlu0 %v2942_v51  ;;  %v4169_v9 = vpop.eup %4168  ;;  %v1655_v13 = vpack.c.bf16 %v5318_v27, %v5318_v27  ;;  %v5344_v59 = vpop.f32.mrf.mxu0 }
 0x2f2   : > { %2303 = vadd.xlane.f32.xlu1 %v2302_v24  ;;  %4172 = vpow2.f32 %v2273_v32  ;;  %v1745_v44 = vunpack.c.l.b16 %v1656_v17  ;;  %v2348_v52 = vpack.c.bf16 %v4169_v9, %v4169_v9  ;;  %6990 = vst [vmem:[#allocation22_spill] sm:$0xff] %v5344_v59  ;;  %v872_v17 = vsel %vm772_vm2, %v4874_v54, 0.0 }
 0x2f3   : > { %v1744_v2 = vunpack.c.l.b16 %v1655_v13 }
 0x2f4   : > { %v2226_v22 = vpop.xlane.xlu1 %2225  ;;  %4017 = vmatmul.msk.bf16.gmra.mxu0 %vm772_vm2, %v2375_v38  ;;  %v2902_v20 = vpop.xlane.xlu2 %2901  ;;  %v2372_v29 = vunpack.c.l.b16 %v2348_v52 }
 0x2f5   : > { %v2254_v14 = vsub.f32 %v5077_v58, %v2226_v22  ;;  %v2946_v53 = vsub.f32 %v5073_v28, %v2902_v20  ;;  %v2277_v58 = vmul.f32 1.442695, %v2253_v25  ;;  %v1605_v28 = vsel %vm772_vm2, %v5174_v45, 0.0  ;;  %v5346_v45 = vpop.f32.mrf.mxu1 }
 0x2f6   : > { %v1749_v5 = vpack.c.b16 %v1745_v44, %v1744_v2  ;;  %6991 = vst [vmem:[#allocation23_spill] sm:$0xff] %v5346_v45 }
 0x2f7   : > { %v5330_v19 = vpop.eup %4170  ;;  %v2279_v57 = vmul.f32 1.442695, %v2254_v14  ;;  %v2963_v40 = vmul.f32 1.442695, %v2946_v53 }
 0x2f8   : > { %v2993_v37 = vsel %vm772_vm2, %v5330_v19, 0.0  ;;  %v5336_v0 = vpop.eup %4172 }
 0x2f9   : > { %2994 = vadd.xlane.f32.xlu2 %v2993_v37  ;;  %1612 = vadd.xlane.f32.xlu0 %v1611_v6  ;;  %4174 = vpow2.f32 %v2963_v40  ;;  %v2347_v48 = vpack.c.bf16 %v5336_v0, %v5336_v0  ;;  %v5369_v52 = vpop.f32.mrf.mxu0 }
 0x2fa   : > { %1606 = vadd.xlane.f32.xlu1 %v1605_v28  ;;  %4176 = vpow2.f32 %v2279_v57  ;;  %6992 = vst [vmem:[#allocation24_spill] sm:$0xff] %v5369_v52 }
 0x2fb   : > { %4178 = vpow2.f32 %v2277_v58  ;;  %v2371_v38 = vunpack.c.l.b16 %v2347_v48 }
 0x2fc   : > { %v2905_v61 = vpop.xlane.xlu1 %2904  ;;  %v2229_v32 = vpop.xlane.xlu0 %2228 }
 0x2fd   : > { %v2947_v62 = vsub.f32 %v5092_v4, %v2905_v61  ;;  %v2308_v4 = vsel %vm772_vm2, %v5291_v34, 0.0  ;;  %v2376_v25 = vpack.c.b16 %v2372_v29, %v2371_v38  ;;  %v2255_v57 = vsub.f32 %v5094_v30, %v2229_v32  ;;  %v5371_v48 = vpop.f32.mrf.mxu1 }
 0x2fe   : > { %4006 = vmatmul.msk.bf16.gmra.mxu1 %vm772_vm2, %v1749_v5  ;;  %6993 = vst [vmem:[#allocation25_spill] sm:$0xff] %v5371_v48  ;;  %v3041_v5 = vpack.c.bf16 %v5330_v19, %v5330_v19 }
 0x2ff   : > { %v2965_v51 = vmul.f32 1.442695, %v2947_v62  ;;  %v4175_v24 = vpop.eup %4174  ;;  %v2281_v30 = vmul.f32 1.442695, %v2255_v57 }
 0x300   : > { %v5350_v22 = vpop.eup %4176  ;;  %v2996_v20 = vsel %vm772_vm2, %v4175_v24, 0.0  ;;  %v3042_v32 = vpack.c.bf16 %v4175_v24, %v4175_v24  ;;  %v2311_v24 = vsel %vm772_vm2, %v5336_v0, 0.0 }
 0x301   : > { %4180 = vpow2.f32 %v2965_v51  ;;  %873 = vadd.xlane.f32.xlu2 %v872_v17  ;;  %2997 = vadd.xlane.f32.xlu0 %v2996_v20  ;;  %v5355_v14 = vpop.eup %4178  ;;  %v2350_v53 = vpack.c.bf16 %v5350_v22, %v5350_v22 }
 0x302   : > { %2309 = vadd.xlane.f32.xlu1 %v2308_v4  ;;  %v2349_v44 = vpack.c.bf16 %v5355_v14, %v5355_v14  ;;  %v3066_v17 = vunpack.c.l.b16 %v3042_v32 }
 0x303   : > { %v2439_v28 = vunpack.c.l.b16 %v2350_v53 }
 0x304   : > { %v2908_v13 = vpop.xlane.xlu0 %2907  ;;  %4018 = vmatmul.msk.bf16.gmra.mxu0 %vm772_vm2, %v2376_v25  ;;  %v2232_v54 = vpop.xlane.xlu2 %2231  ;;  %v2438_v61 = vunpack.c.l.b16 %v2349_v44 }
 0x305   : > { %v2948_v40 = vsub.f32 %v5111_v3, %v2908_v13  ;;  %v2256_v34 = vsub.f32 %v5115_v18, %v2232_v54  ;;  %v869_v3 = vsel %vm772_vm2, %v4870_v8, 0.0  ;;  %v2314_v18 = vsel %vm772_vm2, %v4169_v9, 0.0  ;;  %v5385_v19 = vpop.f32.mrf.mxu1 }
 0x306   : > { %v2446_v62 = vpack.c.b16 %v2439_v28, %v2438_v61  ;;  %v3065_v9 = vunpack.c.l.b16 %v3041_v5  ;;  %6994 = vst [vmem:[#allocation26_spill] sm:$0xff] %v5385_v19 }
 0x307   : > { %v5365_v37 = vpop.eup %4180  ;;  %v2967_v6 = vmul.f32 1.442695, %v2948_v40  ;;  %v2283_v58 = vmul.f32 1.442695, %v2256_v34 }
 0x308   : > { %v2999_v2 = vsel %vm772_vm2, %v5365_v37, 0.0  ;;  %v3073_v13 = vpack.c.b16 %v3066_v17, %v3065_v9  ;;  %v1617_v9 = vsel %vm772_vm2, %v5212_v7, 0.0 }
 0x309   : > { %4182 = vpow2.f32 %v2967_v6  ;;  %3000 = vadd.xlane.f32.xlu2 %v2999_v2  ;;  %2315 = vadd.xlane.f32.xlu0 %v2314_v18 }
 0x30a   : > { %870 = vadd.xlane.f32.xlu1 %v869_v3  ;;  %4184 = vpow2.f32 %v2283_v58 }
 0x30b   : > { %4186 = vpow2.f32 %v2281_v30 }
 0x30c   : > { %v2911_v29 = vpop.xlane.xlu0 %2910 }
 0x30d   : > { %v2949_v51 = vsub.f32 %v5131_v55, %v2911_v29  ;;  %v2235_v38 = vpop.xlane.xlu2 %2234  ;;  %v1614_v55 = vsel %vm772_vm2, %v5193_v36, 0.0  ;;  %v5411_v5 = vpop.f32.mrf.mxu1 }
 0x30e   : > { %4019 = vmatmul.msk.bf16.vlgmr.msrb.gmra.mxu1 %vm772_vm2, %v2446_v62  ;;  %v2257_v40 = vsub.f32 %v5135_v46, %v2235_v38  ;;  %v878_v46 = vsel %vm772_vm2, %v4904_v63, 0.0  ;;  %6995 = vst [vmem:[#allocation27_spill] sm:$0xff] %v5411_v5  ;;  %v3043_v62 = vpack.c.bf16 %v5365_v37, %v5365_v37  ;;  %v2317_v37 = vsel %vm772_vm2, %v5355_v14, 0.0  ;;  %v6997_v14 = vld [vmem:[#allocation14_spill] sm:$0xff] }
 0x30f   : > { %v4183_v8 = vpop.eup %4182  ;;  %v2969_v4 = vmul.f32 1.442695, %v2949_v51 }
 0x310   : > { %v3002_v20 = vsel %vm772_vm2, %v4183_v8, 0.0  ;;  %v5383_v25 = vpop.eup %4184  ;;  %v2285_v18 = vmul.f32 1.442695, %v2257_v40 }
 0x311   : > { %4188 = vpow2.f32 %v2969_v4  ;;  %v5387_v53 = vpop.f32.mrf.mxu0  ;;  %2312 = vadd.xlane.f32.xlu2 %v2311_v24  ;;  %3003 = vadd.xlane.f32.xlu0 %v3002_v20  ;;  %v5391_v54 = vpop.eup %4186  ;;  %v2352_v0 = vpack.c.bf16 %v5383_v25, %v5383_v25 }
 0x312   : > { %1615 = vadd.xlane.f32.xlu1 %v1614_v55  ;;  %v2351_v6 = vpack.c.bf16 %v5391_v54, %v5391_v54 }
 0x313   : > { %v2441_v2 = vunpack.c.l.b16 %v2352_v0 }
 0x314   : > { %v2238_v57 = vpop.xlane.xlu1 %2237  ;;  %4031 = vmatmul.msk.bf16.vlgmr.msra.gmra.mxu0 %vm772_vm2, %v3073_v13  ;;  %v2440_v32 = vunpack.c.l.b16 %v2351_v6  ;;  %v6998_v6 = vld [vmem:[#allocation15_spill] sm:$0xff] }
 0x315   : > { %v2258_v34 = vsub.f32 %v5154_v10, %v2238_v57  ;;  %v2914_v44 = vpop.xlane.xlu2 %2913  ;;  %v875_v10 = vsel %vm772_vm2, %v4899_v15, 0.0  ;;  %v5431_v40 = vpop.f32.mrf.mxu1 }
 0x316   : > { %v2950_v36 = vsub.f32 %v5152_v1, %v2914_v44  ;;  %v3044_v1 = vpack.c.bf16 %v4183_v8, %v4183_v8  ;;  %v2447_v51 = vpack.c.b16 %v2441_v2, %v2440_v32  ;;  %v3067_v8 = vunpack.c.l.b16 %v3043_v62  ;;  %6996 = vst [vmem:[#allocation28_spill] sm:$0xff] %v5431_v40 }
 0x317   : > { %v5401_v58 = vpop.eup %4188  ;;  %v2287_v28 = vmul.f32 1.442695, %v2258_v34 }
 0x318   : > { %v2971_v30 = vmul.f32 1.442695, %v2950_v36  ;;  %v3005_v3 = vsel %vm772_vm2, %v5401_v58, 0.0  ;;  %v3068_v17 = vunpack.c.l.b16 %v3044_v1 }
 0x319   : > { %v5405_v61 = vpop.f32.mrf.mxu0  ;;  %3006 = vadd.xlane.f32.xlu2 %v3005_v3  ;;  %876 = vadd.xlane.f32.xlu0 %v875_v10 }
 0x31a   : > { %4190 = vpow2.f32 %v2971_v30  ;;  %879 = vadd.xlane.f32.xlu1 %v878_v46  ;;  %v2320_v46 = vsel %vm772_vm2, %v5350_v22, 0.0 }
 0x31b   : > { %4192 = vpow2.f32 %v2287_v28 }
 0x31c   : > { %v2241_v29 = vpop.xlane.xlu1 %2240  ;;  %4194 = vpow2.f32 %v2285_v18 }
 0x31d   : > { %v2917_v38 = vpop.xlane.xlu2 %2916  ;;  %v2259_v34 = vsub.f32 %v5168_v49, %v2241_v29  ;;  %v6999_v49 = vld [vmem:[#allocation19_spill] sm:$0xff] }
 0x31e   : > { %v2951_v63 = vsub.f32 %v5164_v43, %v2917_v38  ;;  %4020 = vmatmul.msk.bf16.gmra.mxu1 %vm772_vm2, %v2447_v51  ;;  %v3074_v43 = vpack.c.b16 %v3068_v17, %v3067_v8  ;;  %v1620_v1 = vsel %vm772_vm2, %v6999_v49, 0.0  ;;  %v3045_v38 = vpack.c.bf16 %v5401_v58, %v5401_v58 }
 0x31f   : > { %v2289_v10 = vmul.f32 1.442695, %v2259_v34 }
 0x320   : > { %v4191_v15 = vpop.eup %4190  ;;  %v2973_v4 = vmul.f32 1.442695, %v2951_v63  ;;  %v7000_v63 = vld [vmem:[#allocation16_spill] sm:$0xff] }
 0x321   : > { %v5419_v24 = vpop.eup %4192  ;;  %v5421_v20 = vpop.f32.mrf.mxu0  ;;  %1618 = vadd.xlane.f32.xlu2 %v1617_v9  ;;  %v3008_v55 = vsel %vm772_vm2, %v4191_v15, 0.0  ;;  %v3046_v51 = vpack.c.bf16 %v4191_v15, %v4191_v15 }
 0x322   : > { %4196 = vpow2.f32 %v2973_v4  ;;  %2318 = vadd.xlane.f32.xlu1 %v2317_v37  ;;  %3009 = vadd.xlane.f32.xlu0 %v3008_v55  ;;  %v5426_v13 = vpop.eup %4194  ;;  %v2354_v0 = vpack.c.bf16 %v5419_v24, %v5419_v24  ;;  %v5449_v37 = vpop.f32.mrf.mxu1 }
 0x323   : > { %v2353_v28 = vpack.c.bf16 %v5426_v13, %v5426_v13  ;;  %v3070_v4 = vunpack.c.l.b16 %v3046_v51  ;;  %7001 = vst [vmem:[#allocation14_spill] sm:$0xff] %v5449_v37 }
 0x324   : > { %v2920_v7 = vpop.xlane.xlu1 %2919  ;;  %v2244_v57 = vpop.xlane.xlu0 %2243  ;;  %4032 = vmatmul.msk.bf16.gmra.mxu0 %vm772_vm2, %v3074_v43  ;;  %v2443_v18 = vunpack.c.l.b16 %v2354_v0  ;;  %v3069_v43 = vunpack.c.l.b16 %v3045_v38 }
 0x325   : > { %v2952_v44 = vsub.f32 %v6997_v14, %v2920_v7  ;;  %v2260_v36 = vsub.f32 %v6998_v6, %v2244_v57  ;;  %v2442_v29 = vunpack.c.l.b16 %v2353_v28  ;;  %v7002_v6 = vld [vmem:[#allocation17_spill] sm:$0xff] }
 0x326   : > { %v3075_v58 = vpack.c.b16 %v3070_v4, %v3069_v43 }
 0x327   : > { %v2975_v2 = vmul.f32 1.442695, %v2952_v44  ;;  %v2291_v30 = vmul.f32 1.442695, %v2260_v36  ;;  %v2448_v22 = vpack.c.b16 %v2443_v18, %v2442_v29 }
 0x328   : > { %v4197_v3 = vpop.eup %4196 }
 0x329   : > { %4198 = vpow2.f32 %v2975_v2  ;;  %v5440_v32 = vpop.f32.mrf.mxu0  ;;  %2321 = vadd.xlane.f32.xlu2 %v2320_v46  ;;  %v3011_v62 = vsel %vm772_vm2, %v4197_v3, 0.0  ;;  %v3047_v29 = vpack.c.bf16 %v4197_v3, %v4197_v3 }
 0x32a   : > { %1621 = vadd.xlane.f32.xlu0 %v1620_v1  ;;  %3012 = vadd.xlane.f32.xlu1 %v3011_v62  ;;  %4200 = vpow2.f32 %v2291_v30 }
 0x32b   : > { %4202 = vpow2.f32 %v2289_v10  ;;  %v5468_v10 = vpop.f32.mrf.mxu1 }
 0x32c   : > { %v2923_v17 = vpop.xlane.xlu0 %2922  ;;  %7003 = vst [vmem:[#allocation15_spill] sm:$0xff] %v5468_v10 }
 0x32d   : > { %v2953_v8 = vsub.f32 %v7000_v63, %v2923_v17 }
 0x32e   : > { %4021 = vmatmul.msk.bf16.gmra.mxu1 %vm772_vm2, %v2448_v22 }
 0x32f   : > { %v4199_v9 = vpop.eup %4198  ;;  %v2977_v55 = vmul.f32 1.442695, %v2953_v8  ;;  %v3071_v8 = vunpack.c.l.b16 %v3047_v29 }
 0x330   : > { %v3014_v15 = vsel %vm772_vm2, %v4199_v9, 0.0  ;;  %v5452_v0 = vpop.eup %4200  ;;  %v3048_v62 = vpack.c.bf16 %v4199_v9, %v4199_v9 }
 0x331   : > { %4204 = vpow2.f32 %v2977_v55  ;;  %v5454_v7 = vpop.f32.mrf.mxu0  ;;  %3015 = vadd.xlane.f32.xlu2 %v3014_v15  ;;  %v5456_v57 = vpop.eup %4202  ;;  %v2356_v34 = vpack.c.bf16 %v5452_v0, %v5452_v0 }
 0x332   : > { %v2355_v28 = vpack.c.bf16 %v5456_v57, %v5456_v57  ;;  %v3072_v22 = vunpack.c.l.b16 %v3048_v62 }
 0x333   : > { %v2445_v18 = vunpack.c.l.b16 %v2356_v34  ;;  %v5481_v15 = vpop.f32.mrf.mxu1 }
 0x334   : > { %4033 = vmatmul.msk.bf16.gmra.mxu0 %vm772_vm2, %v3075_v58  ;;  %v2926_v14 = vpop.xlane.xlu2 %2925  ;;  %v5461_v44 = vpop.xlane.xlu0 %2294  ;;  %v2444_v1 = vunpack.c.l.b16 %v2355_v28  ;;  %v3076_v3 = vpack.c.b16 %v3072_v22, %v3071_v8  ;;  %7004 = vst [vmem:[#allocation19_spill] sm:$0xff] %v5481_v15 }
 0x335   : > { %v2954_v36 = vsub.f32 %v7002_v6, %v2926_v14  ;;  %4206 = vrcp.f32 %v5461_v44  ;;  %vm2508_vm4 = vweird.f32 %v5461_v44 }
 0x336   : > { %v2449_v38 = vpack.c.b16 %v2445_v18, %v2444_v1 }
 0x337   : > { %v4205_v2 = vpop.eup %4204  ;;  %v2979_v30 = vmul.f32 1.442695, %v2954_v36 }
 0x338   : > { %v3017_v46 = vsel %vm772_vm2, %v4205_v2, 0.0 }
 0x339   : > { %4208 = vpow2.f32 %v2979_v30  ;;  %v5470_v49 = vpop.f32.mrf.mxu0  ;;  %3018 = vadd.xlane.f32.xlu1 %v3017_v46  ;;  %v1623_v46 = vsel %vm772_vm2, %v5243_v21, 0.0 }
 0x33b   : > { %v5472_v17 = vpop.eup %4206 }
 0x33c   : > { %v2929_v51 = vpop.xlane.xlu1 %2928  ;;  %v2504_v9 = vmul.f32 %v5472_v17, %v5461_v44  ;;  %vm2509_vm3 = vweird.f32 %v5472_v17 }
 0x33d   : > { %v2955_v4 = vsub.f32 %v5223_v33, %v2929_v51  ;;  %v3049_v33 = vpack.c.bf16 %v4205_v2, %v4205_v2  ;;  %vm5517_vm5 = vmor %vm2508_vm4, %vm2509_vm3 }
 0x33e   : > { %4022 = vmatmul.msk.bf16.gmra.mxu1 %vm772_vm2, %v2449_v38  ;;  %v2505_v36 = vsub.f32 1.0, %v2504_v9  ;;  %v2512_v9 = vand.u32 2147483647, %v5461_v44 }
 0x33f   : > { %v4209_v63 = vpop.eup %4208  ;;  %v2981_v34 = vmul.f32 1.442695, %v2955_v4  ;;  %v3138_v62 = vunpack.c.l.b16 %v3049_v33 }
 0x340   : > { %v3020_v55 = vsel %vm772_vm2, %v4209_v63, 0.0  ;;  %v3050_v58 = vpack.c.bf16 %v4209_v63, %v4209_v63  ;;  %v2506_v29 = vmul.f32 %v5472_v17, %v2505_v36  ;;  %vm2513_vm6 = vcmp.eq.f32.partialorder %v2512_v9, 8.507059e+37 }
 0x341   : > { %v5477_v43 = vpop.f32.mrf.mxu0  ;;  %3021 = vadd.xlane.f32.xlu2 %v3020_v55 }
 0x342   : > { %v3139_v30 = vunpack.c.l.b16 %v3050_v58  ;;  %v2507_v4 = vadd.f32 %v5472_v17, %v2506_v29 }
 0x344   : > { %v5483_v14 = vpop.xlane.xlu1 %1594  ;;  %4034 = vmatmul.msk.bf16.gmra.mxu0 %vm772_vm2, %v3076_v3  ;;  %v2932_v6 = vpop.xlane.xlu2 %2931  ;;  %v3146_v2 = vpack.c.b16 %v3139_v30, %v3138_v62  ;;  %v2514_v3 = vand.u32 2147483648, %v5461_v44  ;;  %v2511_v30 = vsel %vm5517_vm5, %v5472_v17, %v2507_v4 }
 0x345   : > { %4210 = vrcp.f32 %v5483_v14  ;;  %v2956_v28 = vsub.f32 %v5235_v56, %v2932_v6  ;;  %v1812_v36 = vand.u32 2147483647, %v5483_v14  ;;  %vm1808_vm7 = vweird.f32 %v5483_v14 }
 0x346   : > { %4212 = vpow2.f32 %v2981_v34 }
 0x347   : > { %v2983_v18 = vmul.f32 1.442695, %v2956_v28  ;;  %vm5544_vm9 = vcmp.eq.f32.partialorder %v1812_v36, 8.507059e+37 }
 0x349   : > { %v5490_v1 = vpop.f32.mrf.mxu0  ;;  %1624 = vadd.xlane.f32.xlu2 %v1623_v46  ;;  %4214 = vpow2.f32 %v2983_v18  ;;  %v2515_v46 = vor.u32 1.1754944e-38, %v2514_v3 }
 0x34b   : > { %v5493_v51 = vpop.eup %4210  ;;  %v5495_v38 = vpop.f32.mrf.mxu1  ;;  %v2516_v9 = vsel %vm2513_vm6, %v2515_v46, %v2511_v30 }
 0x34c   : > { %7005 = vst [vmem:[#allocation16_spill] sm:$0xff] %v5495_v38  ;;  %v1804_v56 = vmul.f32 %v5493_v51, %v5483_v14  ;;  %v2935_v22 = vpop.xlane.xlu0 %2934  ;;  %v5499_v63 = vpop.xlane.xlu2 %1597  ;;  %vm1809_vm8 = vweird.f32 %v5493_v51 }
 0x34d   : > { %v5501_v8 = vpop.xlane.xlu1 %2297  ;;  %4216 = vrcp.f32 %v5499_v63  ;;  %v5504_v21 = vpop.eup %4212  ;;  %v2957_v28 = vsub.f32 %v5259_v35, %v2935_v22  ;;  %vm1822_vm10 = vweird.f32 %v5499_v63  ;;  %v1828_v19 = vand.u32 2147483648, %v5499_v63  ;;  %vm5560_vm13 = vmor %vm1808_vm7, %vm1809_vm8 }
 0x34e   : > { %4218 = vrcp.f32 %v5501_v8  ;;  %4035 = vmatmul.msk.bf16.vlgmr.msra.gmra.mxu1 %vm772_vm2, %v3146_v2  ;;  %v1805_v55 = vsub.f32 1.0, %v1804_v56  ;;  %v3051_v34 = vpack.c.bf16 %v5504_v21, %v5504_v21  ;;  %v1814_v2 = vand.u32 2147483648, %v5483_v14 }
 0x34f   : > { %v5513_v58 = vpop.eup %4214  ;;  %v2985_v10 = vmul.f32 1.442695, %v2957_v28  ;;  %vm2522_vm15 = vweird.f32 %v5501_v8 }
 0x350   : > { %v1806_v44 = vmul.f32 %v5493_v51, %v1805_v55  ;;  %v3052_v35 = vpack.c.bf16 %v5513_v58, %v5513_v58  ;;  %v3140_v4 = vunpack.c.l.b16 %v3051_v34  ;;  %v2528_v34 = vand.u32 2147483648, %v5501_v8 }
 0x351   : > { %v2410_v6 = vpop.f32.mrf.mxu0 }
 0x352   : > { %v1807_v37 = vadd.f32 %v5493_v51, %v1806_v44  ;;  %v3141_v30 = vunpack.c.l.b16 %v3052_v35  ;;  %v2727_v35 = vmul.f32 %v2516_v9, %v2410_v6  ;;  %v2529_v14 = vor.u32 1.1754944e-38, %v2528_v34 }
 0x353   : > { %v5526_v18 = vpop.eup %4216  ;;  %v5529_v62 = vpop.f32.mrf.mxu1  ;;  %v1815_v34 = vor.u32 1.1754944e-38, %v1814_v2 }
 0x354   : > { %7008 = vst [vmem:[#allocation17_spill] sm:$0xff] %v5529_v62  ;;  %v4219_v29 = vpop.eup %4218  ;;  %v1818_v56 = vmul.f32 %v5526_v18, %v5499_v63  ;;  %v5537_v17 = vpop.xlane.xlu0 %2300  ;;  %vm1823_vm11 = vweird.f32 %v5526_v18 }
 0x355   : > { %v5539_v22 = vpop.xlane.xlu2 %1603  ;;  %v2518_v55 = vmul.f32 %v4219_v29, %v5501_v8  ;;  %v2938_v3 = vpop.xlane.xlu1 %2937  ;;  %4220 = vrcp.f32 %v5537_v17  ;;  %vm2523_vm12 = vweird.f32 %v4219_v29  ;;  %vm5568_vm14 = vmor %vm1822_vm10, %vm1823_vm11  ;;  %vm2536_vm7 = vweird.f32 %v5537_v17 }
 0x356   : > { %v1819_v15 = vsub.f32 1.0, %v1818_v56  ;;  %v2958_v40 = vsub.f32 %v5271_v41, %v2938_v3  ;;  %v2526_v41 = vand.u32 2147483647, %v5501_v8  ;;  %4222 = vpow2.f32 %v2985_v10  ;;  %vm2524_vm3 = vmor %vm2522_vm15, %vm2523_vm12 }
 0x357   : > { %v2519_v5 = vsub.f32 1.0, %v2518_v55  ;;  %v1811_v10 = vsel %vm5560_vm13, %v5493_v51, %v1807_v37  ;;  %v3147_v8 = vpack.c.b16 %v3141_v30, %v3140_v4  ;;  %v2743_v37 = vpack.c.bf16 %v2727_v35, %v2727_v35 }
 0x358   : > { %v1820_v46 = vmul.f32 %v5526_v18, %v1819_v15  ;;  %v2987_v36 = vmul.f32 1.442695, %v2958_v40  ;;  %v1826_v40 = vand.u32 2147483647, %v5499_v63  ;;  %vm2527_vm4 = vcmp.eq.f32.partialorder %v2526_v41, 8.507059e+37 }
 0x359   : > { %v2412_v48 = vpop.f32.mrf.mxu0  ;;  %v2520_v28 = vmul.f32 %v4219_v29, %v2519_v5  ;;  %vm1850_vm11 = vweird.f32 %v5539_v22 }
 0x35a   : > { %v1821_v15 = vadd.f32 %v5526_v18, %v1820_v46  ;;  %4224 = vpow2.f32 %v2987_v36  ;;  %v1829_v36 = vor.u32 1.1754944e-38, %v1828_v19  ;;  %vm1827_vm5 = vcmp.eq.f32.partialorder %v1826_v40, 8.507059e+37 }
 0x35b   : > { %v4221_v56 = vpop.eup %4220  ;;  %v2521_v55 = vadd.f32 %v4219_v29, %v2520_v28  ;;  %v5573_v3 = vpop.f32.mrf.mxu1  ;;  %4226 = vrcp.f32 %v5539_v22  ;;  %v2540_v40 = vand.u32 2147483647, %v5537_v17 }
 0x35c   : > { %7015 = vst [vmem:[#allocation29_spill] sm:$0xff] %v5573_v3  ;;  %v1825_v6 = vsel %vm5568_vm14, %v5526_v18, %v1821_v15  ;;  %v2532_v63 = vmul.f32 %v4221_v56, %v5537_v17  ;;  %v5583_v9 = vpop.xlane.xlu0 %2306  ;;  %v1816_v18 = vsel %vm5544_vm9, %v1815_v34, %v1811_v10  ;;  %v5593_v4 = vpop.eup %4222  ;;  %vm2537_vm6 = vweird.f32 %v4221_v56 }
 0x35d   : > { %v5585_v46 = vpop.xlane.xlu2 %2940  ;;  %v2525_v28 = vsel %vm2524_vm3, %v4219_v29, %v2521_v55  ;;  %v5587_v45 = vpop.xlane.xlu1 %1600  ;;  %v1830_v15 = vsel %vm1827_vm5, %v1829_v36, %v1825_v6  ;;  %v2542_v29 = vand.u32 2147483648, %v5537_v17  ;;  %v2027_v35 = vmul.f32 %v1816_v18, %v5387_v53  ;;  %vm2538_vm8 = vmor %vm2536_vm7, %vm2537_vm6 }
 0x35e   : > { %v2533_v51 = vsub.f32 1.0, %v2532_v63  ;;  %v2530_v44 = vsel %vm2527_vm4, %v2529_v14, %v2525_v28  ;;  %4036 = vmatmul.msk.bf16.gmra.mxu1 %vm772_vm2, %v3147_v8  ;;  %4228 = vrcp.f32 %v5587_v45  ;;  %v3571_v55 = vunpack.c.l.b16 %v2743_v37 }
 0x35f   : > { %v2728_v5 = vmul.f32 %v2530_v44, %v2412_v48  ;;  %v2028_v48 = vmul.f32 %v1830_v15, %v5405_v61  ;;  %4230 = vrcp.f32 %v5583_v9  ;;  %v2543_v8 = vor.u32 1.1754944e-38, %v2542_v29 }
 0x360   : > { %v2534_v19 = vmul.f32 %v4221_v56, %v2533_v51  ;;  %v5597_v2 = vpop.eup %4224  ;;  %v3053_v53 = vpack.c.bf16 %v5593_v4, %v5593_v4  ;;  %vm2541_vm9 = vcmp.eq.f32.partialorder %v2540_v40, 8.507059e+37  ;;  %v2043_v44 = vpack.c.bf16 %v2027_v35, %v2027_v35 }
 0x361   : > { %v2744_v30 = vpack.c.bf16 %v2728_v5, %v2728_v5  ;;  %v2415_v41 = vpop.f32.mrf.mxu0  ;;  %v3054_v6 = vpack.c.bf16 %v5597_v2, %v5597_v2  ;;  %v5610_v36 = vpop.eup %4226  ;;  %vm1836_vm7 = vweird.f32 %v5587_v45 }
 0x362   : > { %v2535_v33 = vadd.f32 %v4221_v56, %v2534_v19  ;;  %v1846_v5 = vmul.f32 %v5610_v36, %v5539_v22  ;;  %v3142_v40 = vunpack.c.l.b16 %v3053_v53  ;;  %vm1851_vm12 = vweird.f32 %v5610_v36 }
 0x363   : > { %v3572_v14 = vunpack.c.l.b16 %v2744_v30  ;;  %v5604_v10 = vpop.f32.mrf.mxu1  ;;  %v3143_v15 = vunpack.c.l.b16 %v3054_v6  ;;  %vm5676_vm6 = vmor %vm1850_vm11, %vm1851_vm12 }
 0x364   : > { %7016 = vst [vmem:[#allocation30_spill] sm:$0xff] %v5604_v10  ;;  %v2539_v63 = vsel %vm2538_vm8, %v4221_v56, %v2535_v33  ;;  %v2944_v28 = vpop.xlane.xlu0 %2943  ;;  %v5616_v37 = vpop.eup %4228  ;;  %v2044_v56 = vpack.c.bf16 %v2028_v48, %v2028_v48  ;;  %v3515_v33 = vunpack.c.l.b16 %v2043_v44  ;;  %v1847_v48 = vsub.f32 1.0, %v1846_v5 }
 0x365   : > { %v5608_v34 = vpop.xlane.xlu2 %1609  ;;  %v3587_v61 = vpack.c.b16 %v3572_v14, %v3571_v55  ;;  %v5614_v17 = vpop.xlane.xlu1 %2303  ;;  %v2544_v51 = vsel %vm2541_vm9, %v2543_v8, %v2539_v63  ;;  %v1832_v29 = vmul.f32 %v5616_v37, %v5587_v45  ;;  %v3148_v8 = vpack.c.b16 %v3143_v15, %v3142_v40 }
 0x366   : > { %4232 = vrcp.f32 %v5614_v17  ;;  %v5619_v18 = vmul.f32 %v2544_v51, %v2415_v41  ;;  %v5624_v19 = vpop.eup %4230  ;;  %v3516_v55 = vunpack.c.l.b16 %v2044_v56  ;;  %v2960_v53 = vsub.f32 %v5308_v47, %v2944_v28 }
 0x367   : > { %3595 = vrot.lane.b32.xlu1 %v3587_v61, %s4360_s19  ;;  %v2560_v14 = vmul.f32 %v5624_v19, %v5583_v9  ;;  %v1833_v61 = vsub.f32 1.0, %v1832_v29  ;;  %v1854_v44 = vand.u32 2147483647, %v5539_v22  ;;  %v2959_v56 = vsub.f32 %v5293_v50, %v5585_v46 }
 0x368   : > { %v3531_v6 = vpack.c.b16 %v3516_v55, %v3515_v33  ;;  %v1848_v15 = vmul.f32 %v5610_v36, %v1847_v48  ;;  %v2556_v40 = vand.u32 2147483648, %v5614_v17  ;;  %v2554_v55 = vand.u32 2147483647, %v5614_v17 }
 0x369   : > { %v2417_v30 = vpop.f32.mrf.mxu0  ;;  %v2561_v29 = vsub.f32 1.0, %v2560_v14  ;;  %v1834_v47 = vmul.f32 %v5616_v37, %v1833_v61  ;;  %v1856_v50 = vand.u32 2147483648, %v5539_v22  ;;  %v2991_v46 = vmul.f32 1.442695, %v2960_v53 }
 0x36a   : > { %3539 = vrot.lane.b32.xlu0 %v3531_v6, %s4361_s20  ;;  %vm5652_vm13 = vcmp.eq.f32.partialorder %v1854_v44, 8.507059e+37  ;;  %v1842_v48 = vand.u32 2147483648, %v5587_v45  ;;  %v2989_v14 = vmul.f32 1.442695, %v2959_v56  ;;  %vm2550_vm14 = vweird.f32 %v5614_v17 }
 0x36b   : > { %v5628_v35 = vpop.f32.mrf.mxu1  ;;  %vm1837_vm15 = vweird.f32 %v5616_v37  ;;  %v2557_v52 = vor.u32 1.1754944e-38, %v2556_v40  ;;  %v2562_v53 = vmul.f32 %v5624_v19, %v2561_v29  ;;  %vm2555_vm4 = vcmp.eq.f32.partialorder %v2554_v55, 8.507059e+37 }
 0x36c   : > { %7017 = vst [vmem:[#allocation31_spill] sm:$0xff] %v5628_v35  ;;  %v4233_v41 = vpop.eup %4232  ;;  %v5643_v33 = vpop.xlane.xlu0 %1612  ;;  %v1835_v35 = vadd.f32 %v5616_v37, %v1834_v47  ;;  %v2570_v56 = vand.u32 2147483648, %v5583_v9  ;;  %4234 = vpow2.f32 %v2991_v46  ;;  %vm2565_vm5 = vweird.f32 %v5624_v19  ;;  %vm5689_vm8 = vmor %vm1836_vm7, %vm1837_vm15 }
 0x36d   : > { %v5632_v63 = vpop.xlane.xlu2 %2994  ;;  %v2546_v51 = vmul.f32 %v4233_v41, %v5614_v17  ;;  %v5635_v59 = vpop.xlane.xlu1 %1606  ;;  %vm2551_vm10 = vweird.f32 %v4233_v41  ;;  %4236 = vpow2.f32 %v2989_v14  ;;  %v2563_v47 = vadd.f32 %v5624_v19, %v2562_v53 }
 0x36e   : > { %4037 = vmatmul.msk.bf16.gmra.mxu1 %vm772_vm2, %v3148_v8  ;;  %vm2552_vm3 = vmor %vm2550_vm14, %vm2551_vm10  ;;  %vm2564_vm9 = vweird.f32 %v5583_v9  ;;  %v1857_v46 = vor.u32 1.1754944e-38, %v1856_v50  ;;  %v1843_v14 = vor.u32 1.1754944e-38, %v1842_v48 }
 0x36f   : > { %v2547_v5 = vsub.f32 1.0, %v2546_v51  ;;  %vm2566_vm10 = vmor %vm2564_vm9, %vm2565_vm5 }
 0x371   : > { %v2548_v28 = vmul.f32 %v4233_v41, %v2547_v5  ;;  %v2420_v6 = vpop.f32.mrf.mxu0  ;;  %v1849_v5 = vadd.f32 %v5610_v36, %v1848_v15  ;;  %v2568_v15 = vand.u32 2147483647, %v5583_v9 }
 0x372   : > { %v5710_v53 = vpop.eup %4234 }
 0x373   : > { %v2549_v61 = vadd.f32 %v4233_v41, %v2548_v28  ;;  %v5658_v51 = vpop.f32.mrf.mxu1  ;;  %v1853_v40 = vsel %vm5676_vm6, %v5610_v36, %v1849_v5  ;;  %v2571_v36 = vor.u32 1.1754944e-38, %v2570_v56  ;;  %vm2569_vm11 = vcmp.eq.f32.partialorder %v2568_v15, 8.507059e+37  ;;  %v5718_v48 = vpop.eup %4236 }
 0x374   : > { %7020 = vst [vmem:[#allocation32_spill] sm:$0xff] %v5658_v51  ;;  %v1858_v56 = vsel %vm5652_vm13, %v1857_v46, %v1853_v40 }
 0x375   : > { %v5664_v44 = vpop.xlane.xlu2 %873  ;;  %v2553_v10 = vsel %vm2552_vm3, %v4233_v41, %v2549_v61  ;;  %v5670_v28 = vpop.xlane.xlu1 %2309  ;;  %v1840_v41 = vand.u32 2147483647, %v5587_v45  ;;  %v1839_v45 = vsel %vm5689_vm8, %v5616_v37, %v1835_v35  ;;  %v2567_v61 = vsel %vm2566_vm10, %v5624_v19, %v2563_v47 }
 0x376   : > { %v2558_v17 = vsel %vm2555_vm4, %v2557_v52, %v2553_v10  ;;  %v2745_v52 = vpack.c.bf16 %v5619_v18, %v5619_v18  ;;  %4238 = vrcp.f32 %v5670_v28  ;;  %v2572_v37 = vsel %vm2569_vm11, %v2571_v36, %v2567_v61 }
 0x377   : > { %v2730_v10 = vmul.f32 %v2558_v17, %v2417_v30  ;;  %v5701_v30 = vpop.xlane.xlu0 %2997  ;;  %vm1841_vm12 = vcmp.eq.f32.partialorder %v1840_v41, 8.507059e+37  ;;  %v2731_v29 = vmul.f32 %v2572_v37, %v2420_v6  ;;  %v3056_v41 = vpack.c.bf16 %v5710_v53, %v5710_v53 }
 0x378   : > { %v5704_v9 = vunpack.c.l.b16 %v2745_v52  ;;  %v1844_v17 = vsel %vm1841_vm12, %v1843_v14, %v1839_v45  ;;  %v3055_v6 = vpack.c.bf16 %v5718_v48, %v5718_v48  ;;  %vm2578_vm14 = vweird.f32 %v5670_v28 }
 0x379   : > { %v2746_v18 = vpack.c.bf16 %v2730_v10, %v2730_v10  ;;  %v2422_v55 = vpop.f32.mrf.mxu0  ;;  %v2029_v52 = vmul.f32 %v1844_v17, %v5421_v20  ;;  %v2030_v10 = vmul.f32 %v1858_v56, %v5440_v32  ;;  %v2582_v20 = vand.u32 2147483647, %v5670_v28 }
 0x37a   : > { %v2584_v32 = vand.u32 2147483648, %v5670_v28  ;;  %v3144_v17 = vunpack.c.l.b16 %v3055_v6  ;;  %v2747_v6 = vpack.c.bf16 %v2731_v29, %v2731_v29 }
 0x37b   : > { %v5706_v5 = vunpack.c.l.b16 %v2746_v18  ;;  %v5708_v35 = vpop.f32.mrf.mxu1  ;;  %v2045_v40 = vpack.c.bf16 %v2029_v52, %v2029_v52  ;;  %v2046_v22 = vpack.c.bf16 %v2030_v10, %v2030_v10  ;;  %v3145_v18 = vunpack.c.l.b16 %v3056_v41 }
 0x37c   : > { %7025 = vst [vmem:[#allocation33_spill] sm:$0xff] %v5708_v35  ;;  %v4239_v15 = vpop.eup %4238  ;;  %v2585_v41 = vor.u32 1.1754944e-38, %v2584_v32  ;;  %vm2583_vm3 = vcmp.eq.f32.partialorder %v2582_v20, 8.507059e+37  ;;  %v5741_v35 = vunpack.c.l.b16 %v2747_v6 }
 0x37d   : > { %v5716_v19 = vpop.xlane.xlu2 %3000  ;;  %v2574_v8 = vmul.f32 %v4239_v15, %v5670_v28  ;;  %v3517_v36 = vunpack.c.l.b16 %v2045_v40  ;;  %v3518_v46 = vunpack.c.l.b16 %v2046_v22  ;;  %vm2579_vm13 = vweird.f32 %v4239_v15  ;;  %v5733_v56 = vpop.xlane.xlu1 %870 }
 0x37e   : > { %vm2580_vm15 = vmor %vm2578_vm14, %vm2579_vm13  ;;  %vm3208_vm13 = vweird.f32 %v5632_v63 }
 0x37f   : > { %v2575_v45 = vsub.f32 1.0, %v2574_v8  ;;  %v2316_v14 = vpop.xlane.xlu0 %2315  ;;  %v3532_v52 = vpack.c.b16 %v3518_v46, %v3517_v36  ;;  %v3149_v8 = vpack.c.b16 %v3145_v18, %v3144_v17 }
 0x380   : > { %4240 = vrcp.f32 %v2316_v14  ;;  %v2610_v6 = vand.u32 2147483647, %v2316_v14  ;;  %vm2606_vm5 = vweird.f32 %v2316_v14 }
 0x381   : > { %v5727_v47 = vpop.f32.mrf.mxu0  ;;  %v2576_v37 = vmul.f32 %v4239_v15, %v2575_v45  ;;  %3541 = vrot.lane.b32.xlu2 %v3532_v52, %s4361_s20  ;;  %4242 = vrcp.f32 %v5632_v63  ;;  %4038 = vmatmul.msk.bf16.gmra.mxu1 %vm772_vm2, %v3149_v8  ;;  %v2612_v8 = vand.u32 2147483648, %v2316_v14 }
 0x382   : > { %vm2611_vm8 = vcmp.eq.f32.partialorder %v2610_v6, 8.507059e+37  ;;  %v3214_v6 = vand.u32 2147483648, %v5632_v63 }
 0x383   : > { %v5729_v61 = vpop.f32.mrf.mxu1  ;;  %v2577_v10 = vadd.f32 %v4239_v15, %v2576_v37 }
 0x384   : > { %7026 = vst [vmem:[#allocation34_spill] sm:$0xff] %v5729_v61 }
 0x385   : > { %v2313_v40 = vpop.xlane.xlu2 %2312  ;;  %v2581_v22 = vsel %vm2580_vm15, %v4239_v15, %v2577_v10  ;;  %v5745_v15 = vpop.xlane.xlu1 %1615 }
 0x386   : > { %v2586_v45 = vsel %vm2583_vm3, %v2585_v41, %v2581_v22  ;;  %4244 = vrcp.f32 %v2313_v40  ;;  %v4241_v28 = vpop.eup %4240  ;;  %v2598_v29 = vand.u32 2147483648, %v2313_v40  ;;  %vm2592_vm9 = vweird.f32 %v2313_v40 }
 0x387   : > { %v2732_v36 = vmul.f32 %v2586_v45, %v2422_v55  ;;  %v2602_v52 = vmul.f32 %v4241_v28, %v2316_v14  ;;  %v5747_v20 = vpop.eup %4242  ;;  %v7028_v55 = vld [vmem:[#allocation3_spill] sm:$0xff]  ;;  %vm2607_vm4 = vweird.f32 %v4241_v28  ;;  %4246 = vrcp.f32 %v5701_v30 }
 0x388   : > { %v884_v10 = vsel %vm772_vm2, %v7028_v55, 0.0  ;;  %vm2608_vm7 = vmor %vm2606_vm5, %vm2607_vm4  ;;  %4248 = vrcp.f32 %v5716_v19  ;;  %vm3209_vm12 = vweird.f32 %v5747_v20  ;;  %vm3222_vm4 = vweird.f32 %v5701_v30 }
 0x389   : > { %v2427_v50 = vpop.f32.mrf.mxu0  ;;  %v2748_v37 = vpack.c.bf16 %v2732_v36, %v2732_v36  ;;  %v2603_v32 = vsub.f32 1.0, %v2602_v52  ;;  %v3204_v36 = vmul.f32 %v5747_v20, %v5632_v63  ;;  %vm3210_vm14 = vmor %vm3208_vm13, %vm3209_vm12 }
 0x38b   : > { %v5739_v46 = vpop.f32.mrf.mxu1  ;;  %v5743_v18 = vunpack.c.l.b16 %v2748_v37  ;;  %v2604_v45 = vmul.f32 %v4241_v28, %v2603_v32  ;;  %v2613_v32 = vor.u32 1.1754944e-38, %v2612_v8 }
 0x38c   : > { %7027 = vst [vmem:[#allocation35_spill] sm:$0xff] %v5739_v46  ;;  %v4245_v17 = vpop.eup %4244  ;;  %v3205_v46 = vsub.f32 1.0, %v3204_v36  ;;  %v5785_v36 = vpop.xlane.xlu0 %3003 }
 0x38d   : > { %v2588_v41 = vmul.f32 %v4245_v17, %v2313_v40  ;;  %v2605_v61 = vadd.f32 %v4241_v28, %v2604_v45  ;;  %v5760_v55 = vpop.xlane.xlu2 %3006  ;;  %vm2593_vm6 = vweird.f32 %v4245_v17  ;;  %v5764_v14 = vpop.xlane.xlu1 %879  ;;  %4250 = vrcp.f32 %v5785_v36 }
 0x38e   : > { %vm2594_vm10 = vmor %vm2592_vm9, %vm2593_vm6  ;;  %v4247_v38 = vpop.eup %4246 }
 0x38f   : > { %v2589_v37 = vsub.f32 1.0, %v2588_v41  ;;  %v2609_v3 = vsel %vm2608_vm7, %v4241_v28, %v2605_v61  ;;  %vm3223_vm15 = vweird.f32 %v4247_v38 }
 0x390   : > { %v2614_v41 = vsel %vm2611_vm8, %v2613_v32, %v2609_v3  ;;  %v3206_v3 = vmul.f32 %v5747_v20, %v3205_v46  ;;  %v5793_v32 = vpop.eup %4248  ;;  %vm3224_vm5 = vmor %vm3222_vm4, %vm3223_vm15  ;;  %vm3236_vm8 = vweird.f32 %v5716_v19 }
 0x391   : > { %885 = vadd.xlane.f32.xlu1 %v884_v10  ;;  %v5753_v22 = vpop.f32.mrf.mxu0  ;;  %v2590_v51 = vmul.f32 %v4245_v17, %v2589_v37  ;;  %v2596_v10 = vand.u32 2147483647, %v2313_v40  ;;  %v2734_v45 = vmul.f32 %v2614_v41, %v2427_v50  ;;  %v2326_v37 = vsel %vm772_vm2, %v5383_v25, 0.0 }
 0x392   : > { %v3218_v50 = vmul.f32 %v4247_v38, %v5701_v30  ;;  %v1626_v25 = vsel %vm772_vm2, %v5241_v11, 0.0  ;;  %v3212_v11 = vand.u32 2147483647, %v5632_v63  ;;  %v3226_v63 = vand.u32 2147483647, %v5701_v30 }
 0x393   : > { %v5758_v52 = vpop.f32.mrf.mxu1  ;;  %v2591_v62 = vadd.f32 %v4245_v17, %v2590_v51  ;;  %vm2597_vm11 = vcmp.eq.f32.partialorder %v2596_v10, 8.507059e+37  ;;  %v2750_v51 = vpack.c.bf16 %v2734_v45, %v2734_v45  ;;  %vm3237_vm7 = vweird.f32 %v5793_v32 }
 0x394   : > { %7029 = vst [vmem:[#allocation3_spill] sm:$0xff] %v5758_v52  ;;  %v2599_v52 = vor.u32 1.1754944e-38, %v2598_v29  ;;  %882 = vadd.xlane.f32.xlu0 %v881_v39  ;;  %v3219_v46 = vsub.f32 1.0, %v3218_v50  ;;  %vm3213_vm3 = vcmp.eq.f32.partialorder %v3212_v11, 8.507059e+37  ;;  %v3228_v50 = vand.u32 2147483648, %v5701_v30  ;;  %v4251_v11 = vpop.eup %4250  ;;  %vm5836_vm9 = vmor %vm3236_vm8, %vm3237_vm7 }
 0x395   : > { %v2595_v61 = vsel %vm2594_vm10, %v4245_v17, %v2591_v62  ;;  %v5774_v29 = vpop.xlane.xlu2 %1618  ;;  %v5780_v17 = vunpack.c.l.b16 %v2750_v51  ;;  %v5795_v41 = vpop.xlane.xlu1 %2318  ;;  %vm3227_vm6 = vcmp.eq.f32.partialorder %v3226_v63, 8.507059e+37  ;;  %vm3251_vm10 = vweird.f32 %v4251_v11 }
 0x396   : > { %v2600_v8 = vsel %vm2597_vm11, %v2599_v52, %v2595_v61  ;;  %v3215_v61 = vor.u32 1.1754944e-38, %v3214_v6  ;;  %vm3250_vm11 = vweird.f32 %v5785_v36 }
 0x397   : > { %v2733_v31 = vmul.f32 %v2600_v8, %v5727_v47  ;;  %v3207_v47 = vadd.f32 %v5747_v20, %v3206_v3  ;;  %v3220_v8 = vmul.f32 %v4247_v38, %v3219_v46  ;;  %vm3252_vm13 = vmor %vm3250_vm11, %vm3251_vm10 }
 0x399   : > { %2327 = vadd.xlane.f32.xlu1 %v2326_v37  ;;  %v3112_v28 = vpop.f32.mrf.mxu0  ;;  %v2749_v39 = vpack.c.bf16 %v2733_v31, %v2733_v31  ;;  %v3211_v45 = vsel %vm3210_vm14, %v5747_v20, %v3207_v47  ;;  %v3232_v31 = vmul.f32 %v5793_v32, %v5716_v19  ;;  %v3221_v3 = vadd.f32 %v4247_v38, %v3220_v8 }
 0x39a   : > { %v3216_v51 = vsel %vm3213_vm3, %v3215_v61, %v3211_v45  ;;  %v3229_v47 = vor.u32 1.1754944e-38, %v3228_v50 }
 0x39b   : > { %v5770_v40 = vpop.f32.mrf.mxu1  ;;  %v5778_v62 = vunpack.c.l.b16 %v2749_v39  ;;  %v3427_v20 = vmul.f32 %v3216_v51, %v5753_v22  ;;  %v2323_v39 = vsel %vm772_vm2, %v5391_v54, 0.0  ;;  %v3233_v45 = vsub.f32 1.0, %v3232_v31 }
 0x39c   : > { %1627 = vadd.xlane.f32.xlu0 %v1626_v25  ;;  %v3225_v25 = vsel %vm3224_vm5, %v4247_v38, %v3221_v3  ;;  %v3026_v22 = vsel %vm772_vm2, %v5513_v58, 0.0  ;;  %v3246_v54 = vmul.f32 %v4251_v11, %v5785_v36  ;;  %v3242_v58 = vand.u32 2147483648, %v5716_v19 }
 0x39d   : > { %v5809_v46 = vpop.xlane.xlu2 %2321  ;;  %v3230_v61 = vsel %vm3227_vm6, %v3229_v47, %v3225_v25  ;;  %v3443_v8 = vpack.c.bf16 %v3427_v20, %v3427_v20  ;;  %v5813_v30 = vpop.xlane.xlu1 %3012  ;;  %v3234_v51 = vmul.f32 %v5793_v32, %v3233_v45  ;;  %v3240_v25 = vand.u32 2147483647, %v5716_v19 }
 0x39e   : > { %v3428_v52 = vmul.f32 %v3230_v61, %v3112_v28  ;;  %4252 = vrcp.f32 %v5813_v30  ;;  %v3247_v31 = vsub.f32 1.0, %v3246_v54  ;;  %v3023_v47 = vsel %vm772_vm2, %v5504_v21, 0.0 }
 0x39f   : > { %v3627_v63 = vunpack.c.l.b16 %v3443_v8  ;;  %v3235_v20 = vadd.f32 %v5793_v32, %v3234_v51  ;;  %v3243_v19 = vor.u32 1.1754944e-38, %v3242_v58  ;;  %v3256_v51 = vand.u32 2147483648, %v5785_v36 }
 0x3a0   : > { %v3444_v38 = vpack.c.bf16 %v3428_v52, %v3428_v52  ;;  %v3248_v8 = vmul.f32 %v4251_v11, %v3247_v31  ;;  %vm3241_vm12 = vcmp.eq.f32.partialorder %v3240_v25, 8.507059e+37  ;;  %vm3292_vm15 = vweird.f32 %v5813_v30 }
 0x3a1   : > { %v5791_v10 = vpop.f32.mrf.mxu0  ;;  %3027 = vadd.xlane.f32.xlu1 %v3026_v22  ;;  %v3239_v54 = vsel %vm5836_vm9, %v5793_v32, %v3235_v20 }
 0x3a2   : > { %v3628_v3 = vunpack.c.l.b16 %v3444_v38  ;;  %v3254_v38 = vand.u32 2147483647, %v5785_v36  ;;  %v3249_v21 = vadd.f32 %v4251_v11, %v3248_v8 }
 0x3a3   : > { %v5798_v37 = vpop.f32.mrf.mxu1 }
 0x3a4   : > { %7031 = vst [vmem:[#allocation2_spill] sm:$0xff] %v5798_v37  ;;  %2324 = vadd.xlane.f32.xlu0 %v2323_v39  ;;  %v3643_v50 = vpack.c.b16 %v3628_v3, %v3627_v63  ;;  %v4253_v22 = vpop.eup %4252  ;;  %v3244_v3 = vsel %vm3241_vm12, %v3243_v19, %v3239_v54  ;;  %v3253_v31 = vsel %vm3252_vm13, %v4251_v11, %v3249_v21  ;;  %vm3255_vm14 = vcmp.eq.f32.partialorder %v3254_v38, 8.507059e+37 }
 0x3a5   : > { %v5825_v39 = vpop.xlane.xlu2 %3015  ;;  %v3288_v63 = vmul.f32 %v4253_v22, %v5813_v30  ;;  %v3429_v32 = vmul.f32 %v3244_v3, %v5791_v10  ;;  %vm3293_vm3 = vweird.f32 %v4253_v22 }
 0x3a6   : > { %3651 = vrot.lane.b32.xlu2 %v3643_v50, %s4362_s22  ;;  %4254 = vrcp.f32 %v5825_v39  ;;  %v3257_v50 = vor.u32 1.1754944e-38, %v3256_v51  ;;  %vm3294_vm4 = vmor %vm3292_vm15, %vm3293_vm3  ;;  %vm3306_vm6 = vweird.f32 %v5825_v39 }
 0x3a7   : > { %v3289_v25 = vsub.f32 1.0, %v3288_v63 }
 0x3a8   : > { %v3258_v58 = vsel %vm3255_vm14, %v3257_v50, %v3253_v31 }
 0x3a9   : > { %v3117_v6 = vpop.f32.mrf.mxu0  ;;  %v3290_v3 = vmul.f32 %v4253_v22, %v3289_v25 }
 0x3aa   : > { %v3430_v36 = vmul.f32 %v3258_v58, %v3117_v6 }
 0x3ab   : > { %v5811_v37 = vpop.f32.mrf.mxu1  ;;  %v3291_v63 = vadd.f32 %v4253_v22, %v3290_v3 }
 0x3ac   : > { %7032 = vst [vmem:[#allocation36_spill] sm:$0xff] %v5811_v37  ;;  %v5834_v45 = vpop.xlane.xlu1 %3018  ;;  %3024 = vadd.xlane.f32.xlu0 %v3023_v47  ;;  %v4255_v20 = vpop.eup %4254  ;;  %v3445_v37 = vpack.c.bf16 %v3429_v32, %v3429_v32  ;;  %v3446_v11 = vpack.c.bf16 %v3430_v36, %v3430_v36  ;;  %v3296_v32 = vand.u32 2147483647, %v5813_v30  ;;  %v3298_v36 = vand.u32 2147483648, %v5813_v30 }
 0x3ad   : > { %4256 = vrcp.f32 %v5834_v45  ;;  %v3302_v54 = vmul.f32 %v4255_v20, %v5825_v39  ;;  %v3295_v25 = vsel %vm3294_vm4, %v4253_v22, %v3291_v63  ;;  %vm3307_vm7 = vweird.f32 %v4255_v20 }
 0x3ae   : > { %v3630_v19 = vunpack.c.l.b16 %v3446_v11  ;;  %v3629_v21 = vunpack.c.l.b16 %v3445_v37  ;;  %vm3297_vm5 = vcmp.eq.f32.partialorder %v3296_v32, 8.507059e+37  ;;  %vm3308_vm8 = vmor %vm3306_vm6, %vm3307_vm7  ;;  %v3310_v30 = vand.u32 2147483647, %v5825_v39 }
 0x3af   : > { %v3303_v51 = vsub.f32 1.0, %v3302_v54  ;;  %v3299_v54 = vor.u32 1.1754944e-38, %v3298_v36  ;;  %vm3320_vm11 = vweird.f32 %v5834_v45 }
 0x3b0   : > { %v3644_v50 = vpack.c.b16 %v3630_v19, %v3629_v21  ;;  %v7038_v19 = vpack.c.b16 %v5706_v5, %v5704_v9  ;;  %v3312_v21 = vand.u32 2147483648, %v5825_v39  ;;  %vm3311_vm9 = vcmp.eq.f32.partialorder %v3310_v30, 8.507059e+37 }
 0x3b1   : > { %v5820_v28 = vpop.f32.mrf.mxu0  ;;  %v3304_v11 = vmul.f32 %v4255_v20, %v3303_v51 }
 0x3b2   : > { %v3313_v63 = vor.u32 1.1754944e-38, %v3312_v21 }
 0x3b3   : > { %v5828_v52 = vpop.f32.mrf.mxu1 }
 0x3b4   : > { %7033 = vst [vmem:[#allocation37_spill] sm:$0xff] %v5828_v52  ;;  %v5852_v61 = vpop.xlane.xlu2 %3021  ;;  %v5856_v52 = vpop.eup %4256 }
 0x3b5   : > { %4258 = vrcp.f32 %v5852_v61  ;;  %v3316_v10 = vmul.f32 %v5856_v52, %v5834_v45  ;;  %vm3321_vm10 = vweird.f32 %v5856_v52  ;;  %vm3334_vm15 = vweird.f32 %v5852_v61 }
 0x3b6   : > { %vm3322_vm12 = vmor %vm3320_vm11, %vm3321_vm10  ;;  %v3338_v30 = vand.u32 2147483647, %v5852_v61  ;;  %4260 = vrcp.f32 %v5733_v56 }
 0x3b7   : > { %v3317_v58 = vsub.f32 1.0, %v3316_v10  ;;  %v3300_v10 = vsel %vm3297_vm5, %v3299_v54, %v3295_v25  ;;  %v3324_v25 = vand.u32 2147483647, %v5834_v45  ;;  %v3326_v54 = vand.u32 2147483648, %v5834_v45 }
 0x3b8   : > { %v3340_v45 = vand.u32 2147483648, %v5852_v61  ;;  %vm3339_vm4 = vcmp.eq.f32.partialorder %v3338_v30, 8.507059e+37  ;;  %4262 = vrcp.f32 %v5664_v44  ;;  %v4073_v30 = vld [vmem:[%s6946_s4] sm:$0xff]  ;;  %vm1878_vm5 = vweird.f32 %v5608_v34 }
 0x3b9   : > { %v5849_v47 = vpop.f32.mrf.mxu0  ;;  %v3318_v51 = vmul.f32 %v5856_v52, %v3317_v58  ;;  %vm3325_vm13 = vcmp.eq.f32.partialorder %v3324_v25, 8.507059e+37  ;;  %v7039_v25 = vld [vmem:[#allocation4_spill] sm:$0xff]  ;;  %4264 = vrcp.f32 %v5608_v34 }
 0x3ba   : > { %3653 = vrot.lane.b32.xlu1 %v3644_v50, %s4362_s22  ;;  %4266 = vrcp.f32 %v5635_v59 }
 0x3bb   : > { %v5854_v8 = vpop.f32.mrf.mxu1  ;;  %v4259_v6 = vpop.eup %4258 }
 0x3bc   : > { %7036 = vst [vmem:[#allocation38_spill] sm:$0xff] %v5854_v8  ;;  %v3330_v37 = vmul.f32 %v4259_v6, %v5852_v61  ;;  %vm3335_vm14 = vweird.f32 %v4259_v6  ;;  %v4074_v61 = vld [vmem:[%s6946_s4 + $0x8] sm:$0xff] }
 0x3bd   : > { %vm3336_vm3 = vmor %vm3334_vm15, %vm3335_vm14  ;;  %3767 = vmatpush.bf16.msra.mxu2 %v4074_v61  ;;  %vm1864_vm15 = vweird.f32 %v5635_v59 }
 0x3be   : > { %v3331_v36 = vsub.f32 1.0, %v3330_v37  ;;  %v3327_v37 = vor.u32 1.1754944e-38, %v3326_v54  ;;  %v887_v54 = vsel %vm772_vm2, %v7039_v25, 0.0 }
 0x3c0   : > { %3597 = vrot.lane.b32.xlu0 %v7038_v19, %s4360_s19 }
 0x3c1   : > { %v3125_v38 = vpop.f32.mrf.mxu0  ;;  %3768 = vmatpush.bf16.msra.mxu2 %v4073_v30  ;;  %v7040_v30 = vld [vmem:[#allocation5_spill] sm:$0xff] }
 0x3c2   : > { %v3433_v22 = vmul.f32 %v3300_v10, %v3125_v38 }
 0x3c3   : > { %v5862_v31 = vpop.f32.mrf.mxu1 }
 0x3c4   : > { %7037 = vst [vmem:[#allocation39_spill] sm:$0xff] %v5862_v31  ;;  %v3305_v31 = vadd.f32 %v4255_v20, %v3304_v11  ;;  %v3319_v11 = vadd.f32 %v5856_v52, %v3318_v51  ;;  %v3449_v9 = vpack.c.bf16 %v3433_v22, %v3433_v22 }
 0x3c6   : > { %v3309_v3 = vsel %vm3308_vm8, %v4255_v20, %v3305_v31  ;;  %v3323_v38 = vsel %vm3322_vm12, %v5856_v52, %v3319_v11  ;;  %v3332_v31 = vmul.f32 %v4259_v6, %v3331_v36  ;;  %v5883_v58 = vunpack.c.l.b16 %v3449_v9  ;;  %v5892_v9 = vpop.xlane.xlu0 %876 }
 0x3c7   : > { %v3314_v5 = vsel %vm3311_vm9, %v3313_v63, %v3309_v3  ;;  %v3328_v21 = vsel %vm3325_vm13, %v3327_v37, %v3323_v38  ;;  %vm1108_vm8 = vweird.f32 %v5733_v56  ;;  %vm1122_vm12 = vweird.f32 %v5664_v44 }
 0x3c8   : > { %v3333_v10 = vadd.f32 %v4259_v6, %v3332_v31  ;;  %v1632_v31 = vsel %vm772_vm2, %v5278_v16, 0.0 }
 0x3c9   : > { %v3127_v50 = vpop.f32.mrf.mxu0 }
 0x3ca   : > { %v3434_v39 = vmul.f32 %v3314_v5, %v3127_v50  ;;  %v3337_v22 = vsel %vm3336_vm3, %v4259_v6, %v3333_v10  ;;  %v3341_v50 = vor.u32 1.1754944e-38, %v3340_v45 }
 0x3cb   : > { %v3183_v32 = vpop.f32.mrf.mxu1 }
 0x3cc   : > { %v3450_v20 = vpack.c.bf16 %v3434_v39, %v3434_v39  ;;  %v3435_v51 = vmul.f32 %v3328_v21, %v3183_v32  ;;  %v3342_v63 = vsel %vm3339_vm4, %v3341_v50, %v3337_v22  ;;  %v2332_v50 = vsel %vm772_vm2, %v5419_v24, 0.0 }
 0x3ce   : > { %v5885_v19 = vunpack.c.l.b16 %v3450_v20  ;;  %v3451_v36 = vpack.c.bf16 %v3435_v51, %v3435_v51  ;;  %v5909_v20 = vpop.eup %4260  ;;  %v5911_v38 = vpop.xlane.xlu0 %3009 }
 0x3cf   : > { %888 = vadd.xlane.f32.xlu2 %v887_v54  ;;  %v5915_v37 = vpop.eup %4262  ;;  %v1104_v10 = vmul.f32 %v5909_v20, %v5733_v56  ;;  %4268 = vrcp.f32 %v5911_v38  ;;  %vm1109_vm6 = vweird.f32 %v5909_v20 }
 0x3d0   : > { %v5899_v39 = vunpack.c.l.b16 %v3451_v36  ;;  %v5923_v21 = vpop.eup %4264  ;;  %v1118_v51 = vmul.f32 %v5915_v37, %v5664_v44  ;;  %4270 = vrcp.f32 %v5760_v55  ;;  %vm1123_vm7 = vweird.f32 %v5915_v37  ;;  %vm5966_vm10 = vmor %vm1108_vm8, %vm1109_vm6 }
 0x3d1   : > { %v5925_v45 = vpop.eup %4266  ;;  %v1874_v16 = vmul.f32 %v5923_v21, %v5608_v34  ;;  %v1105_v22 = vsub.f32 1.0, %v1104_v10  ;;  %vm1879_vm9 = vweird.f32 %v5923_v21  ;;  %vm5977_vm13 = vmor %vm1122_vm12, %vm1123_vm7  ;;  %vm3264_vm12 = vweird.f32 %v5760_v55 }
 0x3d2   : > { %v1119_v36 = vsub.f32 1.0, %v1118_v51  ;;  %v890_v51 = vsel %vm772_vm2, %v7040_v30, 0.0  ;;  %vm1865_vm11 = vweird.f32 %v5925_v45  ;;  %vm6008_vm7 = vmor %vm1878_vm5, %vm1879_vm9  ;;  %vm3278_vm9 = vweird.f32 %v5911_v38 }
 0x3d3   : > { %v3185_v3 = vpop.f32.mrf.mxu1  ;;  %v1106_v25 = vmul.f32 %v5909_v20, %v1105_v22  ;;  %v1882_v22 = vand.u32 2147483647, %v5608_v34  ;;  %vm5994_vm3 = vmor %vm1864_vm15, %vm1865_vm11  ;;  %4272 = vrcp.f32 %v5764_v14 }
 0x3d4   : > { %v3436_v11 = vmul.f32 %v3342_v63, %v3185_v3  ;;  %v1860_v3 = vmul.f32 %v5925_v45, %v5635_v59  ;;  %v1120_v10 = vmul.f32 %v5915_v37, %v1119_v36  ;;  %4274 = vrcp.f32 %v5892_v9 }
 0x3d5   : > { %v5936_v63 = vpop.eup %4268  ;;  %vm1883_vm11 = vcmp.eq.f32.partialorder %v1882_v22, 8.507059e+37  ;;  %4276 = vrcp.f32 %v5643_v33 }
 0x3d6   : > { %v3452_v5 = vpack.c.bf16 %v3436_v11, %v3436_v11  ;;  %v5938_v11 = vpop.eup %4270  ;;  %v1861_v54 = vsub.f32 1.0, %v1860_v3  ;;  %v3274_v61 = vmul.f32 %v5936_v63, %v5911_v38  ;;  %v1107_v3 = vadd.f32 %v5909_v20, %v1106_v25 }
 0x3d7   : > { %1633 = vadd.xlane.f32.xlu2 %v1632_v31  ;;  %v1629_v31 = vsel %vm772_vm2, %v5282_v60, 0.0  ;;  %v3260_v24 = vmul.f32 %v5938_v11, %v5760_v55  ;;  %v1121_v30 = vadd.f32 %v5915_v37, %v1120_v10  ;;  %v1868_v25 = vand.u32 2147483647, %v5635_v59 }
 0x3d8   : > { %v5901_v6 = vunpack.c.l.b16 %v3452_v5  ;;  %v1875_v5 = vsub.f32 1.0, %v1874_v16  ;;  %v1862_v60 = vmul.f32 %v5925_v45, %v1861_v54  ;;  %v3275_v36 = vsub.f32 1.0, %v3274_v61 }
 0x3d9   : > { %v1128_v54 = vand.u32 2147483648, %v5664_v44  ;;  %v1126_v10 = vand.u32 2147483647, %v5664_v44  ;;  %v1870_v44 = vand.u32 2147483648, %v5635_v59  ;;  %vm5998_vm4 = vcmp.eq.f32.partialorder %v1868_v25, 8.507059e+37 }
 0x3da   : > { %v1876_v16 = vmul.f32 %v5923_v21, %v1875_v5  ;;  %v1112_v5 = vand.u32 2147483647, %v5733_v56  ;;  %v3276_v52 = vmul.f32 %v5936_v63, %v3275_v36  ;;  %v1884_v36 = vand.u32 2147483648, %v5608_v34 }
 0x3db   : > { %vm1127_vm6 = vcmp.eq.f32.partialorder %v1126_v10, 8.507059e+37  ;;  %v2329_v59 = vsel %vm772_vm2, %v5426_v13, 0.0  ;;  %vm3279_vm8 = vweird.f32 %v5936_v63  ;;  %v1871_v25 = vor.u32 1.1754944e-38, %v1870_v44 }
 0x3dc   : > { %v1877_v8 = vadd.f32 %v5923_v21, %v1876_v16  ;;  %vm1113_vm14 = vcmp.eq.f32.partialorder %v1112_v5, 8.507059e+37  ;;  %v3284_v34 = vand.u32 2147483648, %v5911_v38  ;;  %vm3265_vm5 = vweird.f32 %v5938_v11 }
 0x3dd   : > { %v1885_v10 = vor.u32 1.1754944e-38, %v1884_v36  ;;  %4278 = vrcp.f32 %v5745_v15 }
 0x3de   : > { %v1881_v13 = vsel %vm6008_vm7, %v5923_v21, %v1877_v8  ;;  %v3270_v8 = vand.u32 2147483648, %v5760_v55  ;;  %4280 = vrcp.f32 %v5774_v29 }
 0x3df   : > { %2333 = vadd.xlane.f32.xlu2 %v2332_v50  ;;  %v1114_v50 = vand.u32 2147483648, %v5733_v56  ;;  %v1111_v56 = vsel %vm5966_vm10, %v5909_v20, %v1107_v3  ;;  %v1125_v20 = vsel %vm5977_vm13, %v5915_v37, %v1121_v30  ;;  %v1129_v3 = vor.u32 1.1754944e-38, %v1128_v54  ;;  %v7051_v54 = vld [vmem:[#allocation18_spill] sm:$0xff]  ;;  %vm6033_vm10 = vmor %vm3278_vm9, %vm3279_vm8 }
 0x3e0   : > { %v3277_v30 = vadd.f32 %v5936_v63, %v3276_v52  ;;  %v3282_v52 = vand.u32 2147483647, %v5911_v38  ;;  %v3268_v38 = vand.u32 2147483647, %v5760_v55  ;;  %v1886_v44 = vsel %vm1883_vm11, %v1885_v10, %v1881_v13  ;;  %vm3266_vm13 = vmor %vm3264_vm12, %vm3265_vm5 }
 0x3e1   : > { %v1115_v32 = vor.u32 1.1754944e-38, %v1114_v50  ;;  %v1130_v5 = vsel %vm1127_vm6, %v1129_v3, %v1125_v20  ;;  %v3285_v20 = vor.u32 1.1754944e-38, %v3284_v34  ;;  %v3271_v22 = vor.u32 1.1754944e-38, %v3270_v8 }
 0x3e2   : > { %vm3269_vm15 = vcmp.eq.f32.partialorder %v3268_v38, 8.507059e+37  ;;  %vm1150_vm8 = vweird.f32 %v5764_v14  ;;  %vm1136_vm9 = vweird.f32 %v5892_v9 }
 0x3e3   : > { %v1116_v50 = vsel %vm1113_vm14, %v1115_v32, %v1111_v56  ;;  %vm3283_vm14 = vcmp.eq.f32.partialorder %v3282_v52, 8.507059e+37 }
 0x3e4   : > { %1630 = vadd.xlane.f32.xlu1 %v1629_v31  ;;  %v3029_v31 = vsel %vm772_vm2, %v5593_v4, 0.0  ;;  %v3261_v4 = vsub.f32 1.0, %v3260_v24  ;;  %v3032_v24 = vsel %vm772_vm2, %v5597_v2, 0.0  ;;  %v1327_v61 = vmul.f32 %v1116_v50, %v7051_v54  ;;  %v3596_v54 = vpop.permute.xlu1 %3595 }
 0x3e5   : > { %v2032_v2 = vmul.f32 %v1886_v44, %v5470_v49 }
 0x3e6   : > { %v1343_v3 = vpack.c.bf16 %v1327_v61, %v1327_v61 }
 0x3e7   : > { %3030 = vadd.xlane.f32.xlu2 %v3029_v31  ;;  %v6038_v31 = vpop.xlane.xlu0 %1621  ;;  %v2048_v13 = vpack.c.bf16 %v2032_v2, %v2032_v2  ;;  %v1142_v2 = vand.u32 2147483648, %v5892_v9 }
 0x3e8   : > { %v3475_v16 = vunpack.c.l.b16 %v1343_v3  ;;  %4282 = vrcp.f32 %v6038_v31 }
 0x3e9   : > { %v3520_v49 = vunpack.c.l.b16 %v2048_v13  ;;  %4284 = vrcp.f32 %v5795_v41 }
 0x3ea   : > { %891 = vadd.xlane.f32.xlu0 %v890_v51  ;;  %v1863_v51 = vadd.f32 %v5925_v45, %v1862_v60  ;;  %v3262_v60 = vmul.f32 %v5938_v11, %v3261_v4  ;;  %4286 = vrcp.f32 %v5809_v46 }
 0x3ec   : > { %3033 = vadd.xlane.f32.xlu1 %v3032_v24  ;;  %v1867_v37 = vsel %vm5994_vm3, %v5925_v45, %v1863_v51  ;;  %v3263_v4 = vadd.f32 %v5938_v11, %v3262_v60  ;;  %v6026_v45 = vpop.xlane.xlu2 %1624  ;;  %v1328_v51 = vmul.f32 %v1130_v5, %v5231_v12  ;;  %v3281_v24 = vsel %vm6033_vm10, %v5936_v63, %v3277_v30 }
 0x3ed   : > { %v1872_v56 = vsel %vm5998_vm4, %v1871_v25, %v1867_v37  ;;  %v3286_v50 = vsel %vm3283_vm14, %v3285_v20, %v3281_v24  ;;  %vm6967_vm3 = vcmask 130048   ;;  %vm6966_vm4 = vcmask 195584  }
 0x3ee   : > { %v3267_v60 = vsel %vm3266_vm13, %v5938_v11, %v3263_v4  ;;  %v2031_v12 = vmul.f32 %v1872_v56, %v5454_v7  ;;  %v1344_v36 = vpack.c.bf16 %v1328_v51, %v1328_v51  ;;  %v3432_v55 = vmul.f32 %v3286_v50, %v5849_v47 }
 0x3ef   : > { %v3272_v63 = vsel %vm3269_vm15, %v3271_v22, %v3267_v60  ;;  %v3540_v5 = vpop.permute.xlu0 %3539  ;;  %vm1892_vm15 = vweird.f32 %v5643_v33 }
 0x3f0   : > { %v2047_v37 = vpack.c.bf16 %v2031_v12, %v2031_v12  ;;  %v3476_v30 = vunpack.c.l.b16 %v1344_v36  ;;  %v3448_v11 = vpack.c.bf16 %v3432_v55, %v3432_v55  ;;  %v1156_v55 = vand.u32 2147483648, %v5764_v14 }
 0x3f2   : > { %2330 = vadd.xlane.f32.xlu0 %v2329_v59  ;;  %v3431_v59 = vmul.f32 %v3272_v63, %v5820_v28  ;;  %v3491_v7 = vpack.c.b16 %v3476_v30, %v3475_v16  ;;  %v3519_v34 = vunpack.c.l.b16 %v2047_v37  ;;  %v3632_v47 = vunpack.c.l.b16 %v3448_v11 }
 0x3f3   : > { %v7054_v28 = vpack.c.b16 %v5743_v18, %v5741_v35  ;;  %v4273_v35 = vpop.eup %4272  ;;  %v1154_v16 = vand.u32 2147483647, %v5764_v14  ;;  %v1157_v11 = vor.u32 1.1754944e-38, %v1156_v55 }
 0x3f4   : > { %v6052_v32 = vpop.permute.xlu2 %3541  ;;  %v3447_v25 = vpack.c.bf16 %v3431_v59, %v3431_v59  ;;  %v3669_v61 = vsel %vm6969_vm1, %v3491_v7, %v3540_v5  ;;  %v3533_v56 = vpack.c.b16 %v3520_v49, %v3519_v34  ;;  %v4275_v18 = vpop.eup %4274  ;;  %v1146_v38 = vmul.f32 %v4273_v35, %v5764_v14 }
 0x3f5   : > { %v3693_v52 = vsel %vm6967_vm3, %v3669_v61, %v3596_v54  ;;  %v1132_v24 = vmul.f32 %v4275_v18, %v5892_v9  ;;  %vm1151_vm6 = vweird.f32 %v4273_v35  ;;  %vm1137_vm7 = vweird.f32 %v4275_v18  ;;  %v6094_v54 = vpop.eup %4276 }
 0x3f6   : > { %v3631_v4 = vunpack.c.l.b16 %v3447_v25  ;;  %v1147_v44 = vsub.f32 1.0, %v1146_v38  ;;  %vm6077_vm5 = vmor %vm1150_vm8, %vm1151_vm6  ;;  %v1140_v59 = vand.u32 2147483647, %v5892_v9  ;;  %v1143_v5 = vor.u32 1.1754944e-38, %v1142_v2  ;;  %v6096_v61 = vpop.eup %4278 }
 0x3f7   : > { %v1133_v20 = vsub.f32 1.0, %v1132_v24  ;;  %vm1138_vm10 = vmor %vm1136_vm9, %vm1137_vm7  ;;  %vm1155_vm11 = vcmp.eq.f32.partialorder %v1154_v16, 8.507059e+37  ;;  %v7058_v24 = vld [vmem:[#allocation6_spill] sm:$0xff]  ;;  %vm1893_vm13 = vweird.f32 %v6094_v54  ;;  %vm1907_vm14 = vweird.f32 %v6096_v61 }
 0x3f8   : > { %v3645_v21 = vpack.c.b16 %v3632_v47, %v3631_v4  ;;  %v1148_v3 = vmul.f32 %v4273_v35, %v1147_v44  ;;  %vm1141_vm12 = vcmp.eq.f32.partialorder %v1140_v59, 8.507059e+37  ;;  %v1888_v47 = vmul.f32 %v6094_v54, %v5643_v33  ;;  %vm6144_vm6 = vmor %vm1892_vm15, %vm1893_vm13 }
 0x3f9   : > { %v1134_v60 = vmul.f32 %v4275_v18, %v1133_v20  ;;  %v1902_v4 = vmul.f32 %v6096_v61, %v5745_v15  ;;  %v893_v44 = vsel %vm772_vm2, %v7058_v24, 0.0  ;;  %v2338_v59 = vsel %vm772_vm2, %v5452_v0, 0.0 }
 0x3fa   : > { %v1149_v50 = vadd.f32 %v4273_v35, %v1148_v3  ;;  %v1912_v0 = vand.u32 2147483648, %v5745_v15  ;;  %vm1906_vm7 = vweird.f32 %v5745_v15 }
 0x3fb   : > { %v1135_v36 = vadd.f32 %v4275_v18, %v1134_v60  ;;  %vm6153_vm8 = vmor %vm1906_vm7, %vm1907_vm14  ;;  %vm1934_vm14 = vweird.f32 %v6038_v31 }
 0x3fc   : > { %v1153_v37 = vsel %vm6077_vm5, %v4273_v35, %v1149_v50  ;;  %v1903_v35 = vsub.f32 1.0, %v1902_v4  ;;  %v2624_v4 = vand.u32 2147483647, %v5795_v41 }
 0x3fd   : > { %v1139_v30 = vsel %vm1138_vm10, %v4275_v18, %v1135_v36  ;;  %v1158_v7 = vsel %vm1155_vm11, %v1157_v11, %v1153_v37  ;;  %v6110_v18 = vpop.eup %4280  ;;  %v1635_v36 = vsel %vm772_vm2, %v5318_v27, 0.0  ;;  %vm1920_vm10 = vweird.f32 %v5774_v29 }
 0x3fe   : > { %v1144_v14 = vsel %vm1141_vm12, %v1143_v5, %v1139_v30  ;;  %v1330_v34 = vmul.f32 %v1158_v7, %v5280_v26  ;;  %v7057_v26 = vld [vmem:[#allocation7_spill] sm:$0xff]  ;;  %v6112_v38 = vpop.eup %4282  ;;  %v1904_v60 = vmul.f32 %v6096_v61, %v1903_v35  ;;  %v1916_v50 = vmul.f32 %v6110_v18, %v5774_v29 }
 0x3ff   : > { %3599 = vrot.lane.b32.xlu2 %v7054_v28, %s4360_s19  ;;  %v1329_v9 = vmul.f32 %v1144_v14, %v5255_v42  ;;  %v1930_v55 = vmul.f32 %v6112_v38, %v6038_v31  ;;  %v1898_v30 = vand.u32 2147483648, %v5643_v33  ;;  %v6138_v14 = vpop.eup %4284  ;;  %vm1921_vm11 = vweird.f32 %v6110_v18 }
 0x400   : > { %v3652_v10 = vpop.permute.xlu2 %3651  ;;  %v1346_v28 = vpack.c.bf16 %v1330_v34, %v1330_v34  ;;  %v1905_v5 = vadd.f32 %v6096_v61, %v1904_v60  ;;  %vm1935_vm12 = vweird.f32 %v6112_v38  ;;  %vm6187_vm13 = vmor %vm1920_vm10, %vm1921_vm11  ;;  %vm2621_vm7 = vweird.f32 %v6138_v14 }
 0x401   : > { %v3710_v8 = vsel %vm6966_vm4, %v3693_v52, %v3652_v10  ;;  %v1345_v49 = vpack.c.bf16 %v1329_v9, %v1329_v9  ;;  %v896_v10 = vsel %vm772_vm2, %v7057_v26, 0.0  ;;  %v1931_v7 = vsub.f32 1.0, %v1930_v55  ;;  %v6142_v9 = vpop.eup %4286  ;;  %vm6198_vm15 = vmor %vm1934_vm14, %vm1935_vm12 }
 0x402   : > { %4047 = vmatmul.msk.bf16.vlgmr.msra.gmra.mxu2 %vm6968_vm0, %v3710_v8  ;;  %vm2634_vm11 = vweird.f32 %v5809_v46 }
 0x403   : > { %v3477_v8 = vunpack.c.l.b16 %v1345_v49  ;;  %v1910_v49 = vand.u32 2147483647, %v5745_v15  ;;  %v1913_v15 = vor.u32 1.1754944e-38, %v1912_v0 }
 0x404   : > { %v6072_v22 = vpop.xlane.xlu1 %885 }
 0x405   : > { %3655 = vrot.lane.b32.xlu1 %v3645_v21, %s4362_s22  ;;  %v3478_v21 = vunpack.c.l.b16 %v1346_v28  ;;  %v1638_v28 = vsel %vm772_vm2, %v5314_v23, 0.0  ;;  %v2616_v23 = vmul.f32 %v6138_v14, %v5795_v41  ;;  %vm1911_vm9 = vcmp.eq.f32.partialorder %v1910_v49, 8.507059e+37 }
 0x406   : > { %3543 = vrot.lane.b32.xlu0 %v3533_v56, %s4361_s20  ;;  %v1889_v56 = vsub.f32 1.0, %v1888_v47  ;;  %v1896_v47 = vand.u32 2147483647, %v5643_v33  ;;  %v1909_v33 = vsel %vm6153_vm8, %v6096_v61, %v1905_v5  ;;  %4288 = vrcp.f32 %v6072_v22 }
 0x407   : > { %v6066_v51 = vpop.xlane.xlu0 %882  ;;  %v3492_v3 = vpack.c.b16 %v3478_v21, %v3477_v8  ;;  %v1932_v8 = vmul.f32 %v6112_v38, %v1931_v7  ;;  %v2630_v21 = vmul.f32 %v6142_v9, %v5809_v46  ;;  %v1914_v61 = vsel %vm1911_vm9, %v1913_v15, %v1909_v33 }
 0x408   : > { %v1890_v20 = vmul.f32 %v6094_v54, %v1889_v56  ;;  %vm1897_vm5 = vcmp.eq.f32.partialorder %v1896_v47, 8.507059e+37  ;;  %4290 = vrcp.f32 %v6066_v51  ;;  %vm2635_vm9 = vweird.f32 %v6142_v9 }
 0x409   : > { %v3672_v2 = vsel %vm6969_vm1, %v3492_v3, %v6052_v32  ;;  %v1917_v32 = vsub.f32 1.0, %v1916_v50  ;;  %v2617_v3 = vsub.f32 1.0, %v2616_v23  ;;  %v1933_v60 = vadd.f32 %v6112_v38, %v1932_v8  ;;  %v7069_v23 = vld [vmem:[#allocation16_spill] sm:$0xff]  ;;  %vm6233_vm12 = vmor %vm2634_vm11, %vm2635_vm9 }
 0x40a   : > { %v1891_v11 = vadd.f32 %v6094_v54, %v1890_v20  ;;  %v1926_v20 = vand.u32 2147483648, %v5774_v29  ;;  %v1940_v50 = vand.u32 2147483648, %v6038_v31  ;;  %v3035_v33 = vsel %vm772_vm2, %v5718_v48, 0.0 }
 0x40b   : > { %v1918_v56 = vmul.f32 %v6110_v18, %v1917_v32  ;;  %v2638_v15 = vand.u32 2147483647, %v5809_v46  ;;  %4292 = vrcp.f32 %v6026_v45 }
 0x40c   : > { %v6090_v25 = vpop.xlane.xlu1 %2327  ;;  %v1895_v26 = vsel %vm6144_vm6, %v6094_v54, %v1891_v11  ;;  %v3038_v54 = vsel %vm772_vm2, %v5710_v53, 0.0  ;;  %v2631_v53 = vsub.f32 1.0, %v2630_v21  ;;  %v1941_v5 = vor.u32 1.1754944e-38, %v1940_v50  ;;  %v7070_v21 = vld [vmem:[#allocation17_spill] sm:$0xff] }
 0x40d   : > { %v1919_v24 = vadd.f32 %v6110_v18, %v1918_v56  ;;  %vm2639_vm14 = vcmp.eq.f32.partialorder %v2638_v15, 8.507059e+37  ;;  %4294 = vrcp.f32 %v6090_v25  ;;  %v7080_v15 = vpack.c.b16 %v5780_v17, %v5778_v62 }
 0x40e   : > { %v2632_v11 = vmul.f32 %v6142_v9, %v2631_v53 }
 0x40f   : > { %v6070_v12 = vpop.xlane.xlu0 %1627 }
 0x414   : > { %v6106_v42 = vpop.xlane.xlu1 %3027 }
 0x417   : > { %v6088_v13 = vpop.xlane.xlu0 %2324 }
 0x418   : > { %4296 = vrcp.f32 %v6088_v13 }
 0x419   : > { %4298 = vrcp.f32 %v6070_v12 }
 0x41a   : > { %4300 = vrcp.f32 %v6106_v42 }
 0x41f   : > { %v6104_v52 = vpop.xlane.xlu0 %3024 }
 0x420   : > { %4302 = vrcp.f32 %v6104_v52 }
 0x428   : > { %897 = vadd.xlane.f32.xlu2 %v896_v10  ;;  %v1899_v10 = vor.u32 1.1754944e-38, %v1898_v30  ;;  %v2618_v30 = vmul.f32 %v6138_v14, %v2617_v3 }
 0x42a   : > { %v1900_v35 = vsel %vm1897_vm5, %v1899_v10, %v1895_v26  ;;  %vm2620_vm5 = vweird.f32 %v5795_v41  ;;  %v2626_v26 = vand.u32 2147483648, %v5795_v41  ;;  %v2640_v10 = vand.u32 2147483648, %v5809_v46 }
 0x42b   : > { %v2033_v55 = vmul.f32 %v1900_v35, %v5477_v43  ;;  %vm6225_vm10 = vmor %vm2620_vm5, %vm2621_vm7  ;;  %vm1164_vm5 = vweird.f32 %v6066_v51 }
 0x42c   : > { %v3654_v16 = vpop.permute.xlu1 %3653  ;;  %v2641_v3 = vor.u32 1.1754944e-38, %v2640_v10 }
 0x42f   : > { %1636 = vadd.xlane.f32.xlu1 %v1635_v36  ;;  %v2335_v36 = vsel %vm772_vm2, %v5456_v57, 0.0  ;;  %v1923_v57 = vsel %vm6187_vm13, %v6110_v18, %v1919_v24  ;;  %vm2625_vm13 = vcmp.eq.f32.partialorder %v2624_v4, 8.507059e+37 }
 0x430   : > { %894 = vadd.xlane.f32.xlu0 %v893_v44  ;;  %2339 = vadd.xlane.f32.xlu2 %v2338_v59  ;;  %v1924_v44 = vand.u32 2147483647, %v5774_v29  ;;  %v6193_v59 = vpop.eup %4288 }
 0x431   : > { %v1174_v34 = vmul.f32 %v6193_v59, %v6072_v22 }
 0x432   : > { %v3598_v63 = vpop.permute.xlu0 %3597  ;;  %vm1925_vm6 = vcmp.eq.f32.partialorder %v1924_v44, 8.507059e+37 }
 0x433   : > { %v3695_v37 = vsel %vm6967_vm3, %v3672_v2, %v3598_v63  ;;  %v2034_v2 = vmul.f32 %v1914_v61, %v5490_v1  ;;  %v2049_v1 = vpack.c.bf16 %v2033_v55, %v2033_v55  ;;  %v1175_v48 = vsub.f32 1.0, %v1174_v34 }
 0x434   : > { %v3712_v27 = vsel %vm6966_vm4, %v3695_v37, %v3654_v16  ;;  %v1938_v16 = vand.u32 2147483647, %v6038_v31  ;;  %v6202_v37 = vpop.eup %4290  ;;  %v1937_v31 = vsel %vm6198_vm15, %v6112_v38, %v1933_v60  ;;  %v2619_v38 = vadd.f32 %v6138_v14, %v2618_v30 }
 0x435   : > { %4048 = vmatmul.msk.bf16.gmra.mxu2 %vm6968_vm0, %v3712_v27  ;;  %v2050_v29 = vpack.c.bf16 %v2034_v2, %v2034_v2  ;;  %v1927_v27 = vor.u32 1.1754944e-38, %v1926_v20  ;;  %v3521_v18 = vunpack.c.l.b16 %v2049_v1  ;;  %v1160_v47 = vmul.f32 %v6202_v37, %v6066_v51 }
 0x436   : > { %vm1939_vm8 = vcmp.eq.f32.partialorder %v1938_v16, 8.507059e+37  ;;  %v2623_v61 = vsel %vm6225_vm10, %v6138_v14, %v2619_v38  ;;  %v2627_v20 = vor.u32 1.1754944e-38, %v2626_v26  ;;  %v1176_v55 = vmul.f32 %v6193_v59, %v1175_v48  ;;  %v7074_v16 = vld [vmem:[#allocation3_spill] sm:$0xff]  ;;  %v7079_v26 = vld [vmem:[#allocation21_spill] sm:$0xff] }
 0x437   : > { %v3522_v32 = vunpack.c.l.b16 %v2050_v29  ;;  %v1928_v0 = vsel %vm1925_vm6, %v1927_v27, %v1923_v57  ;;  %v1942_v7 = vsel %vm1939_vm8, %v1941_v5, %v1937_v31  ;;  %v1161_v35 = vsub.f32 1.0, %v1160_v47 }
 0x438   : > { %1639 = vadd.xlane.f32.xlu0 %v1638_v28  ;;  %3039 = vadd.xlane.f32.xlu2 %v3038_v54  ;;  %v2633_v28 = vadd.f32 %v6142_v9, %v2632_v11  ;;  %v2035_v8 = vmul.f32 %v1928_v0, %v7069_v23  ;;  %v2036_v41 = vmul.f32 %v1942_v7, %v7070_v21  ;;  %vm1179_vm15 = vweird.f32 %v6193_v59 }
 0x439   : > { %v3534_v49 = vpack.c.b16 %v3522_v32, %v3521_v18  ;;  %v2628_v50 = vsel %vm2625_vm13, %v2627_v20, %v2623_v61  ;;  %v1162_v14 = vmul.f32 %v6202_v37, %v1161_v35  ;;  %v1177_v43 = vadd.f32 %v6193_v59, %v1176_v55 }
 0x43a   : > { %v2637_v24 = vsel %vm6233_vm12, %v6142_v9, %v2633_v28  ;;  %v2051_v46 = vpack.c.bf16 %v2035_v8, %v2035_v8  ;;  %v2052_v44 = vpack.c.bf16 %v2036_v41, %v2036_v41  ;;  %v7073_v9 = vld [vmem:[#allocation35_spill] sm:$0xff]  ;;  %vm1178_vm6 = vweird.f32 %v6072_v22  ;;  %v7078_v28 = vld [vmem:[#allocation20_spill] sm:$0xff] }
 0x43b   : > { %v2735_v63 = vmul.f32 %v2628_v50, %v7073_v9  ;;  %v1163_v1 = vadd.f32 %v6202_v37, %v1162_v14  ;;  %vm1165_vm7 = vweird.f32 %v6202_v37  ;;  %v1184_v30 = vand.u32 2147483648, %v6072_v22  ;;  %vm6257_vm8 = vmor %vm1178_vm6, %vm1179_vm15 }
 0x43c   : > { %v3523_v60 = vunpack.c.l.b16 %v2051_v46  ;;  %v3524_v53 = vunpack.c.l.b16 %v2052_v44  ;;  %v1170_v27 = vand.u32 2147483648, %v6066_v51  ;;  %v1182_v18 = vand.u32 2147483647, %v6072_v22  ;;  %vm1166_vm9 = vmor %vm1164_vm5, %vm1165_vm7 }
 0x43d   : > { %v2751_v31 = vpack.c.bf16 %v2735_v63, %v2735_v63  ;;  %v1168_v32 = vand.u32 2147483647, %v6066_v51  ;;  %v7077_v0 = vpack.c.b16 %v5885_v19, %v5883_v58  ;;  %v1181_v47 = vsel %vm6257_vm8, %v6193_v59, %v1177_v43  ;;  %v6278_v59 = vpop.eup %4292 }
 0x43e   : > { %v3535_v2 = vpack.c.b16 %v3524_v53, %v3523_v60  ;;  %v1167_v22 = vsel %vm1166_vm9, %v6202_v37, %v1163_v1  ;;  %v1171_v51 = vor.u32 1.1754944e-38, %v1170_v27  ;;  %vm1183_vm10 = vcmp.eq.f32.partialorder %v1182_v18, 8.507059e+37  ;;  %v6280_v37 = vpop.eup %4294 }
 0x43f   : > { %v3579_v7 = vunpack.c.l.b16 %v2751_v31  ;;  %vm1169_vm11 = vcmp.eq.f32.partialorder %v1168_v32, 8.507059e+37  ;;  %v6284_v56 = vpop.eup %4296  ;;  %v1944_v41 = vmul.f32 %v6278_v59, %v6026_v45  ;;  %v2658_v54 = vmul.f32 %v6280_v37, %v6090_v25 }
 0x440   : > { %2336 = vadd.xlane.f32.xlu0 %v2335_v36  ;;  %v2642_v36 = vsel %vm2639_vm14, %v2641_v3, %v2637_v24  ;;  %v1172_v58 = vsel %vm1169_vm11, %v1171_v51, %v1167_v22  ;;  %v6291_v23 = vpop.eup %4298  ;;  %v2644_v48 = vmul.f32 %v6284_v56, %v6088_v13  ;;  %vm1949_vm12 = vweird.f32 %v6278_v59 }
 0x441   : > { %v2736_v57 = vmul.f32 %v2642_v36, %v7074_v16  ;;  %v1331_v4 = vmul.f32 %v1172_v58, %v7078_v28  ;;  %v1958_v35 = vmul.f32 %v6291_v23, %v6070_v12  ;;  %v1945_v17 = vsub.f32 1.0, %v1944_v41  ;;  %v7093_v41 = vld [vmem:[#allocation30_spill] sm:$0xff] }
 0x442   : > { %v6253_v29 = vpop.xlane.xlu2 %888  ;;  %v2659_v24 = vsub.f32 1.0, %v2658_v54  ;;  %v2645_v46 = vsub.f32 1.0, %v2644_v48  ;;  %vm1948_vm13 = vweird.f32 %v6026_v45  ;;  %v1954_v9 = vand.u32 2147483648, %v6026_v45 }
 0x443   : > { %v2752_v11 = vpack.c.bf16 %v2736_v57, %v2736_v57  ;;  %v1347_v8 = vpack.c.bf16 %v1331_v4, %v1331_v4  ;;  %v1959_v44 = vsub.f32 1.0, %v1958_v35  ;;  %v1946_v60 = vmul.f32 %v6278_v59, %v1945_v17  ;;  %vm6327_vm7 = vmor %vm1948_vm13, %vm1949_vm12 }
 0x444   : > { %v2660_v50 = vmul.f32 %v6280_v37, %v2659_v24  ;;  %v2646_v36 = vmul.f32 %v6284_v56, %v2645_v46  ;;  %vm2663_vm14 = vweird.f32 %v6280_v37  ;;  %vm2662_vm15 = vweird.f32 %v6090_v25 }
 0x445   : > { %v3580_v34 = vunpack.c.l.b16 %v2752_v11  ;;  %v6301_v61 = vunpack.c.l.b16 %v1347_v8  ;;  %v1960_v55 = vmul.f32 %v6291_v23, %v1959_v44  ;;  %vm2649_vm6 = vweird.f32 %v6284_v56  ;;  %vm6339_vm5 = vmor %vm2662_vm15, %vm2663_vm14  ;;  %v7092_v8 = vld [vmem:[#allocation29_spill] sm:$0xff] }
 0x446   : > { %v2661_v63 = vadd.f32 %v6280_v37, %v2660_v50  ;;  %v2647_v16 = vadd.f32 %v6284_v56, %v2646_v36  ;;  %v2668_v43 = vand.u32 2147483648, %v6090_v25  ;;  %vm1963_vm8 = vweird.f32 %v6291_v23 }
 0x447   : > { %v3591_v38 = vpack.c.b16 %v3580_v34, %v3579_v7  ;;  %v1961_v1 = vadd.f32 %v6291_v23, %v1960_v55  ;;  %v7083_v27 = vpack.c.b16 %v5901_v6, %v5899_v39  ;;  %v2666_v11 = vand.u32 2147483647, %v6090_v25 }
 0x448   : > { %3036 = vadd.xlane.f32.xlu0 %v3035_v33  ;;  %3545 = vrot.lane.b32.xlu1 %v3534_v49, %s4361_s20  ;;  %v1185_v49 = vor.u32 1.1754944e-38, %v1184_v30  ;;  %v2654_v30 = vand.u32 2147483648, %v6088_v13  ;;  %v1968_v5 = vand.u32 2147483648, %v6070_v12  ;;  %vm2648_vm9 = vweird.f32 %v6088_v13 }
 0x449   : > { %v2652_v18 = vand.u32 2147483647, %v6088_v13  ;;  %v1952_v32 = vand.u32 2147483647, %v6026_v45  ;;  %vm6352_vm11 = vmor %vm2648_vm9, %vm2649_vm6  ;;  %v2665_v13 = vsel %vm6339_vm5, %v6280_v37, %v2661_v63  ;;  %v2669_v7 = vor.u32 1.1754944e-38, %v2668_v43 }
 0x44a   : > { %v1186_v19 = vsel %vm1183_vm10, %v1185_v49, %v1181_v47  ;;  %v6282_v33 = vpop.xlane.xlu2 %1633  ;;  %vm1962_vm10 = vweird.f32 %v6070_v12  ;;  %v2655_v47 = vor.u32 1.1754944e-38, %v2654_v30  ;;  %v1955_v49 = vor.u32 1.1754944e-38, %v1954_v9  ;;  %v6434_v45 = vld [vmem:[%s6947_s5] ss:$0 sm:$0xff] }
 0x44b   : > { %v1332_v10 = vmul.f32 %v1186_v19, %v7079_v26  ;;  %vm6362_vm12 = vmor %vm1962_vm10, %vm1963_vm8  ;;  %vm2667_vm13 = vcmp.eq.f32.partialorder %v2666_v11, 8.507059e+37  ;;  %v1969_v51 = vor.u32 1.1754944e-38, %v1968_v5  ;;  %vm2653_vm14 = vcmp.eq.f32.partialorder %v2652_v18, 8.507059e+37  ;;  %v7090_v26 = vld [vmem:[#allocation8_spill] sm:$0xff]  ;;  %v3188_v11 = vpop.f32.mrf.mxu1 }
 0x44c   : > { %v1965_v34 = vsel %vm6362_vm12, %v6291_v23, %v1961_v1  ;;  %vm1953_vm15 = vcmp.eq.f32.partialorder %v1952_v32, 8.507059e+37  ;;  %v7095_v32 = vld [vmem:[#allocation9_spill] sm:$0xff]  ;;  %vm3362_vm5 = vweird.f32 %v6106_v42  ;;  %vm3348_vm10 = vweird.f32 %v6104_v52 }
 0x44d   : > { %v1348_v21 = vpack.c.bf16 %v1332_v10, %v1332_v10  ;;  %v899_v10 = vsel %vm772_vm2, %v7090_v26, 0.0 }
 0x44f   : > { %v6303_v62 = vunpack.c.l.b16 %v1348_v21 }
 0x450   : > { %3657 = vrot.lane.b32.xlu2 %v7077_v0, %s4362_s22  ;;  %v1966_v0 = vand.u32 2147483647, %v6070_v12  ;;  %v2651_v12 = vsel %vm6352_vm11, %v6284_v56, %v2647_v16  ;;  %v7091_v56 = vld [vmem:[#allocation2_spill] sm:$0xff] }
 0x451   : > { %v3493_v3 = vpack.c.b16 %v6303_v62, %v6301_v61  ;;  %v2656_v58 = vsel %vm2653_vm14, %v2655_v47, %v2651_v12  ;;  %v7094_v61 = vld [vmem:[#allocation10_spill] sm:$0xff] }
 0x452   : > { %v6306_v20 = vpop.xlane.xlu2 %2333  ;;  %vm1967_vm6 = vcmp.eq.f32.partialorder %v1966_v0, 8.507059e+37  ;;  %v2737_v37 = vmul.f32 %v2656_v58, %v5770_v40  ;;  %v908_v62 = vsel %vm772_vm2, %v7094_v61, 0.0  ;;  %v902_v0 = vsel %vm772_vm2, %v7095_v32, 0.0 }
 0x453   : > { %v1970_v4 = vsel %vm1967_vm6, %v1969_v51, %v1965_v34  ;;  %v3352_v34 = vand.u32 2147483647, %v6104_v52  ;;  %v1996_v32 = vand.u32 2147483648, %v6282_v33 }
 0x454   : > { %v2038_v54 = vmul.f32 %v1970_v4, %v7093_v41  ;;  %v2753_v48 = vpack.c.bf16 %v2737_v37, %v2737_v37 }
 0x456   : > { %v2054_v44 = vpack.c.bf16 %v2038_v54, %v2038_v54  ;;  %v6398_v36 = vunpack.c.l.b16 %v2753_v48 }
 0x457   : > { %v6316_v14 = vpop.xlane.xlu1 %1630 }
 0x458   : > { %3547 = vrot.lane.b32.xlu2 %v3535_v2, %s4361_s20  ;;  %v1947_v2 = vadd.f32 %v6278_v59, %v1946_v60  ;;  %v6405_v16 = vunpack.c.l.b16 %v2054_v44  ;;  %4304 = vrcp.f32 %v6316_v14  ;;  %vm1976_vm6 = vweird.f32 %v6316_v14 }
 0x459   : > { %4306 = vrcp.f32 %v6282_v33 }
 0x45a   : > { %v1951_v6 = vsel %vm6327_vm7, %v6278_v59, %v1947_v2  ;;  %v6370_v25 = vpop.xlane.xlu2 %3030  ;;  %v6382_v59 = vpop.eup %4300 }
 0x45b   : > { %v1956_v28 = vsel %vm1953_vm15, %v1955_v49, %v1951_v6  ;;  %v6386_v23 = vpop.eup %4302  ;;  %v3358_v17 = vmul.f32 %v6382_v59, %v6106_v42  ;;  %vm3363_vm7 = vweird.f32 %v6382_v59  ;;  %v3368_v6 = vand.u32 2147483648, %v6106_v42 }
 0x45c   : > { %3601 = vrot.lane.b32.xlu0 %v7080_v15, %s4360_s19  ;;  %v2037_v21 = vmul.f32 %v1956_v28, %v7092_v8  ;;  %v3344_v60 = vmul.f32 %v6386_v23, %v6104_v52  ;;  %vm3349_vm8 = vweird.f32 %v6386_v23  ;;  %vm6436_vm9 = vmor %vm3362_vm5, %vm3363_vm7  ;;  %vm1990_vm7 = vweird.f32 %v6282_v33 }
 0x45d   : > { %v6311_v53 = vpop.xlane.xlu0 %891  ;;  %v3359_v1 = vsub.f32 1.0, %v3358_v17  ;;  %vm6445_vm11 = vmor %vm3348_vm10, %vm3349_vm8  ;;  %v3369_v58 = vor.u32 1.1754944e-38, %v3368_v6  ;;  %v1997_v6 = vor.u32 1.1754944e-38, %v1996_v32 }
 0x45e   : > { %v2053_v46 = vpack.c.bf16 %v2037_v21, %v2037_v21  ;;  %v3345_v30 = vsub.f32 1.0, %v3344_v60  ;;  %v6425_v39 = vpop.eup %4304 }
 0x45f   : > { %v6378_v19 = vpop.xlane.xlu1 %3033  ;;  %v6443_v47 = vpop.eup %4306  ;;  %vm1977_vm14 = vweird.f32 %v6425_v39 }
 0x460   : > { %3603 = vrot.lane.b32.xlu2 %v3591_v38, %s4360_s19  ;;  %v2670_v38 = vsel %vm2667_vm13, %v2669_v7, %v2665_v13  ;;  %v6403_v63 = vunpack.c.l.b16 %v2053_v46  ;;  %v3346_v31 = vmul.f32 %v6386_v23, %v3345_v30  ;;  %v3354_v13 = vand.u32 2147483648, %v6104_v52  ;;  %vm1978_vm8 = vmor %vm1976_vm6, %vm1977_vm14 }
 0x461   : > { %v2738_v15 = vmul.f32 %v2670_v38, %v7091_v56  ;;  %v3366_v7 = vand.u32 2147483647, %v6106_v42  ;;  %v1972_v52 = vmul.f32 %v6425_v39, %v6316_v14  ;;  %vm3353_vm13 = vcmp.eq.f32.partialorder %v3352_v34, 8.507059e+37 }
 0x462   : > { %v3600_v40 = vpop.permute.xlu2 %3599  ;;  %v3347_v18 = vadd.f32 %v6386_v23, %v3346_v31  ;;  %v3355_v28 = vor.u32 1.1754944e-38, %v3354_v13  ;;  %v1986_v26 = vmul.f32 %v6443_v47, %v6282_v33  ;;  %vm1991_vm15 = vweird.f32 %v6443_v47 }
 0x463   : > { %v2754_v35 = vpack.c.bf16 %v2738_v15, %v2738_v15  ;;  %vm3367_vm12 = vcmp.eq.f32.partialorder %v3366_v7, 8.507059e+37  ;;  %v1973_v37 = vsub.f32 1.0, %v1972_v52  ;;  %v3190_v15 = vpop.f32.mrf.mxu1  ;;  %vm1992_vm5 = vmor %vm1990_vm7, %vm1991_vm15  ;;  %vm2690_vm15 = vweird.f32 %v6306_v20 }
 0x464   : > { %v3351_v42 = vsel %vm6445_vm11, %v6386_v23, %v3347_v18  ;;  %v1987_v8 = vsub.f32 1.0, %v1986_v26  ;;  %v1994_v18 = vand.u32 2147483647, %v6282_v33 }
 0x465   : > { %v6376_v22 = vpop.xlane.xlu0 %2330  ;;  %v6400_v55 = vunpack.c.l.b16 %v2754_v35  ;;  %v1974_v54 = vmul.f32 %v6425_v39, %v1973_v37 }
 0x466   : > { %4308 = vrcp.f32 %v6376_v22  ;;  %v1988_v60 = vmul.f32 %v6443_v47, %v1987_v8  ;;  %vm1995_vm10 = vcmp.eq.f32.partialorder %v1994_v18, 8.507059e+37  ;;  %v2680_v49 = vand.u32 2147483647, %v6376_v22 }
 0x467   : > { %v3592_v43 = vpack.c.b16 %v6400_v55, %v6398_v36  ;;  %4310 = vrcp.f32 %v6306_v20  ;;  %v3380_v18 = vand.u32 2147483647, %v6370_v25 }
 0x468   : > { %3659 = vrot.lane.b32.xlu2 %v7083_v27, %s4362_s22  ;;  %v3360_v27 = vmul.f32 %v6382_v59, %v3359_v1  ;;  %4312 = vrcp.f32 %v6378_v19  ;;  %v1989_v31 = vadd.f32 %v6443_v47, %v1988_v60  ;;  %vm2681_vm7 = vcmp.eq.f32.partialorder %v2680_v49, 8.507059e+37 }
 0x469   : > { %4314 = vrcp.f32 %v6370_v25 }
 0x46a   : > { %v3361_v5 = vadd.f32 %v6382_v59, %v3360_v27  ;;  %v1982_v27 = vand.u32 2147483648, %v6316_v14  ;;  %4316 = vrcp.f32 %v6311_v53  ;;  %v1993_v33 = vsel %vm1992_vm5, %v6443_v47, %v1989_v31 }
 0x46b   : > { %4318 = vrcp.f32 %v6253_v29  ;;  %v1998_v34 = vsel %vm1995_vm10, %v1997_v6, %v1993_v33  ;;  %vm3390_vm5 = vweird.f32 %v6378_v19  ;;  %v3382_v31 = vand.u32 2147483648, %v6370_v25  ;;  %v7114_v33 = vld [vmem:[#allocation12_spill] sm:$0xff] }
 0x46c   : > { %v3365_v51 = vsel %vm6436_vm9, %v6382_v59, %v3361_v5  ;;  %v3356_v59 = vsel %vm3353_vm13, %v3355_v28, %v3351_v42  ;;  %v6469_v56 = vpop.eup %4308  ;;  %vm2676_vm13 = vweird.f32 %v6376_v22  ;;  %v7101_v42 = vld [vmem:[#allocation31_spill] sm:$0xff] }
 0x46d   : > { %v6471_v23 = vpop.eup %4310  ;;  %v3437_v21 = vmul.f32 %v3356_v59, %v3188_v11  ;;  %v2672_v48 = vmul.f32 %v6469_v56, %v6376_v22  ;;  %v1980_v11 = vand.u32 2147483647, %v6316_v14  ;;  %vm2677_vm11 = vweird.f32 %v6469_v56 }
 0x46e   : > { %v2686_v46 = vmul.f32 %v6471_v23, %v6306_v20  ;;  %v6488_v1 = vpop.eup %4312  ;;  %vm6534_vm14 = vmor %vm2676_vm13, %vm2677_vm11  ;;  %vm3376_vm11 = vweird.f32 %v6370_v25  ;;  %vm1192_vm13 = vweird.f32 %v6253_v29 }
 0x46f   : > { %v3453_v17 = vpack.c.bf16 %v3437_v21, %v3437_v21  ;;  %v2673_v61 = vsub.f32 1.0, %v2672_v48  ;;  %v6499_v5 = vpop.eup %4314  ;;  %v3386_v55 = vmul.f32 %v6488_v1, %v6378_v19  ;;  %vm1981_vm9 = vcmp.eq.f32.partialorder %v1980_v11, 8.507059e+37 }
 0x470   : > { %v2687_v30 = vsub.f32 1.0, %v2686_v46  ;;  %vm3377_vm10 = vweird.f32 %v6499_v5 }
 0x471   : > { %v2674_v14 = vmul.f32 %v6469_v56, %v2673_v61  ;;  %v3387_v12 = vsub.f32 1.0, %v3386_v55  ;;  %v7111_v55 = vld [vmem:[#allocation37_spill] sm:$0xff] }
 0x472   : > { %900 = vadd.xlane.f32.xlu1 %v899_v10  ;;  %v3370_v10 = vsel %vm3367_vm12, %v3369_v58, %v3365_v51  ;;  %vm2691_vm12 = vweird.f32 %v6471_v23  ;;  %v2696_v58 = vand.u32 2147483648, %v6306_v20 }
 0x473   : > { %v3438_v41 = vmul.f32 %v3370_v10, %v3190_v15  ;;  %v2675_v7 = vadd.f32 %v6469_v56, %v2674_v14  ;;  %v3388_v26 = vmul.f32 %v6488_v1, %v3387_v12  ;;  %v7104_v10 = vld [vmem:[#allocation32_spill] sm:$0xff]  ;;  %vm6548_vm6 = vmor %vm2690_vm15, %vm2691_vm12 }
 0x474   : > { %v2040_v59 = vmul.f32 %v1998_v34, %v7104_v10 }
 0x477   : > { %v3656_v2 = vpop.permute.xlu1 %3655 }
 0x478   : > { %v3544_v24 = vpop.permute.xlu0 %3543 }
 0x479   : > { %v3675_v50 = vsel %vm6969_vm1, %v3493_v3, %v3544_v24  ;;  %v3536_v3 = vpack.c.b16 %v6405_v16, %v6403_v63  ;;  %v3454_v24 = vpack.c.bf16 %v3438_v41, %v3438_v41  ;;  %v2682_v16 = vand.u32 2147483648, %v6376_v22 }
 0x47a   : > { %v3697_v9 = vsel %vm6967_vm3, %v3675_v50, %v3600_v40  ;;  %909 = vadd.xlane.f32.xlu1 %v908_v62  ;;  %v3637_v40 = vunpack.c.l.b16 %v3453_v17  ;;  %v2679_v22 = vsel %vm6534_vm14, %v6469_v56, %v2675_v7  ;;  %vm6594_vm14 = vmor %vm3376_vm11, %vm3377_vm10  ;;  %v3383_v7 = vor.u32 1.1754944e-38, %v3382_v31 }
 0x47b   : > { %v3714_v57 = vsel %vm6966_vm4, %v3697_v9, %v3656_v2  ;;  %v3638_v50 = vunpack.c.l.b16 %v3454_v24  ;;  %v7100_v2 = vld [vmem:[#allocation11_spill] sm:$0xff]  ;;  %v2683_v8 = vor.u32 1.1754944e-38, %v2682_v16  ;;  %v2697_v24 = vor.u32 1.1754944e-38, %v2696_v58 }
 0x47c   : > { %4049 = vmatmul.msk.bf16.gmra.mxu2 %vm6968_vm0, %v3714_v57  ;;  %v905_v9 = vsel %vm772_vm2, %v7100_v2, 0.0  ;;  %v1975_v57 = vadd.f32 %v6425_v39, %v1974_v54  ;;  %v3396_v2 = vand.u32 2147483648, %v6378_v19  ;;  %v1198_v58 = vand.u32 2147483648, %v6253_v29 }
 0x47d   : > { %v3648_v62 = vpack.c.b16 %v3638_v50, %v3637_v40  ;;  %v2684_v46 = vsel %vm2681_vm7, %v2683_v8, %v2679_v22  ;;  %v3394_v50 = vand.u32 2147483647, %v6378_v19 }
 0x47e   : > { %v1979_v36 = vsel %vm1978_vm8, %v6425_v39, %v1975_v57  ;;  %v3372_v39 = vmul.f32 %v6499_v5, %v6370_v25 }
 0x47f   : > { %vm3395_vm15 = vcmp.eq.f32.partialorder %v3394_v50, 8.507059e+37 }
 0x480   : > { %v3373_v47 = vsub.f32 1.0, %v3372_v39  ;;  %v6601_v39 = vsel %vm772_vm2, %v7114_v33, 0.0 }
 0x482   : > { %v3374_v41 = vmul.f32 %v6499_v5, %v3373_v47 }
 0x485   : > { %v3770_v38 = vpop.f32.mrf.mxu2 }
 0x486   : > { %903 = vadd.xlane.f32.xlu0 %v902_v0  ;;  %v3771_v4 = vadd.f32 %v6434_v45, %v3770_v38  ;;  %v1983_v0 = vor.u32 1.1754944e-38, %v1982_v27  ;;  %v2694_v38 = vand.u32 2147483647, %v6306_v20  ;;  %v7107_v20 = vld [vmem:[#allocation13_spill] sm:$0xff] }
 0x487   : > { %v6557_v21 = vsel %vm772_vm2, %v7107_v20, 0.0 }
 0x488   : > { %3810 = vst.msk [vmem:[%s6462_s8] sm:$0xff] %vm6968_vm0, %v3771_v4  ;;  %v1984_v13 = vsel %vm1981_vm9, %v1983_v0, %v1979_v36  ;;  %vm2695_vm8 = vcmp.eq.f32.partialorder %v2694_v38, 8.507059e+37  ;;  %vm3391_vm9 = vweird.f32 %v6488_v1  ;;  %v3397_v0 = vor.u32 1.1754944e-38, %v3396_v2 }
 0x489   : > { %v2039_v52 = vmul.f32 %v1984_v13, %v7101_v42  ;;  %vm6583_vm12 = vmor %vm3390_vm5, %vm3391_vm9 }
 0x48b   : > { %v2055_v48 = vpack.c.bf16 %v2039_v52, %v2039_v52  ;;  %v1212_v52 = vand.u32 2147483648, %v6311_v53 }
 0x48d   : > { %v3772_v35 = vpop.f32.mrf.mxu2  ;;  %v3527_v61 = vunpack.c.l.b16 %v2055_v48  ;;  %v1213_v48 = vor.u32 1.1754944e-38, %v1212_v52 }
 0x48e   : > { %v3773_v44 = vadd.f32 %v6434_v45, %v3772_v35  ;;  %v6565_v35 = vpop.f32.mrf.mxu1 }
 0x490   : > { %3811 = vst.msk [vmem:[%s6462_s8 + $0x8] sm:$0xff] %vm6968_vm0, %v3773_v44  ;;  %v3389_v44 = vadd.f32 %v6488_v1, %v3388_v26 }
 0x491   : > { %906 = vadd.xlane.f32.xlu2 %v905_v9  ;;  %v3375_v9 = vadd.f32 %v6499_v5, %v3374_v41 }
 0x492   : > { %v3393_v32 = vsel %vm6583_vm12, %v6488_v1, %v3389_v44 }
 0x493   : > { %3605 = vrot.lane.b32.xlu1 %v3592_v43, %s4360_s19  ;;  %v2688_v43 = vmul.f32 %v6471_v23, %v2687_v30  ;;  %v3379_v25 = vsel %vm6594_vm14, %v6499_v5, %v3375_v9  ;;  %v3398_v34 = vsel %vm3395_vm15, %v3397_v0, %v3393_v32  ;;  %v7121_v0 = vld [vmem:[#allocation24_spill] sm:$0xff] }
 0x495   : > { %v2689_v63 = vadd.f32 %v6471_v23, %v2688_v43 }
 0x496   : > { %v3195_v47 = vpop.f32.mrf.mxu1 }
 0x497   : > { %v2693_v56 = vsel %vm6548_vm6, %v6471_v23, %v2689_v63  ;;  %v2056_v23 = vpack.c.bf16 %v2040_v59, %v2040_v59  ;;  %v1196_v63 = vand.u32 2147483647, %v6253_v29  ;;  %vm3381_vm6 = vcmp.eq.f32.partialorder %v3380_v18, 8.507059e+37 }
 0x498   : > { %v2698_v60 = vsel %vm2695_vm8, %v2697_v24, %v2693_v56  ;;  %v3384_v49 = vsel %vm3381_vm6, %v3383_v7, %v3379_v25  ;;  %v3440_v22 = vmul.f32 %v3398_v34, %v3195_v47  ;;  %vm1206_vm8 = vweird.f32 %v6311_v53 }
 0x499   : > { %v3528_v36 = vunpack.c.l.b16 %v2056_v23  ;;  %v2740_v14 = vmul.f32 %v2698_v60, %v7111_v55  ;;  %v1210_v59 = vand.u32 2147483647, %v6311_v53  ;;  %v3439_v20 = vmul.f32 %v3384_v49, %v6565_v35  ;;  %v7122_v35 = vld [vmem:[#allocation22_spill] sm:$0xff] }
 0x49a   : > { %3549 = vrot.lane.b32.xlu0 %v3536_v3, %s4361_s20  ;;  %v6525_v3 = vpop.eup %4316  ;;  %vm6638_vm9 = vcmp.eq.f32.partialorder %v1196_v63, 8.507059e+37 }
 0x49b   : > { %v6529_v51 = vpop.xlane.xlu2 %897  ;;  %v6538_v4 = vpop.eup %4318  ;;  %v1202_v15 = vmul.f32 %v6525_v3, %v6311_v53  ;;  %v3537_v1 = vpack.c.b16 %v3528_v36, %v3527_v61  ;;  %v2756_v16 = vpack.c.bf16 %v2740_v14, %v2740_v14  ;;  %vm1207_vm2 = vweird.f32 %v6525_v3 }
 0x49c   : > { %v1188_v17 = vmul.f32 %v6538_v4, %v6253_v29  ;;  %4320 = vrcp.f32 %v6529_v51  ;;  %vm1193_vm7 = vweird.f32 %v6538_v4  ;;  %vm6628_vm5 = vmor %vm1206_vm8, %vm1207_vm2  ;;  %vm1211_vm11 = vcmp.eq.f32.partialorder %v1210_v59, 8.507059e+37 }
 0x49d   : > { %v1203_v40 = vsub.f32 1.0, %v1202_v15  ;;  %v3584_v8 = vunpack.c.l.b16 %v2756_v16  ;;  %vm6652_vm10 = vmor %vm1192_vm13, %vm1193_vm7  ;;  %v1238_v50 = vand.u32 2147483647, %v6529_v51  ;;  %v3455_v2 = vpack.c.bf16 %v3439_v20, %v3439_v20 }
 0x49e   : > { %v1189_v27 = vsub.f32 1.0, %v1188_v17  ;;  %v1240_v17 = vand.u32 2147483648, %v6529_v51  ;;  %v6718_v41 = vpop.f32.mrf.mxu1  ;;  %vm1234_vm7 = vweird.f32 %v6529_v51 }
 0x49f   : > { %v1204_v19 = vmul.f32 %v6525_v3, %v1203_v40  ;;  %v1199_v40 = vor.u32 1.1754944e-38, %v1198_v58  ;;  %v3639_v7 = vunpack.c.l.b16 %v3455_v2 }
 0x4a0   : > { %v1190_v12 = vmul.f32 %v6538_v4, %v1189_v27 }
 0x4a1   : > { %v1205_v42 = vadd.f32 %v6525_v3, %v1204_v19 }
 0x4a2   : > { %3661 = vrot.lane.b32.xlu0 %v3648_v62, %s4362_s22  ;;  %v7108_v62 = vld [vmem:[#allocation36_spill] sm:$0xff]  ;;  %v6613_v5 = vpop.eup %4320  ;;  %v6618_v38 = vpop.xlane.xlu1 %1636  ;;  %v1191_v10 = vadd.f32 %v6538_v4, %v1190_v12 }
 0x4a3   : > { %v6563_v54 = vpop.xlane.xlu0 %894  ;;  %v6576_v57 = vpop.xlane.xlu2 %2339  ;;  %v2739_v30 = vmul.f32 %v2684_v46, %v7108_v62  ;;  %v1230_v15 = vmul.f32 %v6613_v5, %v6529_v51  ;;  %v1209_v53 = vsel %vm6628_vm5, %v6525_v3, %v1205_v42  ;;  %v3456_v3 = vpack.c.bf16 %v3440_v22, %v3440_v22 }
 0x4a4   : > { %4322 = vrcp.f32 %v6563_v54  ;;  %v1226_v46 = vand.u32 2147483648, %v6563_v54  ;;  %v1195_v60 = vsel %vm6652_vm10, %v6538_v4, %v1191_v10  ;;  %v1214_v9 = vsel %vm1211_vm11, %v1213_v48, %v1209_v53 }
 0x4a5   : > { %v2755_v13 = vpack.c.bf16 %v2739_v30, %v2739_v30  ;;  %4324 = vrcp.f32 %v6576_v57  ;;  %v1231_v29 = vsub.f32 1.0, %v1230_v15  ;;  %v6668_v62 = vor.u32 1.1754944e-38, %v1240_v17 }
 0x4a6   : > { %v2724_v27 = vand.u32 2147483648, %v6576_v57  ;;  %v1224_v11 = vand.u32 2147483647, %v6563_v54  ;;  %v6678_v18 = vor.u32 1.1754944e-38, %v1226_v46  ;;  %v3640_v36 = vunpack.c.l.b16 %v3456_v3 }
 0x4a7   : > { %v3583_v26 = vunpack.c.l.b16 %v2755_v13  ;;  %v2722_v55 = vand.u32 2147483647, %v6576_v57  ;;  %v2008_v14 = vand.u32 2147483647, %v6618_v38  ;;  %v2010_v43 = vand.u32 2147483648, %v6618_v38 }
 0x4a8   : > { %v1334_v33 = vmul.f32 %v1214_v9, %v7121_v0  ;;  %v6692_v47 = vor.u32 1.1754944e-38, %v2724_v27  ;;  %v3649_v58 = vpack.c.b16 %v3640_v36, %v3639_v7  ;;  %v1200_v22 = vsel %vm6638_vm9, %v1199_v40, %v1195_v60 }
 0x4a9   : > { %3551 = vrot.lane.b32.xlu2 %v3537_v1, %s4361_s20  ;;  %v3593_v44 = vpack.c.b16 %v3584_v8, %v3583_v26  ;;  %v1232_v1 = vmul.f32 %v6613_v5, %v1231_v29  ;;  %vm2718_vm13 = vweird.f32 %v6576_v57  ;;  %vm1235_vm14 = vweird.f32 %v6613_v5 }
 0x4aa   : > { %v6636_v56 = vpop.eup %4322  ;;  %v1350_v59 = vpack.c.bf16 %v1334_v33, %v1334_v33  ;;  %vm1220_vm15 = vweird.f32 %v6563_v54  ;;  %v1333_v46 = vmul.f32 %v1200_v22, %v7122_v35  ;;  %vm6737_vm8 = vcmp.eq.f32.partialorder %v2722_v55, 8.507059e+37 }
 0x4ab   : > { %v6606_v6 = vpop.xlane.xlu0 %1639  ;;  %v6622_v28 = vpop.xlane.xlu2 %3039  ;;  %v1216_v30 = vmul.f32 %v6636_v56, %v6563_v54  ;;  %vm1221_vm12 = vweird.f32 %v6636_v56  ;;  %v6713_v37 = vadd.f32 %v6613_v5, %v1232_v1  ;;  %vm6745_vm9 = vcmp.eq.f32.partialorder %v1224_v11, 8.507059e+37 }
 0x4ac   : > { %4326 = vrcp.f32 %v6622_v28  ;;  %v6646_v24 = vpop.eup %4324  ;;  %v2022_v15 = vand.u32 2147483647, %v6606_v6  ;;  %v2024_v8 = vand.u32 2147483648, %v6606_v6  ;;  %vm3418_vm6 = vweird.f32 %v6622_v28 }
 0x4ad   : > { %4328 = vrcp.f32 %v6618_v38  ;;  %v2714_v4 = vmul.f32 %v6646_v24, %v6576_v57  ;;  %v1217_v63 = vsub.f32 1.0, %v1216_v30  ;;  %v3424_v29 = vand.u32 2147483648, %v6622_v28 }
 0x4ae   : > { %4330 = vrcp.f32 %v6606_v6  ;;  %v6734_v2 = vunpack.c.l.b16 %v1350_v59  ;;  %v1349_v9 = vpack.c.bf16 %v1333_v46, %v1333_v46  ;;  %v3422_v27 = vand.u32 2147483647, %v6622_v28 }
 0x4af   : > { %v2715_v16 = vsub.f32 1.0, %v2714_v4  ;;  %v1218_v53 = vmul.f32 %v6636_v56, %v1217_v63  ;;  %vm2719_vm10 = vweird.f32 %v6646_v24  ;;  %vm2018_vm11 = vweird.f32 %v6606_v6 }
 0x4b0   : > { %v6761_v11 = vunpack.c.l.b16 %v1349_v9  ;;  %v3425_v63 = vor.u32 1.1754944e-38, %v3424_v29  ;;  %vm3423_vm1 = vcmp.eq.f32.partialorder %v3422_v27, 8.507059e+37  ;;  %v2011_v9 = vor.u32 1.1754944e-38, %v2010_v43 }
 0x4b1   : > { %3607 = vrot.lane.b32.xlu2 %v3593_v44, %s4360_s19  ;;  %v2716_v48 = vmul.f32 %v6646_v24, %v2715_v16  ;;  %v1219_v7 = vadd.f32 %v6636_v56, %v1218_v53  ;;  %v3200_v53 = vpop.f32.mrf.mxu1  ;;  %v2025_v4 = vor.u32 1.1754944e-38, %v2024_v8 }
 0x4b2   : > { %v6666_v61 = vpop.eup %4326  ;;  %v3494_v16 = vpack.c.b16 %v6734_v2, %v6761_v11  ;;  %v7141_v2 = vld [vmem:[#allocation38_spill] sm:$0xff] }
 0x4b3   : > { %v6658_v23 = vpop.xlane.xlu0 %2336  ;;  %v6675_v31 = vpop.eup %4328  ;;  %v3414_v32 = vmul.f32 %v6666_v61, %v6622_v28  ;;  %vm3419_vm2 = vweird.f32 %v6666_v61 }
 0x4b4   : > { %4332 = vrcp.f32 %v6658_v23  ;;  %v6686_v25 = vpop.eup %4330  ;;  %v6696_v49 = vmul.f32 %v6675_v31, %v6618_v38  ;;  %v6730_v60 = vpop.permute.xlu2 %3657  ;;  %vm6756_vm4 = vmor %vm3418_vm6, %vm3419_vm2  ;;  %v2710_v33 = vand.u32 2147483648, %v6658_v23  ;;  %vm2704_vm3 = vweird.f32 %v6658_v23 }
 0x4b5   : > { %v3415_v13 = vsub.f32 1.0, %v3414_v32  ;;  %v2014_v10 = vmul.f32 %v6686_v25, %v6606_v6  ;;  %vm6773_vm6 = vcmp.eq.f32.partialorder %v1238_v50, 8.507059e+37  ;;  %vm2004_vm2 = vweird.f32 %v6618_v38  ;;  %v7152_v38 = vld [vmem:[#allocation33_spill] sm:$0xff] }
 0x4b6   : > { %v2001_v17 = vsub.f32 1.0, %v6696_v49 }
 0x4b7   : > { %v3416_v42 = vmul.f32 %v6666_v61, %v3415_v13  ;;  %v2015_v40 = vsub.f32 1.0, %v2014_v10  ;;  %v2708_v13 = vand.u32 2147483647, %v6658_v23  ;;  %v2711_v10 = vor.u32 1.1754944e-38, %v2710_v33 }
 0x4b8   : > { %v3775_v19 = vpop.f32.mrf.mxu2  ;;  %v2002_v49 = vmul.f32 %v6675_v31, %v2001_v17 }
 0x4b9   : > { %v3776_v12 = vadd.f32 %v6434_v45, %v3775_v19  ;;  %3663 = vrot.lane.b32.xlu2 %v3649_v58, %s4362_s22  ;;  %v3417_v44 = vadd.f32 %v6666_v61, %v3416_v42 }
 0x4ba   : > { %v6690_v34 = vpop.eup %4332 }
 0x4bb   : > { %v2700_v52 = vmul.f32 %v6690_v34, %v6658_v23  ;;  %3812 = vst.msk [vmem:[%s6462_s8 + $0x10] sm:$0xff] %vm6968_vm0, %v3776_v12  ;;  %v6703_v26 = vpop.xlane.xlu0 %3036  ;;  %vm2705_vm5 = vweird.f32 %v6690_v34  ;;  %v3421_v1 = vsel %vm6756_vm4, %v6666_v61, %v3417_v44  ;;  %v2016_v61 = vmul.f32 %v6686_v25, %v2015_v40 }
 0x4bc   : > { %4334 = vrcp.f32 %v6703_v26  ;;  %vm6782_vm4 = vmor %vm2704_vm3, %vm2705_vm5  ;;  %v3426_v22 = vsel %vm3423_vm1, %v3425_v63, %v3421_v1  ;;  %v3410_v57 = vand.u32 2147483648, %v6703_v26  ;;  %v3548_v46 = vpop.permute.xlu2 %3547  ;;  %v7148_v1 = vld [vmem:[#allocation25_spill] sm:$0xff] }
 0x4bd   : > { %v2701_v20 = vsub.f32 1.0, %v2700_v52  ;;  %915 = vadd.xlane.f32.xlu1 %v6601_v39  ;;  %v2717_v39 = vadd.f32 %v6646_v24, %v2716_v48  ;;  %vm6808_vm3 = vmor %vm1220_vm15, %vm1221_vm12  ;;  %v2017_v48 = vadd.f32 %v6686_v25, %v2016_v61  ;;  %vm2005_vm12 = vweird.f32 %v6675_v31  ;;  %v7151_v61 = vld [vmem:[#allocation34_spill] sm:$0xff] }
 0x4be   : > { %vm6822_vm1 = vmor %vm1234_vm7, %vm1235_vm14  ;;  %vm3404_vm15 = vweird.f32 %v6703_v26  ;;  %v3411_v40 = vor.u32 1.1754944e-38, %v3410_v57 }
 0x4bf   : > { %v2702_v3 = vmul.f32 %v6690_v34, %v2701_v20  ;;  %v1237_v44 = vsel %vm6822_vm1, %v6613_v5, %v6713_v37  ;;  %v3546_v37 = vpop.permute.xlu1 %3545 }
 0x4c0   : > { %v3777_v30 = vpop.f32.mrf.mxu2  ;;  %v1242_v43 = vsel %vm6773_vm6, %v6668_v62, %v1237_v44  ;;  %vm2009_vm6 = vcmp.eq.f32.partialorder %v2008_v14, 8.507059e+37 }
 0x4c1   : > { %v2703_v32 = vadd.f32 %v6690_v34, %v2702_v3  ;;  %v3778_v36 = vadd.f32 %v6434_v45, %v3777_v30  ;;  %v2003_v3 = vadd.f32 %v6675_v31, %v2002_v49 }
 0x4c2   : > { %v4335_v19 = vpop.eup %4334 }
 0x4c3   : > { %v3400_v12 = vmul.f32 %v4335_v19, %v6703_v26  ;;  %3813 = vst.msk [vmem:[%s6462_s8 + $0x18] sm:$0xff] %vm6968_vm0, %v3778_v36  ;;  %vm6792_vm0 = vmor %vm2718_vm13, %vm2719_vm10  ;;  %v2707_v42 = vsel %vm6782_vm4, %v6690_v34, %v2703_v32  ;;  %vm2709_vm13 = vcmp.eq.f32.partialorder %v2708_v13, 8.507059e+37  ;;  %vm3405_vm5 = vweird.f32 %v4335_v19  ;;  %v7144_v36 = vld [vmem:[#allocation39_spill] sm:$0xff] }
 0x4c4   : > { %v2721_v58 = vsel %vm6792_vm0, %v6646_v24, %v2717_v39  ;;  %v3408_v34 = vand.u32 2147483647, %v6703_v26  ;;  %v1223_v24 = vsel %vm6808_vm3, %v6636_v56, %v1219_v7  ;;  %vm2019_vm0 = vweird.f32 %v6686_v25  ;;  %vm3406_vm14 = vmor %vm3404_vm15, %vm3405_vm5  ;;  %v3604_v23 = vpop.permute.xlu2 %3603 }
 0x4c5   : > { %v3401_v52 = vsub.f32 1.0, %v3400_v12  ;;  %v2712_v17 = vsel %vm2709_vm13, %v2711_v10, %v2707_v42  ;;  %v3442_v56 = vmul.f32 %v3426_v22, %v3200_v53  ;;  %v2726_v51 = vsel %vm6737_vm8, %v6692_v47, %v2721_v58  ;;  %vm6839_vm7 = vmor %vm2018_vm11, %vm2019_vm0 }
 0x4c6   : > { %vm3409_vm10 = vcmp.eq.f32.partialorder %v3408_v34, 8.507059e+37  ;;  %v1228_v5 = vsel %vm6745_vm9, %v6678_v18, %v1223_v24  ;;  %v2741_v47 = vmul.f32 %v2712_v17, %v7141_v2  ;;  %v2021_v30 = vsel %vm6839_vm7, %v6686_v25, %v2017_v48  ;;  %vm6859_vm8 = vmor %vm2004_vm2, %vm2005_vm12 }
 0x4c7   : > { %v3402_v20 = vmul.f32 %v4335_v19, %v3401_v52  ;;  %v3458_v32 = vpack.c.bf16 %v3442_v56, %v3442_v56  ;;  %v2742_v8 = vmul.f32 %v2726_v51, %v7144_v36  ;;  %vm2023_vm9 = vcmp.eq.f32.partialorder %v2022_v15, 8.507059e+37 }
 0x4c8   : > { %vm7146_vm11 = vcmask 64512   ;;  %v2026_v33 = vsel %vm2023_vm9, %v2025_v4, %v2021_v30  ;;  %vm7147_vm2 = vcmask 130048   ;;  %v1336_v13 = vmul.f32 %v1242_v43, %v7148_v1 }
 0x4c9   : > { %v3403_v35 = vadd.f32 %v4335_v19, %v3402_v20  ;;  %v3678_v39 = vsel %vm7146_vm11, %v3494_v16, %v3546_v37  ;;  %vm7149_vm4 = vcmask 195584   ;;  %vm7150_vm3 = vcmask 261120   ;;  %vm7153_vm13 = vmmov %vm7146_vm11 }
 0x4ca   : > { %v3642_v12 = vunpack.c.l.b16 %v3458_v32  ;;  %v2758_v28 = vpack.c.bf16 %v2742_v8, %v2742_v8  ;;  %v2042_v63 = vmul.f32 %v2026_v33, %v7151_v61  ;;  %v1352_v49 = vpack.c.bf16 %v1336_v13, %v1336_v13  ;;  %vm7154_vm5 = vmmov %vm7147_vm2  ;;  %v7160_v13 = vld [vmem:[#allocation27_spill] sm:$0xff] }
 0x4cb   : > { %v3407_v29 = vsel %vm3406_vm14, %v4335_v19, %v3403_v35  ;;  %v7145_v19 = vld [vmem:[#allocation23_spill] sm:$0xff]  ;;  %vm7155_vm0 = vmmov %vm7149_vm4 }
 0x4cc   : > { %v3412_v27 = vsel %vm3409_vm10, %v3411_v40, %v3407_v29  ;;  %912 = vadd.xlane.f32.xlu0 %v6557_v21  ;;  %v2007_v21 = vsel %vm6859_vm8, %v6675_v31, %v2003_v3  ;;  %v1335_v0 = vmul.f32 %v1228_v5, %v7145_v19  ;;  %v3586_v42 = vunpack.c.l.b16 %v2758_v28  ;;  %v3660_v34 = vpop.permute.xlu2 %3659  ;;  %vm7156_vm1 = vmmov %vm7150_vm3 }
 0x4cd   : > { %v3441_v25 = vmul.f32 %v3412_v27, %v6718_v41  ;;  %v2757_v41 = vpack.c.bf16 %v2741_v47, %v2741_v47  ;;  %v2012_v6 = vsel %vm2009_vm6, %v2011_v9, %v2007_v21  ;;  %v3484_v22 = vunpack.c.l.b16 %v1352_v49  ;;  %vm7157_vm7 = vmmov %vm7156_vm1 }
 0x4ce   : > { %v3602_v55 = vpop.permute.xlu0 %3601  ;;  %v1351_v7 = vpack.c.bf16 %v1335_v0, %v1335_v0  ;;  %v2041_v14 = vmul.f32 %v2012_v6, %v7152_v38  ;;  %v7158_v0 = vld [vmem:[#allocation26_spill] sm:$0xff]  ;;  %vm7159_vm6 = vmmov %vm7156_vm1 }
 0x4cf   : > { %v3699_v62 = vsel %vm7147_vm2, %v3678_v39, %v3602_v55  ;;  %v3457_v11 = vpack.c.bf16 %v3441_v25, %v3441_v25  ;;  %v3585_v50 = vunpack.c.l.b16 %v2757_v41 }
 0x4d0   : > { %v3716_v31 = vsel %vm7149_vm4, %v3699_v62, %v6730_v60  ;;  %v3483_v52 = vunpack.c.l.b16 %v1351_v7  ;;  %v2058_v60 = vpack.c.bf16 %v2042_v63, %v2042_v63  ;;  %v2057_v10 = vpack.c.bf16 %v2041_v14, %v2041_v14 }
 0x4d1   : > { %4050 = vmatmul.msk.bf16.gmra.mxu2 %vm7150_vm3, %v3716_v31  ;;  %v3641_v15 = vunpack.c.l.b16 %v3457_v11  ;;  %v3594_v58 = vpack.c.b16 %v3586_v42, %v3585_v50 }
 0x4d2   : > { %v3495_v57 = vpack.c.b16 %v3484_v22, %v3483_v52  ;;  %v3530_v59 = vunpack.c.l.b16 %v2058_v60  ;;  %v3529_v20 = vunpack.c.l.b16 %v2057_v10 }
 0x4d3   : > { %v3650_v16 = vpack.c.b16 %v3642_v12, %v3641_v15 }
 0x4d4   : > { %v3681_v53 = vsel %vm7153_vm13, %v3495_v57, %v3548_v46  ;;  %v3538_v24 = vpack.c.b16 %v3530_v59, %v3529_v20 }
 0x4d5   : > { %3665 = vrot.lane.b32.xlu2 %v3650_v16, %s4362_s22  ;;  %v3701_v48 = vsel %vm7154_vm5, %v3681_v53, %v3604_v23 }
 0x4d6   : > { %3609 = vrot.lane.b32.xlu1 %v3594_v58, %s4360_s19  ;;  %v3718_v17 = vsel %vm7155_vm0, %v3701_v48, %v3660_v34  ;;  %vm7161_vm0 = vcmask 64512   ;;  %v7164_v48 = vld [vmem:[#allocation14_spill] sm:$0xff] }
 0x4e0   : > { %3553 = vrot.lane.b32.xlu0 %v3538_v24, %s4361_s20 }
 0x4e1   : > { %4051 = vmatmul.msk.bf16.gmra.mxu2 %vm7156_vm1, %v3718_v17 }
 0x4e5   : > { %v901_v54 = vpop.xlane.xlu1 %900 }
 0x4e6   : > { %4336 = vrcp.f32 %v901_v54  ;;  %v1254_v29 = vand.u32 2147483648, %v901_v54  ;;  %vm1248_vm15 = vweird.f32 %v901_v54  ;;  %v1252_v5 = vand.u32 2147483647, %v901_v54 }
 0x4e8   : > { %v1255_v27 = vor.u32 1.1754944e-38, %v1254_v29  ;;  %vm1253_vm10 = vcmp.eq.f32.partialorder %v1252_v5, 8.507059e+37 }
 0x4ec   : > { %v4337_v35 = vpop.eup %4336 }
 0x4ed   : > { %v1244_v56 = vmul.f32 %v4337_v35, %v901_v54  ;;  %v910_v44 = vpop.xlane.xlu1 %909  ;;  %vm1249_vm12 = vweird.f32 %v4337_v35 }
 0x4ee   : > { %4338 = vrcp.f32 %v910_v44  ;;  %vm1250_vm14 = vmor %vm1248_vm15, %vm1249_vm12  ;;  %v1296_v28 = vand.u32 2147483648, %v910_v44  ;;  %vm1290_vm3 = vweird.f32 %v910_v44  ;;  %v1294_v61 = vand.u32 2147483647, %v910_v44 }
 0x4ef   : > { %v1245_v51 = vsub.f32 1.0, %v1244_v56  ;;  %vm7162_vm12 = vcmask 130048   ;;  %vm7163_vm15 = vcmask 195584  }
 0x4f0   : > { %v1297_v14 = vor.u32 1.1754944e-38, %v1296_v28  ;;  %vm1295_vm5 = vcmp.eq.f32.partialorder %v1294_v61, 8.507059e+37  ;;  %v7171_v28 = vld [vmem:[#allocation15_spill] sm:$0xff] }
 0x4f1   : > { %v1246_v3 = vmul.f32 %v4337_v35, %v1245_v51 }
 0x4f3   : > { %v1247_v26 = vadd.f32 %v4337_v35, %v1246_v3 }
 0x4f4   : > { %v4339_v46 = vpop.eup %4338 }
 0x4f5   : > { %v1286_v47 = vmul.f32 %v4339_v46, %v910_v44  ;;  %v1251_v30 = vsel %vm1250_vm14, %v4337_v35, %v1247_v26  ;;  %vm1291_vm4 = vweird.f32 %v4339_v46  ;;  %v7166_v44 = vld [vmem:[#allocation28_spill] sm:$0xff] }
 0x4f6   : > { %v1256_v32 = vsel %vm1253_vm10, %v1255_v27, %v1251_v30  ;;  %vm1292_vm13 = vmor %vm1290_vm3, %vm1291_vm4 }
 0x4f7   : > { %v1287_v43 = vsub.f32 1.0, %v1286_v47  ;;  %v1337_v39 = vmul.f32 %v1256_v32, %v7158_v0 }
 0x4f9   : > { %v904_v40 = vpop.xlane.xlu0 %903  ;;  %v1288_v55 = vmul.f32 %v4339_v46, %v1287_v43  ;;  %v1353_v6 = vpack.c.bf16 %v1337_v39, %v1337_v39 }
 0x4fa   : > { %4340 = vrcp.f32 %v904_v40  ;;  %v1268_v25 = vand.u32 2147483648, %v904_v40  ;;  %v1266_v8 = vand.u32 2147483647, %v904_v40  ;;  %vm1262_vm9 = vweird.f32 %v904_v40 }
 0x4fb   : > { %v1289_v15 = vadd.f32 %v4339_v46, %v1288_v55  ;;  %v3485_v23 = vunpack.c.l.b16 %v1353_v6 }
 0x4fc   : > { %v1269_v33 = vor.u32 1.1754944e-38, %v1268_v25  ;;  %vm1267_vm2 = vcmp.eq.f32.partialorder %v1266_v8, 8.507059e+37 }
 0x4fd   : > { %v1293_v50 = vsel %vm1292_vm13, %v4339_v46, %v1289_v15 }
 0x4fe   : > { %v1298_v10 = vsel %vm1295_vm5, %v1297_v14, %v1293_v50 }
 0x4ff   : > { %v3780_v37 = vpop.f32.mrf.mxu2  ;;  %v1340_v17 = vmul.f32 %v1298_v10, %v7164_v48 }
 0x500   : > { %v4341_v2 = vpop.eup %4340  ;;  %v3781_v9 = vadd.f32 %v6434_v45, %v3780_v37 }
 0x501   : > { %v1258_v4 = vmul.f32 %v4341_v2, %v904_v40  ;;  %vm1263_vm8 = vweird.f32 %v4341_v2  ;;  %v1356_v3 = vpack.c.bf16 %v1340_v17, %v1340_v17 }
 0x502   : > { %3814 = vst.msk [vmem:[%s6462_s8 + $0x20] sm:$0xff] %vm7157_vm7, %v3781_v9  ;;  %vm1264_vm11 = vmor %vm1262_vm9, %vm1263_vm8 }
 0x503   : > { %v1259_v18 = vsub.f32 1.0, %v1258_v4  ;;  %vm7165_vm7 = vmmov %vm7159_vm6  ;;  %v3488_v29 = vunpack.c.l.b16 %v1356_v3 }
 0x504   : > { %v907_v62 = vpop.xlane.xlu2 %906  ;;  %vm7167_vm9 = vmmov %vm7161_vm0 }
 0x505   : > { %v1260_v36 = vmul.f32 %v4341_v2, %v1259_v18  ;;  %4342 = vrcp.f32 %v907_v62  ;;  %v1282_v60 = vand.u32 2147483648, %v907_v62  ;;  %v3606_v58 = vpop.permute.xlu1 %3605  ;;  %v1280_v59 = vand.u32 2147483647, %v907_v62 }
 0x506   : > { %vm1276_vm14 = vweird.f32 %v907_v62 }
 0x507   : > { %v1261_v21 = vadd.f32 %v4341_v2, %v1260_v36  ;;  %v3782_v19 = vpop.f32.mrf.mxu2  ;;  %v1283_v54 = vor.u32 1.1754944e-38, %v1282_v60  ;;  %vm1281_vm8 = vcmp.eq.f32.partialorder %v1280_v59, 8.507059e+37 }
 0x508   : > { %v3783_v11 = vadd.f32 %v6434_v45, %v3782_v19 }
 0x509   : > { %v1265_v41 = vsel %vm1264_vm11, %v4341_v2, %v1261_v21  ;;  %vm7168_vm11 = vmmov %vm7162_vm12 }
 0x50a   : > { %3815 = vst.msk [vmem:[%s6462_s8 + $0x28] sm:$0xff] %vm7159_vm6, %v3783_v11  ;;  %v1270_v1 = vsel %vm1267_vm2, %v1269_v33, %v1265_v41  ;;  %vm7169_vm2 = vmmov %vm7163_vm15 }
 0x50b   : > { %v1338_v31 = vmul.f32 %v1270_v1, %v7160_v13  ;;  %v4343_v63 = vpop.eup %4342  ;;  %v7170_v13 = vld [vmem:[#allocation19_spill] sm:$0xff] }
 0x50c   : > { %v3550_v12 = vpop.permute.xlu0 %3549  ;;  %v1272_v49 = vmul.f32 %v4343_v63, %v907_v62  ;;  %v3552_v38 = vpop.permute.xlu2 %3551  ;;  %vm1277_vm1 = vweird.f32 %v4343_v63 }
 0x50d   : > { %v1354_v7 = vpack.c.bf16 %v1338_v31, %v1338_v31  ;;  %vm1278_vm10 = vmor %vm1276_vm14, %vm1277_vm1 }
 0x50e   : > { %v1273_v52 = vsub.f32 1.0, %v1272_v49  ;;  %vm7172_vm14 = vmmov %vm7159_vm6 }
 0x50f   : > { %v3486_v16 = vunpack.c.l.b16 %v1354_v7 }
 0x510   : > { %v1274_v57 = vmul.f32 %v4343_v63, %v1273_v52 }
 0x511   : > { %v3496_v42 = vpack.c.b16 %v3486_v16, %v3485_v23 }
 0x512   : > { %v1275_v24 = vadd.f32 %v4343_v63, %v1274_v57 }
 0x513   : > { %v3684_v22 = vsel %vm7161_vm0, %v3496_v42, %v3550_v12 }
 0x514   : > { %v3703_v20 = vsel %vm7162_vm12, %v3684_v22, %v3606_v58  ;;  %v3662_v34 = vpop.permute.xlu0 %3661  ;;  %v1279_v35 = vsel %vm1278_vm10, %v4343_v63, %v1275_v24  ;;  %v3608_v40 = vpop.permute.xlu2 %3607  ;;  %vm7174_vm10 = vmmov %vm7168_vm11 }
 0x515   : > { %v3720_v53 = vsel %vm7163_vm15, %v3703_v20, %v3662_v34  ;;  %v1284_v56 = vsel %vm1281_vm8, %v1283_v54, %v1279_v35  ;;  %vm7175_vm8 = vmmov %vm7169_vm2 }
 0x516   : > { %4052 = vmatmul.msk.bf16.gmra.mxu2 %vm7165_vm7, %v3720_v53  ;;  %v1339_v51 = vmul.f32 %v1284_v56, %v7166_v44  ;;  %vm7173_vm7 = vmmov %vm7167_vm9 }
 0x518   : > { %v1355_v46 = vpack.c.bf16 %v1339_v51, %v1339_v51 }
 0x51a   : > { %v3487_v26 = vunpack.c.l.b16 %v1355_v46 }
 0x51c   : > { %v3497_v5 = vpack.c.b16 %v3488_v29, %v3487_v26  ;;  %v3664_v47 = vpop.permute.xlu2 %3663 }
 0x51e   : > { %v3687_v37 = vsel %vm7167_vm9, %v3497_v5, %v3552_v38  ;;  %vm7176_vm9 = vmmov %vm7159_vm6 }
 0x51f   : > { %v3705_v2 = vsel %vm7168_vm11, %v3687_v37, %v3608_v40  ;;  %vm7177_vm11 = vmmov %vm7159_vm6 }
 0x520   : > { %v3722_v9 = vsel %vm7169_vm2, %v3705_v2, %v3664_v47  ;;  %vm7178_vm2 = vmmov %vm7159_vm6 }
 0x526   : > { %4053 = vmatmul.msk.bf16.gmra.mxu2 %vm7159_vm6, %v3722_v9  ;;  %vm7179_vm6 = vmmov %vm7178_vm2 }
 0x52f   : > { %v3666_v60 = vpop.permute.xlu2 %3665 }
 0x530   : > { %v916_v30 = vpop.xlane.xlu1 %915 }
 0x531   : > { %4344 = vrcp.f32 %v916_v30  ;;  %v1324_v36 = vand.u32 2147483648, %v916_v30  ;;  %vm1318_vm3 = vweird.f32 %v916_v30  ;;  %v1322_v8 = vand.u32 2147483647, %v916_v30 }
 0x533   : > { %v1325_v39 = vor.u32 1.1754944e-38, %v1324_v36  ;;  %vm1323_vm5 = vcmp.eq.f32.partialorder %v1322_v8, 8.507059e+37 }
 0x537   : > { %v4345_v4 = vpop.eup %4344 }
 0x538   : > { %v1314_v27 = vmul.f32 %v4345_v4, %v916_v30  ;;  %vm1319_vm4 = vweird.f32 %v4345_v4 }
 0x539   : > { %vm1320_vm13 = vmor %vm1318_vm3, %vm1319_vm4 }
 0x53a   : > { %v1315_v18 = vsub.f32 1.0, %v1314_v27  ;;  %vm7180_vm4 = vmmov %vm7178_vm2 }
 0x53b   : > { %vm7181_vm3 = vmmov %vm7178_vm2 }
 0x53c   : > { %v1316_v43 = vmul.f32 %v4345_v4, %v1315_v18 }
 0x53e   : > { %v1317_v32 = vadd.f32 %v4345_v4, %v1316_v43 }
 0x53f   : > { %v913_v25 = vpop.xlane.xlu0 %912 }
 0x540   : > { %4346 = vrcp.f32 %v913_v25  ;;  %v1321_v19 = vsel %vm1320_vm13, %v4345_v4, %v1317_v32  ;;  %v1310_v33 = vand.u32 2147483648, %v913_v25  ;;  %v1308_v41 = vand.u32 2147483647, %v913_v25  ;;  %vm7182_vm13 = vmmov %vm7178_vm2 }
 0x541   : > { %v1326_v62 = vsel %vm1323_vm5, %v1325_v39, %v1321_v19  ;;  %vm1304_vm1 = vweird.f32 %v913_v25  ;;  %vm7183_vm5 = vmmov %vm7178_vm2 }
 0x542   : > { %v1342_v31 = vmul.f32 %v1326_v62, %v7170_v13  ;;  %v1311_v6 = vor.u32 1.1754944e-38, %v1310_v33  ;;  %vm1309_vm15 = vcmp.eq.f32.partialorder %v1308_v41, 8.507059e+37 }
 0x544   : > { %v1358_v61 = vpack.c.bf16 %v1342_v31, %v1342_v31 }
 0x546   : > { %v4347_v21 = vpop.eup %4346  ;;  %v3490_v50 = vunpack.c.l.b16 %v1358_v61 }
 0x547   : > { %v1300_v0 = vmul.f32 %v4347_v21, %v913_v25  ;;  %vm1305_vm0 = vweird.f32 %v4347_v21 }
 0x548   : > { %vm1306_vm12 = vmor %vm1304_vm1, %vm1305_vm0  ;;  %v3610_v42 = vpop.permute.xlu1 %3609 }
 0x549   : > { %v1301_v55 = vsub.f32 1.0, %v1300_v0  ;;  %vm7184_vm0 = vmmov %vm7178_vm2 }
 0x54a   : > { %vm7185_vm1 = vmmov %vm7184_vm0 }
 0x54b   : > { %v1302_v11 = vmul.f32 %v4347_v21, %v1301_v55 }
 0x54d   : > { %v1303_v1 = vadd.f32 %v4347_v21, %v1302_v11 }
 0x54f   : > { %v1307_v15 = vsel %vm1306_vm12, %v4347_v21, %v1303_v1 }
 0x550   : > { %v1312_v12 = vsel %vm1309_vm15, %v1311_v6, %v1307_v15 }
 0x551   : > { %v1341_v7 = vmul.f32 %v1312_v12, %v7171_v28 }
 0x552   : > { %v3554_v14 = vpop.permute.xlu0 %3553 }
 0x553   : > { %v1357_v63 = vpack.c.bf16 %v1341_v7, %v1341_v7 }
 0x554   : > { %v3785_v23 = vpop.f32.mrf.mxu2 }
 0x555   : > { %v3489_v16 = vunpack.c.l.b16 %v1357_v63  ;;  %v3786_v49 = vadd.f32 %v6434_v45, %v3785_v23  ;;  %v4348_v45 = vld [vmem:[%s6947_s5] ss:$0 sm:$0xff] }
 0x557   : > { %v3498_v38 = vpack.c.b16 %v3490_v50, %v3489_v16  ;;  %3816 = vst.msk [vmem:[%s6462_s8 + $0x30] sm:$0xff] %vm7172_vm14, %v3786_v49 }
 0x559   : > { %v3690_v52 = vsel %vm7173_vm7, %v3498_v38, %v3554_v14 }
 0x55a   : > { %v3707_v58 = vsel %vm7174_vm10, %v3690_v52, %v3610_v42 }
 0x55b   : > { %v3724_v22 = vsel %vm7175_vm8, %v3707_v58, %v3666_v60 }
 0x55c   : > { %v3787_v10 = vpop.f32.mrf.mxu2  ;;  %4054 = vmatmul.msk.bf16.gmra.mxu2 %vm7176_vm9, %v3724_v22 }
 0x55d   : > { %v3788_v57 = vadd.f32 %v4348_v45, %v3787_v10 }
 0x55f   : > { %3817 = vst.msk [vmem:[%s6462_s8 + $0x38] sm:$0xff] %vm7177_vm11, %v3788_v57 }
 0x564   : > { %v3790_v59 = vpop.f32.mrf.mxu2 }
 0x565   : > { %v3791_v20 = vadd.f32 %v4348_v45, %v3790_v59 }
 0x567   : > { %3818 = vst.msk [vmem:[%s6462_s8 + $0x40] sm:$0xff] %vm7178_vm2, %v3791_v20 }
 0x56c   : > { %v3792_v34 = vpop.f32.mrf.mxu2 }
 0x56d   : > { %v3793_v53 = vadd.f32 %v4348_v45, %v3792_v34 }
 0x56f   : > { %3819 = vst.msk [vmem:[%s6462_s8 + $0x48] sm:$0xff] %vm7179_vm6, %v3793_v53 }
 0x599   : > { %v3795_v24 = vpop.f32.mrf.mxu2 }
 0x59a   : > { %v3796_v48 = vadd.f32 %v4348_v45, %v3795_v24 }
 0x59c   : > { %3820 = vst.msk [vmem:[%s6462_s8 + $0x50] sm:$0xff] %vm7180_vm4, %v3796_v48 }
 0x5a1   : > { %v3797_v17 = vpop.f32.mrf.mxu2 }
 0x5a2   : > { %v3798_v54 = vadd.f32 %v4348_v45, %v3797_v17 }
 0x5a4   : > { %3821 = vst.msk [vmem:[%s6462_s8 + $0x58] sm:$0xff] %vm7181_vm3, %v3798_v54 }
 0x5a9   : > { %v3800_v35 = vpop.f32.mrf.mxu2 }
 0x5aa   : > { %v3801_v56 = vadd.f32 %v4348_v45, %v3800_v35 }
 0x5ac   : > { %3822 = vst.msk [vmem:[%s6462_s8 + $0x60] sm:$0xff] %vm7182_vm13, %v3801_v56 }
 0x5b1   : > { %v3802_v44 = vpop.f32.mrf.mxu2 }
 0x5b2   : > { %v3803_v51 = vadd.f32 %v4348_v45, %v3802_v44 }
 0x5b4   : > { %3823 = vst.msk [vmem:[%s6462_s8 + $0x68] sm:$0xff] %vm7183_vm5, %v3803_v51 }
 0x5df   : > { %v3805_v3 = vpop.f32.mrf.mxu2 }
 0x5e0   : > { %v3806_v40 = vadd.f32 %v4348_v45, %v3805_v3 }
 0x5e2   : > { %3824 = vst.msk [vmem:[%s6462_s8 + $0x70] sm:$0xff] %vm7184_vm0, %v3806_v40 }
 0x5e7   : > { %v3807_v46 = vpop.f32.mrf.mxu2 }
 0x5e8   : > { %v3808_v26 = vadd.f32 %v4348_v45, %v3807_v46 }
 0x5ea   : > { %3825 = vst.msk [vmem:[%s6462_s8 + $0x78] sm:$0xff] %vm7185_vm1, %v3808_v26 }
 0x5eb PF: > { %s16_s21 = sadd.s32 1, %s4355_s21  }
 0x5ec   : > { %p13_p4 = scmp.ge.s32.totalorder %s16_s21, 6  }
 0x5ee   :  { %15 = sbr.rel (!%p13_p4) target bundleno = 1 (0x1), region = 74 }

</bundles_post_ra>
